<compile_context>
chip_gen: v6e
topology: v6e:2x2x1
jax: 0.10.0
libtpu: 0.0.40
codegen_flags: <defaults>
</compile_context>

<pallas_src>
import functools
import math

import jax
import jax.numpy as jnp
from jax.experimental import pallas as pl
from jax.experimental.pallas import tpu as pltpu


_ORIG_DIMS = [(7, 20), (20, 400), (400, 400), (400, 200), (200, 20), (20, 2)]
# Lane-aligned, zero-filled padding (exact math: tanh(0)=0, leaky_relu(0)=0, zero weight
# rows/bias entries contribute 0).  Final layer is padded only to 8 output lanes so the
# HBM writeback is 16x smaller than a 128-lane pad.
_PADDED_DIMS = [(8, 128), (128, 512), (512, 512), (512, 256), (256, 128), (128, 8)]

_D_IN = _PADDED_DIMS[0][0]     # 8
_D_OUT = _PADDED_DIMS[-1][1]   # 8


def _round_up(x, m):
    return ((x + m - 1) // m) * m


def _leaky_relu_f32(v, slope=0.01):
    return jnp.where(v >= 0, v, slope * v)


# ----------------------------- Pallas kernel -------------------------------

def backward_mlp_kernel(x_ref,
                        w1, b1, w2, b2, w3, b3, w4, b4, w5, b5, w6, b6,
                        o_ref, *, act_dtype):
    """One batch tile of the fused 6-layer MLP (all matmuls on the MXU)."""

    def lin(h, w_ref, b_ref):
        # LHS cast to the weight dtype (bf16 fast path / f32 exact path); f32 MXU
        # accumulation; f32 bias add on the VPU.
        return jnp.dot(h.astype(w_ref.dtype), w_ref[...],
                       preferred_element_type=jnp.float32) + b_ref[...]

    def tanh(v):
        return jnp.tanh(v.astype(act_dtype))

    def lrelu(v):
        v = v.astype(act_dtype)
        return jnp.where(v >= 0, v, 0.01 * v)

    h = x_ref[...]                   # (TB, 8)    f32
    h = tanh(lin(h, w1, b1))         # (TB, 128)
    h = lrelu(lin(h, w2, b2))        # (TB, 512)
    h = lrelu(lin(h, w3, b3))        # (TB, 512)
    h = tanh(lin(h, w4, b4))         # (TB, 256)
    h = lrelu(lin(h, w5, b5))        # (TB, 128)
    h = lin(h, w6, b6)               # (TB, 8)    (only cols 0:2 meaningful)
    o_ref[...] = h.astype(o_ref.dtype)


# ------------------------------ JAX wrapper ---------------------------------

def _prepare_params(params, use_bf16):
    """Zero-pad weights/biases to lane-aligned shapes; bf16 weights for layers 2..6."""
    flat = []
    for idx, ((w, b), (pi, po)) in enumerate(zip(params, _PADDED_DIMS)):
        w = jnp.asarray(w, jnp.float32)
        b = jnp.asarray(b, jnp.float32)
        wp = jnp.zeros((pi, po), jnp.float32).at[: w.shape[0], : w.shape[1]].set(w)
        bp = jnp.zeros((1, po), jnp.float32).at[0, : b.shape[0]].set(b)
        if use_bf16 and idx > 0:
            wp = wp.astype(jnp.bfloat16)   # f32 accumulation happens in the kernel
        flat += [wp, bp]
    return flat


def _vmem_bytes_estimate(tb, flat):
    """Rough VMEM footprint: 2x weights + a few live (tb,512) f32 slabs + 2x I/O tiles."""
    w_bytes = sum(int(a.size) * a.dtype.itemsize for a in flat)
    act_bytes = 4 * tb * 512 * 4
    io_bytes = 2 * 2 * tb * (_D_IN + _D_OUT) * 4
    return 2 * w_bytes + act_bytes + io_bytes


def backward_module_forward(params, x_cur, t, x_next, n, path_t,
                            *, block_b=1024, use_bf16=True, bf16_activations=False):
    """Forward pass of BackwardModule.

    params: list of 6 (weight(in,out), bias(out,)) tuples matching _ORIG_DIMS.
    x_cur, x_next: (B, 2); path_t: (B,); t, n: python/JAX scalars.
    bf16_activations=True is the v6e/v7x fast path (bf16 VPU/EUP); keep False on v5e.
    Returns (B, 2) float32.
    """
    B = x_cur.shape[0]

    # Input assembly (cheap glue): lane-padded (B, 8) = [x_cur, x_next, path_t, t, n, 0].
    y = jnp.broadcast_to(jnp.asarray([t, n], dtype=jnp.float32), (B, 2))
    inp = jnp.concatenate(
        [x_cur.astype(jnp.float32),
         x_next.astype(jnp.float32),
         path_t.reshape(B, 1).astype(jnp.float32),
         y,
         jnp.zeros((B, 1), jnp.float32)],      # pad 7 -> 8
        axis=1,
    )  # (B, 8)

    # Batch tile: large (amortizes ~0.35 us/step overhead) but capped at ceil(B/2) so
    # there are >= 2 grid steps whenever B allows it -> both v7x TCs get work.
    half = _round_up(max(1, -(-B // 2)), 8)
    tb = max(8, _round_up(min(block_b, half), 8))
    b_pad = _round_up(B, tb)
    if b_pad != B:
        inp = jnp.pad(inp, ((0, b_pad - B), (0, 0)))
    grid = (b_pad // tb,)

    flat = _prepare_params(params, use_bf16)
    act_dtype = jnp.bfloat16 if bf16_activations else jnp.float32
    kernel = functools.partial(backward_mlp_kernel, act_dtype=act_dtype)

    def io_map(i):        # activations: walk the batch
        return (i, 0)

    def const_map(i):     # weights/biases: same block every step -> resident in VMEM
        return (0, 0)

    # Advisory cost estimate so XLA schedules the surrounding glue ops sensibly.
    flops = 2 * sum(pi * po for pi, po in _PADDED_DIMS) * b_pad
    transcendentals = b_pad * (_PADDED_DIMS[0][1] + _PADDED_DIMS[3][1])   # two tanh layers
    bytes_accessed = (b_pad * (_D_IN + _D_OUT) * 4
                      + sum(int(a.size) * a.dtype.itemsize for a in flat))

    compiler_kwargs = dict(dimension_semantics=("parallel",))  # batch axis -> megacore
    est = _vmem_bytes_estimate(tb, flat)
    if est > (16 << 20):
        # Only triggers for user-enlarged tiles (tb > ~1024); default fits the 16 MiB
        # v5e scoped default.  Cap well under v7x's 64 MiB physical VMEM.
        compiler_kwargs["vmem_limit_bytes"] = min(_round_up(est, 1 << 20) + (4 << 20), 56 << 20)

    def run(single_buffer_weights):
        mode = (pl.Buffered(1)
                if (single_buffer_weights and hasattr(pl, "Buffered")) else None)
        in_specs = [pl.BlockSpec((tb, _D_IN), io_map)]
        for arr in flat:
            if mode is None:
                in_specs.append(pl.BlockSpec(arr.shape, const_map))
            else:
                in_specs.append(pl.BlockSpec(arr.shape, const_map, pipeline_mode=mode))
        return pl.pallas_call(
            kernel,
            out_shape=jax.ShapeDtypeStruct((b_pad, _D_OUT), jnp.float32),
            grid_spec=pltpu.PrefetchScalarGridSpec(
                num_scalar_prefetch=0,
                grid=grid,
                in_specs=in_specs,
                out_specs=pl.BlockSpec((tb, _D_OUT), io_map),
            ),
            compiler_params=pltpu.CompilerParams(**compiler_kwargs),
            cost_estimate=pl.CostEstimate(
                flops=int(flops),
                transcendentals=int(transcendentals),
                bytes_accessed=int(bytes_accessed)),
        )(inp, *flat)

    try:
        out_padded = run(True)
    except Exception:
        # Fallback if this JAX build rejects single-buffered (Buffered(1)) resident
        # weights: identical numerics, just default double-buffering.
        out_padded = run(False)

    return out_padded[:B, :2]


# ------------------------ pure-JAX reference (f32) ---------------------------

def reference_forward(params, x_cur, t, x_next, n, path_t):
    B = x_cur.shape[0]
    y = jnp.broadcast_to(jnp.asarray([t, n], dtype=jnp.float32), (B, 2))
    h = jnp.concatenate(
        [x_cur.astype(jnp.float32), x_next.astype(jnp.float32),
         path_t.reshape(B, 1).astype(jnp.float32), y], axis=1)
    (w1, b1), (w2, b2), (w3, b3), (w4, b4), (w5, b5), (w6, b6) = params
    h = jnp.tanh(h @ w1 + b1)
    h = _leaky_relu_f32(h @ w2 + b2)
    h = _leaky_relu_f32(h @ w3 + b3)
    h = jnp.tanh(h @ w4 + b4)
    h = _leaky_relu_f32(h @ w5 + b5)
    return h @ w6 + b6


# ----------------------- deterministic parameter init ----------------------

def _xavier_uniform(key, fan_in, fan_out):
    # torch.nn.init.xavier_uniform_ (gain=1): U(-a, a), a = sqrt(6/(fan_in+fan_out))
    a = math.sqrt(6.0 / (fan_in + fan_out))
    return jax.random.uniform(key, (fan_in, fan_out), jnp.float32, -a, a)


def _linear_bias(key, fan_in, fan_out):
    # PyTorch default bias init: U(-1/sqrt(fan_in), 1/sqrt(fan_in))
    bound = 1.0 / math.sqrt(fan_in)
    return jax.random.uniform(key, (fan_out,), jnp.float32, -bound, bound)


def init_params(key):
    params = []
    for (fi, fo) in _ORIG_DIMS:
        key, kw, kb = jax.random.split(key, 3)
        params.append((_xavier_uniform(kw, fi, fo), _linear_bias(kb, fi, fo)))
    return params


# --------------------------------- main -------------------------------------

if __name__ == "__main__":
    key = jax.random.PRNGKey(0)
    kp, kx1, kx2, kpt, kx3, kx4, kpt2 = jax.random.split(key, 7)

    params = init_params(kp)

    t = 0.3   # scalar timestep
    n = 5.0   # scalar chain index

    # ---- case 1: B=50 (exercises grid=2 + batch padding path) ----
    B = 50
    x_cur = jax.random.normal(kx1, (B, 2), jnp.float32)
    x_next = jax.random.normal(kx2, (B, 2), jnp.float32)
    path_t = jax.random.uniform(kpt, (B,), jnp.float32)
    ref = reference_forward(params, x_cur, t, x_next, n, path_t)

    # Exact f32 path (bit-faithful modulo accumulation order).
    out_f32 = backward_module_forward(params, x_cur, t, x_next, n, path_t,
                                      use_bf16=False)
    out_f32 = jax.block_until_ready(out_f32)
    assert out_f32.shape == (B, 2) and out_f32.dtype == jnp.float32
    assert bool(jnp.allclose(out_f32, ref, atol=2e-3, rtol=2e-3))

    # Default fast path: bf16 MXU operands, f32 accumulation, f32 activations.
    out_bf16 = backward_module_forward(params, x_cur, t, x_next, n, path_t)
    out_bf16 = jax.block_until_ready(out_bf16)
    assert out_bf16.shape == (B, 2) and bool(jnp.all(jnp.isfinite(out_bf16)))
    assert bool(jnp.allclose(out_bf16, ref, atol=5e-2, rtol=5e-2))

    # v6e/v7x fast path: bf16 activations between layers (f32 MXU accumulation kept).
    out_act = backward_module_forward(params, x_cur, t, x_next, n, path_t,
                                      bf16_activations=True)
    out_act = jax.block_until_ready(out_act)
    assert out_act.shape == (B, 2) and bool(jnp.all(jnp.isfinite(out_act)))
    assert bool(jnp.allclose(out_act, ref, atol=1e-1, rtol=1e-1))

    # ---- case 2: tiny batch B=8 (grid=(1,) edge case) ----
    B2 = 8
    x_cur2 = jax.random.normal(kx3, (B2, 2), jnp.float32)
    x_next2 = jax.random.normal(kx4, (B2, 2), jnp.float32)
    path_t2 = jax.random.uniform(kpt2, (B2,), jnp.float32)
    ref2 = reference_forward(params, x_cur2, t, x_next2, n, path_t2)
    out2 = backward_module_forward(params, x_cur2, t, x_next2, n, path_t2)
    out2 = jax.block_until_ready(out2)
    assert out2.shape == (B2, 2)
    assert bool(jnp.allclose(out2, ref2, atol=5e-2, rtol=5e-2))

    print("KERNEL_OK")
</pallas_src>

<mosaic_0001>
module attributes {stable_mosaic.version = 11 : i64} {
  func.func @backward_mlp_kernel(%arg0: i32, %arg1: memref<32x8xf32, #tpu.memory_space<vmem>>, %arg2: memref<8x128xf32, #tpu.memory_space<vmem>>, %arg3: memref<1x128xf32, #tpu.memory_space<vmem>>, %arg4: memref<128x512xf32, #tpu.memory_space<vmem>>, %arg5: memref<1x512xf32, #tpu.memory_space<vmem>>, %arg6: memref<512x512xf32, #tpu.memory_space<vmem>>, %arg7: memref<1x512xf32, #tpu.memory_space<vmem>>, %arg8: memref<512x256xf32, #tpu.memory_space<vmem>>, %arg9: memref<1x256xf32, #tpu.memory_space<vmem>>, %arg10: memref<256x128xf32, #tpu.memory_space<vmem>>, %arg11: memref<1x128xf32, #tpu.memory_space<vmem>>, %arg12: memref<128x8xf32, #tpu.memory_space<vmem>>, %arg13: memref<1x8xf32, #tpu.memory_space<vmem>>, %arg14: memref<32x8xf32, #tpu.memory_space<vmem>>) attributes {dimension_semantics = [#tpu.dimension_semantics<parallel>], iteration_bounds = array<i64: 2>, scalar_prefetch = 0 : i64, scratch_operands = 0 : i64, tpu.core_type = #tpu.core_type<tc>, window_params = [{transform_indices = @transform_0, window_bounds = array<i64: 32, 8>}, {pipeline_mode = #tpu.pipeline_mode<synchronous>, transform_indices = @transform_1, window_bounds = array<i64: 8, 128>}, {pipeline_mode = #tpu.pipeline_mode<synchronous>, transform_indices = @transform_2, window_bounds = array<i64: 1, 128>}, {pipeline_mode = #tpu.pipeline_mode<synchronous>, transform_indices = @transform_3, window_bounds = array<i64: 128, 512>}, {pipeline_mode = #tpu.pipeline_mode<synchronous>, transform_indices = @transform_4, window_bounds = array<i64: 1, 512>}, {pipeline_mode = #tpu.pipeline_mode<synchronous>, transform_indices = @transform_5, window_bounds = array<i64: 512, 512>}, {pipeline_mode = #tpu.pipeline_mode<synchronous>, transform_indices = @transform_6, window_bounds = array<i64: 1, 512>}, {pipeline_mode = #tpu.pipeline_mode<synchronous>, transform_indices = @transform_7, window_bounds = array<i64: 512, 256>}, {pipeline_mode = #tpu.pipeline_mode<synchronous>, transform_indices = @transform_8, window_bounds = array<i64: 1, 256>}, {pipeline_mode = #tpu.pipeline_mode<synchronous>, transform_indices = @transform_9, window_bounds = array<i64: 256, 128>}, {pipeline_mode = #tpu.pipeline_mode<synchronous>, transform_indices = @transform_10, window_bounds = array<i64: 1, 128>}, {pipeline_mode = #tpu.pipeline_mode<synchronous>, transform_indices = @transform_11, window_bounds = array<i64: 128, 8>}, {pipeline_mode = #tpu.pipeline_mode<synchronous>, transform_indices = @transform_12, window_bounds = array<i64: 1, 8>}, {transform_indices = @transform_13, window_bounds = array<i64: 32, 8>}]} {
    %c0 = arith.constant 0 : index
    %c0_0 = arith.constant 0 : index
    %0 = vector.load %arg1[%c0, %c0_0] : memref<32x8xf32, #tpu.memory_space<vmem>>, vector<32x8xf32>
    %c0_1 = arith.constant 0 : index
    %c0_2 = arith.constant 0 : index
    %1 = vector.load %arg2[%c0_1, %c0_2] : memref<8x128xf32, #tpu.memory_space<vmem>>, vector<8x128xf32>
    %cst = arith.constant dense<0.000000e+00> : vector<32x128xf32>
    %2 = tpu.matmul %0, %1, %cst {dimension_numbers = #tpu.dot_dimension_numbers<[1], [0], [0], [1], [0, 0, 1, 1], [], []>} : vector<32x8xf32>, vector<8x128xf32>, vector<32x128xf32> -> vector<32x128xf32>
    %c0_3 = arith.constant 0 : index
    %c0_4 = arith.constant 0 : index
    %3 = vector.load %arg3[%c0_3, %c0_4] : memref<1x128xf32, #tpu.memory_space<vmem>>, vector<1x128xf32>
    %4 = vector.broadcast %3 : vector<1x128xf32> to vector<32x128xf32>
    %5 = arith.addf %2, %4 : vector<32x128xf32>
    %6 = math.tanh %5 : vector<32x128xf32>
    %c0_5 = arith.constant 0 : index
    %c0_6 = arith.constant 0 : index
    %7 = vector.load %arg4[%c0_5, %c0_6] : memref<128x512xf32, #tpu.memory_space<vmem>>, vector<128x512xf32>
    %cst_7 = arith.constant dense<0.000000e+00> : vector<32x512xf32>
    %8 = tpu.matmul %6, %7, %cst_7 {dimension_numbers = #tpu.dot_dimension_numbers<[1], [0], [0], [1], [0, 0, 1, 1], [], []>} : vector<32x128xf32>, vector<128x512xf32>, vector<32x512xf32> -> vector<32x512xf32>
    %c0_8 = arith.constant 0 : index
    %c0_9 = arith.constant 0 : index
    %9 = vector.load %arg5[%c0_8, %c0_9] : memref<1x512xf32, #tpu.memory_space<vmem>>, vector<1x512xf32>
    %10 = vector.broadcast %9 : vector<1x512xf32> to vector<32x512xf32>
    %11 = arith.addf %8, %10 : vector<32x512xf32>
    %cst_10 = arith.constant 0.000000e+00 : f32
    %12 = vector.broadcast %cst_10 : f32 to vector<32x512xf32>
    %13 = arith.cmpf oge, %11, %12 : vector<32x512xf32>
    %cst_11 = arith.constant 0.00999999977 : f32
    %14 = vector.broadcast %cst_11 : f32 to vector<32x512xf32>
    %15 = arith.mulf %14, %11 : vector<32x512xf32>
    %16 = arith.select %13, %11, %15 : vector<32x512xi1>, vector<32x512xf32>
    %c0_12 = arith.constant 0 : index
    %c0_13 = arith.constant 0 : index
    %17 = vector.load %arg6[%c0_12, %c0_13] : memref<512x512xf32, #tpu.memory_space<vmem>>, vector<512x512xf32>
    %cst_14 = arith.constant dense<0.000000e+00> : vector<32x512xf32>
    %18 = tpu.matmul %16, %17, %cst_14 {dimension_numbers = #tpu.dot_dimension_numbers<[1], [0], [0], [1], [0, 0, 1, 1], [], []>} : vector<32x512xf32>, vector<512x512xf32>, vector<32x512xf32> -> vector<32x512xf32>
    %c0_15 = arith.constant 0 : index
    %c0_16 = arith.constant 0 : index
    %19 = vector.load %arg7[%c0_15, %c0_16] : memref<1x512xf32, #tpu.memory_space<vmem>>, vector<1x512xf32>
    %20 = vector.broadcast %19 : vector<1x512xf32> to vector<32x512xf32>
    %21 = arith.addf %18, %20 : vector<32x512xf32>
    %cst_17 = arith.constant 0.000000e+00 : f32
    %22 = vector.broadcast %cst_17 : f32 to vector<32x512xf32>
    %23 = arith.cmpf oge, %21, %22 : vector<32x512xf32>
    %cst_18 = arith.constant 0.00999999977 : f32
    %24 = vector.broadcast %cst_18 : f32 to vector<32x512xf32>
    %25 = arith.mulf %24, %21 : vector<32x512xf32>
    %26 = arith.select %23, %21, %25 : vector<32x512xi1>, vector<32x512xf32>
    %c0_19 = arith.constant 0 : index
    %c0_20 = arith.constant 0 : index
    %27 = vector.load %arg8[%c0_19, %c0_20] : memref<512x256xf32, #tpu.memory_space<vmem>>, vector<512x256xf32>
    %cst_21 = arith.constant dense<0.000000e+00> : vector<32x256xf32>
    %28 = tpu.matmul %26, %27, %cst_21 {dimension_numbers = #tpu.dot_dimension_numbers<[1], [0], [0], [1], [0, 0, 1, 1], [], []>} : vector<32x512xf32>, vector<512x256xf32>, vector<32x256xf32> -> vector<32x256xf32>
    %c0_22 = arith.constant 0 : index
    %c0_23 = arith.constant 0 : index
    %29 = vector.load %arg9[%c0_22, %c0_23] : memref<1x256xf32, #tpu.memory_space<vmem>>, vector<1x256xf32>
    %30 = vector.broadcast %29 : vector<1x256xf32> to vector<32x256xf32>
    %31 = arith.addf %28, %30 : vector<32x256xf32>
    %32 = math.tanh %31 : vector<32x256xf32>
    %c0_24 = arith.constant 0 : index
    %c0_25 = arith.constant 0 : index
    %33 = vector.load %arg10[%c0_24, %c0_25] : memref<256x128xf32, #tpu.memory_space<vmem>>, vector<256x128xf32>
    %cst_26 = arith.constant dense<0.000000e+00> : vector<32x128xf32>
    %34 = tpu.matmul %32, %33, %cst_26 {dimension_numbers = #tpu.dot_dimension_numbers<[1], [0], [0], [1], [0, 0, 1, 1], [], []>} : vector<32x256xf32>, vector<256x128xf32>, vector<32x128xf32> -> vector<32x128xf32>
    %c0_27 = arith.constant 0 : index
    %c0_28 = arith.constant 0 : index
    %35 = vector.load %arg11[%c0_27, %c0_28] : memref<1x128xf32, #tpu.memory_space<vmem>>, vector<1x128xf32>
    %36 = vector.broadcast %35 : vector<1x128xf32> to vector<32x128xf32>
    %37 = arith.addf %34, %36 : vector<32x128xf32>
    %cst_29 = arith.constant 0.000000e+00 : f32
    %38 = vector.broadcast %cst_29 : f32 to vector<32x128xf32>
    %39 = arith.cmpf oge, %37, %38 : vector<32x128xf32>
    %cst_30 = arith.constant 0.00999999977 : f32
    %40 = vector.broadcast %cst_30 : f32 to vector<32x128xf32>
    %41 = arith.mulf %40, %37 : vector<32x128xf32>
    %42 = arith.select %39, %37, %41 : vector<32x128xi1>, vector<32x128xf32>
    %c0_31 = arith.constant 0 : index
    %c0_32 = arith.constant 0 : index
    %43 = vector.load %arg12[%c0_31, %c0_32] : memref<128x8xf32, #tpu.memory_space<vmem>>, vector<128x8xf32>
    %cst_33 = arith.constant dense<0.000000e+00> : vector<32x8xf32>
    %44 = tpu.matmul %42, %43, %cst_33 {dimension_numbers = #tpu.dot_dimension_numbers<[1], [0], [0], [1], [0, 0, 1, 1], [], []>} : vector<32x128xf32>, vector<128x8xf32>, vector<32x8xf32> -> vector<32x8xf32>
    %c0_34 = arith.constant 0 : index
    %c0_35 = arith.constant 0 : index
    %45 = vector.load %arg13[%c0_34, %c0_35] : memref<1x8xf32, #tpu.memory_space<vmem>>, vector<1x8xf32>
    %46 = vector.broadcast %45 : vector<1x8xf32> to vector<32x8xf32>
    %47 = arith.addf %44, %46 : vector<32x8xf32>
    %c0_36 = arith.constant 0 : index
    %c0_37 = arith.constant 0 : index
    %48 = vector.load %arg14[%c0_36, %c0_37] : memref<32x8xf32, #tpu.memory_space<vmem>>, vector<32x8xf32>
    tpu.vector_store %arg14[%c0_36, %c0_37], %47 {strides = array<i32>} : memref<32x8xf32, #tpu.memory_space<vmem>>, vector<32x8xf32>,
    return
  }
  func.func @transform_0(%arg0: i32) -> (i32, i32) {
    %c0_i32 = arith.constant 0 : i32
    %c0_i32_0 = arith.constant 0 : i32
    return %arg0, %c0_i32 : i32, i32
  }
  func.func @transform_1(%arg0: i32) -> (i32, i32) {
    %c0_i32 = arith.constant 0 : i32
    %c0_i32_0 = arith.constant 0 : i32
    %c0_i32_1 = arith.constant 0 : i32
    return %c0_i32, %c0_i32_0 : i32, i32
  }
  func.func @transform_2(%arg0: i32) -> (i32, i32) {
    %c0_i32 = arith.constant 0 : i32
    %c0_i32_0 = arith.constant 0 : i32
    %c0_i32_1 = arith.constant 0 : i32
    return %c0_i32, %c0_i32_0 : i32, i32
  }
  func.func @transform_3(%arg0: i32) -> (i32, i32) {
    %c0_i32 = arith.constant 0 : i32
    %c0_i32_0 = arith.constant 0 : i32
    %c0_i32_1 = arith.constant 0 : i32
    return %c0_i32, %c0_i32_0 : i32, i32
  }
  func.func @transform_4(%arg0: i32) -> (i32, i32) {
    %c0_i32 = arith.constant 0 : i32
    %c0_i32_0 = arith.constant 0 : i32
    %c0_i32_1 = arith.constant 0 : i32
    return %c0_i32, %c0_i32_0 : i32, i32
  }
  func.func @transform_5(%arg0: i32) -> (i32, i32) {
    %c0_i32 = arith.constant 0 : i32
    %c0_i32_0 = arith.constant 0 : i32
    %c0_i32_1 = arith.constant 0 : i32
    return %c0_i32, %c0_i32_0 : i32, i32
  }
  func.func @transform_6(%arg0: i32) -> (i32, i32) {
    %c0_i32 = arith.constant 0 : i32
    %c0_i32_0 = arith.constant 0 : i32
    %c0_i32_1 = arith.constant 0 : i32
    return %c0_i32, %c0_i32_0 : i32, i32
  }
  func.func @transform_7(%arg0: i32) -> (i32, i32) {
    %c0_i32 = arith.constant 0 : i32
    %c0_i32_0 = arith.constant 0 : i32
    %c0_i32_1 = arith.constant 0 : i32
    return %c0_i32, %c0_i32_0 : i32, i32
  }
  func.func @transform_8(%arg0: i32) -> (i32, i32) {
    %c0_i32 = arith.constant 0 : i32
    %c0_i32_0 = arith.constant 0 : i32
    %c0_i32_1 = arith.constant 0 : i32
    return %c0_i32, %c0_i32_0 : i32, i32
  }
  func.func @transform_9(%arg0: i32) -> (i32, i32) {
    %c0_i32 = arith.constant 0 : i32
    %c0_i32_0 = arith.constant 0 : i32
    %c0_i32_1 = arith.constant 0 : i32
    return %c0_i32, %c0_i32_0 : i32, i32
  }
  func.func @transform_10(%arg0: i32) -> (i32, i32) {
    %c0_i32 = arith.constant 0 : i32
    %c0_i32_0 = arith.constant 0 : i32
    %c0_i32_1 = arith.constant 0 : i32
    return %c0_i32, %c0_i32_0 : i32, i32
  }
  func.func @transform_11(%arg0: i32) -> (i32, i32) {
    %c0_i32 = arith.constant 0 : i32
    %c0_i32_0 = arith.constant 0 : i32
    %c0_i32_1 = arith.constant 0 : i32
    return %c0_i32, %c0_i32_0 : i32, i32
  }
  func.func @transform_12(%arg0: i32) -> (i32, i32) {
    %c0_i32 = arith.constant 0 : i32
    %c0_i32_0 = arith.constant 0 : i32
    %c0_i32_1 = arith.constant 0 : i32
    return %c0_i32, %c0_i32_0 : i32, i32
  }
  func.func @transform_13(%arg0: i32) -> (i32, i32) {
    %c0_i32 = arith.constant 0 : i32
    %c0_i32_0 = arith.constant 0 : i32
    return %arg0, %c0_i32 : i32, i32
  }
}

module attributes {stable_mosaic.version = 11 : i64} {
  func.func @backward_mlp_kernel(%arg0: i32, %arg1: memref<32x8xf32, #tpu.memory_space<vmem>>, %arg2: memref<8x128xf32, #tpu.memory_space<vmem>>, %arg3: memref<1x128xf32, #tpu.memory_space<vmem>>, %arg4: memref<128x512xf32, #tpu.memory_space<vmem>>, %arg5: memref<1x512xf32, #tpu.memory_space<vmem>>, %arg6: memref<512x512xf32, #tpu.memory_space<vmem>>, %arg7: memref<1x512xf32, #tpu.memory_space<vmem>>, %arg8: memref<512x256xf32, #tpu.memory_space<vmem>>, %arg9: memref<1x256xf32, #tpu.memory_space<vmem>>, %arg10: memref<256x128xf32, #tpu.memory_space<vmem>>, %arg11: memref<1x128xf32, #tpu.memory_space<vmem>>, %arg12: memref<128x8xf32, #tpu.memory_space<vmem>>, %arg13: memref<1x8xf32, #tpu.memory_space<vmem>>, %arg14: memref<32x8xf32, #tpu.memory_space<vmem>>) attributes {dimension_semantics = [#tpu.dimension_semantics<parallel>], iteration_bounds = array<i64: 2>, scalar_prefetch = 0 : i64, scratch_operands = 0 : i64, tpu.core_type = #tpu.core_type<tc>, window_params = [{transform_indices = @transform_0, window_bounds = array<i64: 32, 8>}, {pipeline_mode = #tpu.pipeline_mode<synchronous>, transform_indices = @transform_1, window_bounds = array<i64: 8, 128>}, {pipeline_mode = #tpu.pipeline_mode<synchronous>, transform_indices = @transform_2, window_bounds = array<i64: 1, 128>}, {pipeline_mode = #tpu.pipeline_mode<synchronous>, transform_indices = @transform_3, window_bounds = array<i64: 128, 512>}, {pipeline_mode = #tpu.pipeline_mode<synchronous>, transform_indices = @transform_4, window_bounds = array<i64: 1, 512>}, {pipeline_mode = #tpu.pipeline_mode<synchronous>, transform_indices = @transform_5, window_bounds = array<i64: 512, 512>}, {pipeline_mode = #tpu.pipeline_mode<synchronous>, transform_indices = @transform_6, window_bounds = array<i64: 1, 512>}, {pipeline_mode = #tpu.pipeline_mode<synchronous>, transform_indices = @transform_7, window_bounds = array<i64: 512, 256>}, {pipeline_mode = #tpu.pipeline_mode<synchronous>, transform_indices = @transform_8, window_bounds = array<i64: 1, 256>}, {pipeline_mode = #tpu.pipeline_mode<synchronous>, transform_indices = @transform_9, window_bounds = array<i64: 256, 128>}, {pipeline_mode = #tpu.pipeline_mode<synchronous>, transform_indices = @transform_10, window_bounds = array<i64: 1, 128>}, {pipeline_mode = #tpu.pipeline_mode<synchronous>, transform_indices = @transform_11, window_bounds = array<i64: 128, 8>}, {pipeline_mode = #tpu.pipeline_mode<synchronous>, transform_indices = @transform_12, window_bounds = array<i64: 1, 8>}, {transform_indices = @transform_13, window_bounds = array<i64: 32, 8>}]} {
    %c0 = arith.constant 0 : index
    %c0_0 = arith.constant 0 : index
    %0 = vector.load %arg1[%c0, %c0_0] : memref<32x8xf32, #tpu.memory_space<vmem>>, vector<32x8xf32>
    %c0_1 = arith.constant 0 : index
    %c0_2 = arith.constant 0 : index
    %1 = vector.load %arg2[%c0_1, %c0_2] : memref<8x128xf32, #tpu.memory_space<vmem>>, vector<8x128xf32>
    %cst = arith.constant dense<0.000000e+00> : vector<32x128xf32>
    %2 = tpu.matmul %0, %1, %cst {dimension_numbers = #tpu.dot_dimension_numbers<[1], [0], [0], [1], [0, 0, 1, 1], [], []>} : vector<32x8xf32>, vector<8x128xf32>, vector<32x128xf32> -> vector<32x128xf32>
    %c0_3 = arith.constant 0 : index
    %c0_4 = arith.constant 0 : index
    %3 = vector.load %arg3[%c0_3, %c0_4] : memref<1x128xf32, #tpu.memory_space<vmem>>, vector<1x128xf32>
    %4 = vector.broadcast %3 : vector<1x128xf32> to vector<32x128xf32>
    %5 = arith.addf %2, %4 : vector<32x128xf32>
    %6 = math.tanh %5 : vector<32x128xf32>
    %c0_5 = arith.constant 0 : index
    %c0_6 = arith.constant 0 : index
    %7 = vector.load %arg4[%c0_5, %c0_6] : memref<128x512xf32, #tpu.memory_space<vmem>>, vector<128x512xf32>
    %cst_7 = arith.constant dense<0.000000e+00> : vector<32x512xf32>
    %8 = tpu.matmul %6, %7, %cst_7 {dimension_numbers = #tpu.dot_dimension_numbers<[1], [0], [0], [1], [0, 0, 1, 1], [], []>} : vector<32x128xf32>, vector<128x512xf32>, vector<32x512xf32> -> vector<32x512xf32>
    %c0_8 = arith.constant 0 : index
    %c0_9 = arith.constant 0 : index
    %9 = vector.load %arg5[%c0_8, %c0_9] : memref<1x512xf32, #tpu.memory_space<vmem>>, vector<1x512xf32>
    %10 = vector.broadcast %9 : vector<1x512xf32> to vector<32x512xf32>
    %11 = arith.addf %8, %10 : vector<32x512xf32>
    %cst_10 = arith.constant 0.000000e+00 : f32
    %12 = vector.broadcast %cst_10 : f32 to vector<32x512xf32>
    %13 = arith.cmpf oge, %11, %12 : vector<32x512xf32>
    %cst_11 = arith.constant 0.00999999977 : f32
    %14 = vector.broadcast %cst_11 : f32 to vector<32x512xf32>
    %15 = arith.mulf %14, %11 : vector<32x512xf32>
    %16 = arith.select %13, %11, %15 : vector<32x512xi1>, vector<32x512xf32>
    %c0_12 = arith.constant 0 : index
    %c0_13 = arith.constant 0 : index
    %17 = vector.load %arg6[%c0_12, %c0_13] : memref<512x512xf32, #tpu.memory_space<vmem>>, vector<512x512xf32>
    %cst_14 = arith.constant dense<0.000000e+00> : vector<32x512xf32>
    %18 = tpu.matmul %16, %17, %cst_14 {dimension_numbers = #tpu.dot_dimension_numbers<[1], [0], [0], [1], [0, 0, 1, 1], [], []>} : vector<32x512xf32>, vector<512x512xf32>, vector<32x512xf32> -> vector<32x512xf32>
    %c0_15 = arith.constant 0 : index
    %c0_16 = arith.constant 0 : index
    %19 = vector.load %arg7[%c0_15, %c0_16] : memref<1x512xf32, #tpu.memory_space<vmem>>, vector<1x512xf32>
    %20 = vector.broadcast %19 : vector<1x512xf32> to vector<32x512xf32>
    %21 = arith.addf %18, %20 : vector<32x512xf32>
    %cst_17 = arith.constant 0.000000e+00 : f32
    %22 = vector.broadcast %cst_17 : f32 to vector<32x512xf32>
    %23 = arith.cmpf oge, %21, %22 : vector<32x512xf32>
    %cst_18 = arith.constant 0.00999999977 : f32
    %24 = vector.broadcast %cst_18 : f32 to vector<32x512xf32>
    %25 = arith.mulf %24, %21 : vector<32x512xf32>
    %26 = arith.select %23, %21, %25 : vector<32x512xi1>, vector<32x512xf32>
    %c0_19 = arith.constant 0 : index
    %c0_20 = arith.constant 0 : index
    %27 = vector.load %arg8[%c0_19, %c0_20] : memref<512x256xf32, #tpu.memory_space<vmem>>, vector<512x256xf32>
    %cst_21 = arith.constant dense<0.000000e+00> : vector<32x256xf32>
    %28 = tpu.matmul %26, %27, %cst_21 {dimension_numbers = #tpu.dot_dimension_numbers<[1], [0], [0], [1], [0, 0, 1, 1], [], []>} : vector<32x512xf32>, vector<512x256xf32>, vector<32x256xf32> -> vector<32x256xf32>
    %c0_22 = arith.constant 0 : index
    %c0_23 = arith.constant 0 : index
    %29 = vector.load %arg9[%c0_22, %c0_23] : memref<1x256xf32, #tpu.memory_space<vmem>>, vector<1x256xf32>
    %30 = vector.broadcast %29 : vector<1x256xf32> to vector<32x256xf32>
    %31 = arith.addf %28, %30 : vector<32x256xf32>
    %32 = math.tanh %31 : vector<32x256xf32>
    %c0_24 = arith.constant 0 : index
    %c0_25 = arith.constant 0 : index
    %33 = vector.load %arg10[%c0_24, %c0_25] : memref<256x128xf32, #tpu.memory_space<vmem>>, vector<256x128xf32>
    %cst_26 = arith.constant dense<0.000000e+00> : vector<32x128xf32>
    %34 = tpu.matmul %32, %33, %cst_26 {dimension_numbers = #tpu.dot_dimension_numbers<[1], [0], [0], [1], [0, 0, 1, 1], [], []>} : vector<32x256xf32>, vector<256x128xf32>, vector<32x128xf32> -> vector<32x128xf32>
    %c0_27 = arith.constant 0 : index
    %c0_28 = arith.constant 0 : index
    %35 = vector.load %arg11[%c0_27, %c0_28] : memref<1x128xf32, #tpu.memory_space<vmem>>, vector<1x128xf32>
    %36 = vector.broadcast %35 : vector<1x128xf32> to vector<32x128xf32>
    %37 = arith.addf %34, %36 : vector<32x128xf32>
    %cst_29 = arith.constant 0.000000e+00 : f32
    %38 = vector.broadcast %cst_29 : f32 to vector<32x128xf32>
    %39 = arith.cmpf oge, %37, %38 : vector<32x128xf32>
    %cst_30 = arith.constant 0.00999999977 : f32
    %40 = vector.broadcast %cst_30 : f32 to vector<32x128xf32>
    %41 = arith.mulf %40, %37 : vector<32x128xf32>
    %42 = arith.select %39, %37, %41 : vector<32x128xi1>, vector<32x128xf32>
    %c0_31 = arith.constant 0 : index
    %c0_32 = arith.constant 0 : index
    %43 = vector.load %arg12[%c0_31, %c0_32] : memref<128x8xf32, #tpu.memory_space<vmem>>, vector<128x8xf32>
    %cst_33 = arith.constant dense<0.000000e+00> : vector<32x8xf32>
    %44 = tpu.matmul %42, %43, %cst_33 {dimension_numbers = #tpu.dot_dimension_numbers<[1], [0], [0], [1], [0, 0, 1, 1], [], []>} : vector<32x128xf32>, vector<128x8xf32>, vector<32x8xf32> -> vector<32x8xf32>
    %c0_34 = arith.constant 0 : index
    %c0_35 = arith.constant 0 : index
    %45 = vector.load %arg13[%c0_34, %c0_35] : memref<1x8xf32, #tpu.memory_space<vmem>>, vector<1x8xf32>
    %46 = vector.broadcast %45 : vector<1x8xf32> to vector<32x8xf32>
    %47 = arith.addf %44, %46 : vector<32x8xf32>
    %c0_36 = arith.constant 0 : index
    %c0_37 = arith.constant 0 : index
    %48 = vector.load %arg14[%c0_36, %c0_37] : memref<32x8xf32, #tpu.memory_space<vmem>>, vector<32x8xf32>
    tpu.vector_store %arg14[%c0_36, %c0_37], %47 {strides = array<i32>} : memref<32x8xf32, #tpu.memory_space<vmem>>, vector<32x8xf32>,
    return
  }
  func.func @transform_0(%arg0: i32) -> (i32, i32) {
    %c0_i32 = arith.constant 0 : i32
    %c0_i32_0 = arith.constant 0 : i32
    return %arg0, %c0_i32 : i32, i32
  }
  func.func @transform_1(%arg0: i32) -> (i32, i32) {
    %c0_i32 = arith.constant 0 : i32
    %c0_i32_0 = arith.constant 0 : i32
    %c0_i32_1 = arith.constant 0 : i32
    return %c0_i32, %c0_i32_0 : i32, i32
  }
  func.func @transform_2(%arg0: i32) -> (i32, i32) {
    %c0_i32 = arith.constant 0 : i32
    %c0_i32_0 = arith.constant 0 : i32
    %c0_i32_1 = arith.constant 0 : i32
    return %c0_i32, %c0_i32_0 : i32, i32
  }
  func.func @transform_3(%arg0: i32) -> (i32, i32) {
    %c0_i32 = arith.constant 0 : i32
    %c0_i32_0 = arith.constant 0 : i32
    %c0_i32_1 = arith.constant 0 : i32
    return %c0_i32, %c0_i32_0 : i32, i32
  }
  func.func @transform_4(%arg0: i32) -> (i32, i32) {
    %c0_i32 = arith.constant 0 : i32
    %c0_i32_0 = arith.constant 0 : i32
    %c0_i32_1 = arith.constant 0 : i32
    return %c0_i32, %c0_i32_0 : i32, i32
  }
  func.func @transform_5(%arg0: i32) -> (i32, i32) {
    %c0_i32 = arith.constant 0 : i32
    %c0_i32_0 = arith.constant 0 : i32
    %c0_i32_1 = arith.constant 0 : i32
    return %c0_i32, %c0_i32_0 : i32, i32
  }
  func.func @transform_6(%arg0: i32) -> (i32, i32) {
    %c0_i32 = arith.constant 0 : i32
    %c0_i32_0 = arith.constant 0 : i32
    %c0_i32_1 = arith.constant 0 : i32
    return %c0_i32, %c0_i32_0 : i32, i32
  }
  func.func @transform_7(%arg0: i32) -> (i32, i32) {
    %c0_i32 = arith.constant 0 : i32
    %c0_i32_0 = arith.constant 0 : i32
    %c0_i32_1 = arith.constant 0 : i32
    return %c0_i32, %c0_i32_0 : i32, i32
  }
  func.func @transform_8(%arg0: i32) -> (i32, i32) {
    %c0_i32 = arith.constant 0 : i32
    %c0_i32_0 = arith.constant 0 : i32
    %c0_i32_1 = arith.constant 0 : i32
    return %c0_i32, %c0_i32_0 : i32, i32
  }
  func.func @transform_9(%arg0: i32) -> (i32, i32) {
    %c0_i32 = arith.constant 0 : i32
    %c0_i32_0 = arith.constant 0 : i32
    %c0_i32_1 = arith.constant 0 : i32
    return %c0_i32, %c0_i32_0 : i32, i32
  }
  func.func @transform_10(%arg0: i32) -> (i32, i32) {
    %c0_i32 = arith.constant 0 : i32
    %c0_i32_0 = arith.constant 0 : i32
    %c0_i32_1 = arith.constant 0 : i32
    return %c0_i32, %c0_i32_0 : i32, i32
  }
  func.func @transform_11(%arg0: i32) -> (i32, i32) {
    %c0_i32 = arith.constant 0 : i32
    %c0_i32_0 = arith.constant 0 : i32
    %c0_i32_1 = arith.constant 0 : i32
    return %c0_i32, %c0_i32_0 : i32, i32
  }
  func.func @transform_12(%arg0: i32) -> (i32, i32) {
    %c0_i32 = arith.constant 0 : i32
    %c0_i32_0 = arith.constant 0 : i32
    %c0_i32_1 = arith.constant 0 : i32
    return %c0_i32, %c0_i32_0 : i32, i32
  }
  func.func @transform_13(%arg0: i32) -> (i32, i32) {
    %c0_i32 = arith.constant 0 : i32
    %c0_i32_0 = arith.constant 0 : i32
    return %arg0, %c0_i32 : i32, i32
  }
}

</mosaic_0001>

<bundles_post_ra>
// kernel: tpu_custom_call.1
= control target key start
LH: loop header
LB: loop body
LE: loop exit
PB: predicated region body
PF: predicated region fallthrough
CT: control target
= control target key end

     0   :  { %18 = vsyncpa [#allocation3], 0  ;;  %s3022_s0 = inlined_call_operand.vmem [shape: f32[64,8], index: 0, kind: input, shape index: {}]   ;;  %s3023_s1 = inlined_call_operand.vmem [shape: f32[8,128], index: 1, kind: input, shape index: {}]   ;;  %s3024_s2 = inlined_call_operand.vmem [shape: f32[1,128], index: 2, kind: input, shape index: {}]   ;;  %s3025_s3 = inlined_call_operand.hbm [shape: f32[128,512], index: 3, kind: input, shape index: {}]   ;;  %s3026_s4 = inlined_call_operand.vmem [shape: f32[1,512], index: 4, kind: input, shape index: {}]   ;;  %s3027_s5 = inlined_call_operand.hbm [shape: f32[512,512], index: 5, kind: input, shape index: {}]   ;;  %s3028_s6 = inlined_call_operand.vmem [shape: f32[1,512], index: 6, kind: input, shape index: {}]   ;;  %s3029_s7 = inlined_call_operand.hbm [shape: f32[512,256], index: 7, kind: input, shape index: {}]   ;;  %s3030_s8 = inlined_call_operand.vmem [shape: f32[1,256], index: 8, kind: input, shape index: {}]   ;;  %s3031_s9 = inlined_call_operand.hbm [shape: f32[256,128], index: 9, kind: input, shape index: {}]   ;;  %s3032_s10 = inlined_call_operand.vmem [shape: f32[1,128], index: 10, kind: input, shape index: {}]   ;;  %s3033_s11 = inlined_call_operand.vmem [shape: f32[128,8], index: 11, kind: input, shape index: {}]   ;;  %s3034_s12 = inlined_call_operand.vmem [shape: f32[1,8], index: 12, kind: input, shape index: {}]   ;;  %s3035_s13 = inlined_call_operand.vmem [shape: f32[64,8], index: 13, kind: output, shape index: {}]  }
   0x1   :  { %19 = vsyncpa [#allocation5], 0 }
   0x2   :  { %20 = vsyncpa [#allocation8], 0  ;;  %s2708_s25 = smov 0  }
   0x3 LB: > { %s2282_s26 = sadd.s32 4294967295, %s2625_s25   ;;  %p2284_p0 = scmp.ge.s32.totalorder %s2625_s25, 1  ;;  %s2625_s25 = sphi %s2708_s25, %s26_s25  }
   0x4   : > { %p335_p1 = scmp.lt.s32.totalorder %s2625_s25, 3  ;;  %p2718_p2 = scmp.eq.s32.totalorder %s2282_s26, 0 }
   0x5   : > { %s2627_s29 = smov [#allocation4]   ;;  %s2628_s14 = smov [#allocation2]  }
   0x6   : > { %p2722_p3 = pnand %p2284_p0, %p335_p1  ;;  %s369_s30 = sshll.u32 %s2627_s29, 4  ;;  %s370_s30 = int_to_ptr.vmem [resolvable:$true] %s369_s30 }
   0x7   : > { %s353_s15 = sshll.u32 %s2628_s14, 4  ;;  %s2629_s17 = smov [#allocation6]   ;;  %s2728_s15 = int_to_ptr.vmem [resolvable:$true] %s353_s15 }
   0x8   : > { %p2439_p4 = pneg %p2722_p3  ;;  %s385_s18 = sshll.u32 %s2629_s17, 4  ;;  %s2736_s18 = int_to_ptr.vmem [resolvable:$true] %s385_s18 }
   0x9   : > { %s2514_s19 = scalar_lea.vmem %s370_s30, 32768  ;;  %p2522_p10 = scmp.lt.s32.totalorder %s370_s30, %s370_s30 }
   0xa   : > { %p2732_p5 = pnand %p2718_p2, %p2439_p4  ;;  %p2515_p7 = scmp.ne.s32.totalorder %s370_s30, %s2514_s19 }
   0xb   : > { %p2523_p11 = scmp.lt.s32.totalorder %s2514_s19, %s2514_s19 }
   0xc   : > { %p2505_p6 = pneg %p2732_p5 }
   0xd   : > { %p2524_p12 = por %p2523_p11, %p2522_p10 }
   0xe   : > { %p2517_p8 = pnand %p2515_p7, %p2505_p6 }
  0x10   : > { %p2518_p9 = pneg %p2517_p8 }
  0x12   : > { %p2525_p13 = pnand %p2524_p12, %p2518_p9 }
  0x14   : > { %2528 = shalt.err (!%p2525_p13)
}
  0x15   : > { %s2630_s20 = smov 512   ;;  %s2631_s21 = smov 32  }
  0x16   : > { %2445 = dma.hbm_to_vmem [thread:$0]  (!%p2732_p5), %s3027_s5, 32768, %s370_s30, [#allocation5], %s2630_s20, %s2630_s20, %s2631_s21  }
  0x17   : > { %s2540_s24 = scalar_lea.vmem %s2728_s15, 8192  ;;  %p2548_p7 = scmp.lt.s32.totalorder %s2728_s15, %s2728_s15 }
  0x18   : > { %p2541_p0 = scmp.ne.s32.totalorder %s2728_s15, %s2540_s24  ;;  %p2549_p8 = scmp.lt.s32.totalorder %s2540_s24, %s2540_s24 }
  0x1a   : > { %p2543_p1 = pnand %p2541_p0, %p2505_p6  ;;  %p2550_p9 = por %p2549_p8, %p2548_p7 }
  0x1c   : > { %p2544_p4 = pneg %p2543_p1 }
  0x1e   : > { %p2551_p10 = pnand %p2550_p9, %p2544_p4 }
  0x20   : > { %2554 = shalt.err (!%p2551_p10)
}
  0x21   : > { %2442 = dma.hbm_to_vmem [thread:$0]  (!%p2732_p5), %s3025_s3, 8192, %s2728_s15, [#allocation3], %s2630_s20, %s2630_s20, %s2631_s21  }
  0x22   : > { %s2566_s30 = scalar_lea.vmem %s2736_s18, 16384  ;;  %p2574_p0 = scmp.lt.s32.totalorder %s2736_s18, %s2736_s18 }
  0x23   : > { %p2567_p11 = scmp.ne.s32.totalorder %s2736_s18, %s2566_s30  ;;  %p2575_p1 = scmp.lt.s32.totalorder %s2566_s30, %s2566_s30 }
  0x25   : > { %p2569_p12 = pnand %p2567_p11, %p2505_p6  ;;  %p2576_p4 = por %p2575_p1, %p2574_p0 }
  0x27   : > { %p2570_p13 = pneg %p2569_p12 }
  0x29   : > { %p2577_p7 = pnand %p2576_p4, %p2570_p13 }
  0x2b   : > { %2580 = shalt.err (!%p2577_p7)
}
  0x2c   : > { %s2632_s17 = smov 256   ;;  %s2633_s19 = smov 16  }
  0x2d   : > { %2448 = dma.hbm_to_vmem [thread:$0]  (!%p2732_p5), %s3029_s7, 16384, %s2736_s18, [#allocation5], %s2632_s17, %s2632_s17, %s2633_s19  }
  0x2e   : > { %s2634_s20 = smov [#allocation7]  }
  0x2f   : > { %s401_s21 = sshll.u32 %s2634_s20, 4  ;;  %s402_s21 = int_to_ptr.vmem [resolvable:$true] %s401_s21 }
  0x30   : > { %s2592_s23 = scalar_lea.vmem %s402_s21, 4096  ;;  %p2600_p11 = scmp.lt.s32.totalorder %s402_s21, %s402_s21 }
  0x31   : > { %p2593_p8 = scmp.ne.s32.totalorder %s402_s21, %s2592_s23  ;;  %p2601_p12 = scmp.lt.s32.totalorder %s2592_s23, %s2592_s23 }
  0x33   : > { %p2595_p9 = pnand %p2593_p8, %p2505_p6  ;;  %p2602_p13 = por %p2601_p12, %p2600_p11 }
  0x35   : > { %p2596_p10 = pneg %p2595_p9 }
  0x37   : > { %p2603_p0 = pnand %p2602_p13, %p2596_p10 }
  0x39   : > { %2606 = shalt.err (!%p2603_p0)
}
  0x3a   : > { %s2635_s24 = smov 128   ;;  %s2636_s29 = smov 8  }
  0x3b   : > { %2451 = dma.hbm_to_vmem [thread:$0]  (!%p2732_p5), %s3031_s9, 4096, %s402_s21, [#allocation8], %s2635_s24, %s2635_s24, %s2636_s29  }
  0x3c   : > { %435 = sbr.rel (%p2722_p3) target bundleno = 1388 (0x56c), region = 72 }
  0x41   : > { %2612 = dma.done.wait (%p2718_p2), [#allocation3], 8192  }
  0x42   : > { %2614 = vsyncadd (%p2718_p2), [#allocation3], 4294959104 }
  0x43   : > { %2616 = dma.done.wait (%p2718_p2), [#allocation5], 49152  }
  0x44   : > { %2618 = vsyncadd (%p2718_p2), [#allocation5], 4294918144 }
  0x45   : > { %2620 = dma.done.wait (%p2718_p2), [#allocation8], 4096  }
  0x46   : > { %2622 = vsyncadd (%p2718_p2), [#allocation8], 4294963200  ;;  %s2295_s28 = sshll.u32 %s2282_s26, 2  ;;  %vm515_vm0 = vcmask 64512   ;;  %v507_v0 = vld [vmem:[%s3023_s1] sm:$0xff]  ;;  %v678_v4 = vld [vmem:[#allocation2 + $0x1e8] sm:$0xff] }
  0x47   : > { %p492_p3 = scmp.lt.s32.totalorder %s2295_s28, 7  ;;  %2377 = vmatprep.subr.mxu0 %v507_v0  ;;  %703 = vmatprep.subr.mxu1 %v678_v4  ;;  %v680_v5 = vld [vmem:[#allocation2 + $0x1f8] sm:$0xff]  ;;  %v677_v6 = vld [vmem:[#allocation2 + $0x1e0] sm:$0xff]  ;;  %v679_v7 = vld [vmem:[#allocation2 + $0x1f0] sm:$0xff] }
  0x48   : > { %2378 = vmatpush3.msra.mxu0 %v507_v0  ;;  %v674_v8 = vld [vmem:[#allocation2 + $0x1c8] sm:$0xff]  ;;  %v676_v9 = vld [vmem:[#allocation2 + $0x1d8] sm:$0xff]  ;;  %v673_v10 = vld [vmem:[#allocation2 + $0x1c0] sm:$0xff]  ;;  %704 = vmatpush1.msra.mxu1 %v677_v6 }
  0x49   : > { %s3040_s28 = smov (!%p492_p3, %s2295_s28), 7  ;;  %792 = vmatprep.subr.mxu0 %v680_v5  ;;  %v670_v12 = vld [vmem:[#allocation2 + $0x1a8] sm:$0xff]  ;;  %705 = vmatprep.subr.mxu1 %v674_v8  ;;  %v675_v13 = vld [vmem:[#allocation2 + $0x1d0] sm:$0xff]  ;;  %v669_v14 = vld [vmem:[#allocation2 + $0x1a0] sm:$0xff]  ;;  %v2637_v5 = vmov 0.0  }
  0x4a   : > { %s2296_s16 = sshll.u32 %s3040_s28, 3  ;;  %706 = vmatpush1.msra.mxu1 %v673_v10  ;;  %v672_v15 = vld [vmem:[#allocation2 + $0x1b8] sm:$0xff]  ;;  %v666_v16 = vld [vmem:[#allocation2 + $0x188] sm:$0xff]  ;;  %v671_v17 = vld [vmem:[#allocation2 + $0x1b0] sm:$0xff]  ;;  %767 = vmatprep.mubr.f32.mxu1 %v2637_v5 }
  0x4b   : > { %s495_s19 = scalar_lea.vmem %s3022_s0, %s2296_s16  ;;  %707 = vmatprep.subr.mxu1 %v670_v12  ;;  %v665_v18 = vld [vmem:[#allocation2 + $0x180] sm:$0xff]  ;;  %v668_v19 = vld [vmem:[#allocation2 + $0x198] sm:$0xff]  ;;  %v662_v20 = vld [vmem:[#allocation2 + $0x168] sm:$0xff]  ;;  %s501_s23 = scalar_lea.vmem %s3035_s13, %s2296_s16 }
  0x4c   : > { %v503_v1 = vld [vmem:[%s495_s19] sm:$0xff]  ;;  %v504_v2 = vld [vmem:[%s495_s19 + $0x8] sm:$0xff]  ;;  %v505_v3 = vld [vmem:[%s495_s19 + $0x10] sm:$0xff]  ;;  %708 = vmatpush1.msra.mxu1 %v669_v14 }
  0x4d   : > { %2379 = vmatprep.mubr.msk.f32.mxu0 %vm515_vm0, %v503_v1  ;;  %v506_v11 = vld [vmem:[%s495_s19 + $0x18] sm:$0xff]  ;;  %709 = vmatprep.subr.mxu1 %v666_v16  ;;  %v667_v21 = vld [vmem:[#allocation2 + $0x190] sm:$0xff]  ;;  %v661_v22 = vld [vmem:[#allocation2 + $0x160] sm:$0xff] }
  0x4e   : > { %2380 = vmatmul.mubr.msk.f32.vlgmr.msra.gmra.mxu0 %vm515_vm0, %v504_v2  ;;  %710 = vmatpush1.msra.mxu1 %v665_v18  ;;  %v664_v23 = vld [vmem:[#allocation2 + $0x178] sm:$0xff]  ;;  %v658_v24 = vld [vmem:[#allocation2 + $0x148] sm:$0xff]  ;;  %v663_v25 = vld [vmem:[#allocation2 + $0x170] sm:$0xff] }
  0x4f   : > { %2382 = vmatprep.mubr.msk.f32.mxu0 %vm515_vm0, %v505_v3  ;;  %793 = vmatpush1.msra.mxu0 %v679_v7  ;;  %v657_v26 = vld [vmem:[#allocation2 + $0x140] sm:$0xff]  ;;  %v660_v27 = vld [vmem:[#allocation2 + $0x158] sm:$0xff]  ;;  %v654_v28 = vld [vmem:[#allocation2 + $0x128] sm:$0xff] }
  0x50   : > { %794 = vmatprep.subr.mxu0 %v676_v9  ;;  %711 = vmatprep.subr.mxu1 %v662_v20  ;;  %v659_v29 = vld [vmem:[#allocation2 + $0x150] sm:$0xff]  ;;  %v656_v30 = vld [vmem:[#allocation2 + $0x138] sm:$0xff]  ;;  %v653_v31 = vld [vmem:[#allocation2 + $0x120] sm:$0xff] }
  0x51   : > { %795 = vmatpush1.msra.mxu0 %v675_v13  ;;  %712 = vmatpush1.msra.mxu1 %v661_v22  ;;  %v655_v32 = vld [vmem:[#allocation2 + $0x130] sm:$0xff]  ;;  %v650_v33 = vld [vmem:[#allocation2 + $0x108] sm:$0xff]  ;;  %v652_v34 = vld [vmem:[#allocation2 + $0x118] sm:$0xff] }
  0x52   : > { %2383 = vmatmul.mubr.msk.f32.gmra.mxu0 %vm515_vm0, %v506_v11  ;;  %796 = vmatprep.subr.mxu0 %v672_v15  ;;  %v649_v35 = vld [vmem:[#allocation2 + $0x100] sm:$0xff]  ;;  %v651_v36 = vld [vmem:[#allocation2 + $0x110] sm:$0xff]  ;;  %v646_v37 = vld [vmem:[#allocation2 + $0xe8] sm:$0xff] }
  0x53   : > { %797 = vmatpush1.msra.mxu0 %v671_v17  ;;  %713 = vmatprep.subr.mxu1 %v658_v24  ;;  %v648_v38 = vld [vmem:[#allocation2 + $0xf8] sm:$0xff]  ;;  %v645_v39 = vld [vmem:[#allocation2 + $0xe0] sm:$0xff]  ;;  %v647_v40 = vld [vmem:[#allocation2 + $0xf0] sm:$0xff] }
  0x54   : > { %798 = vmatprep.subr.mxu0 %v668_v19  ;;  %714 = vmatpush1.msra.mxu1 %v657_v26  ;;  %v642_v41 = vld [vmem:[#allocation2 + $0xc8] sm:$0xff]  ;;  %v644_v42 = vld [vmem:[#allocation2 + $0xd8] sm:$0xff]  ;;  %v641_v43 = vld [vmem:[#allocation2 + $0xc0] sm:$0xff] }
  0x55   : > { %799 = vmatpush1.msra.mxu0 %v667_v21  ;;  %715 = vmatprep.subr.mxu1 %v654_v28  ;;  %v643_v44 = vld [vmem:[#allocation2 + $0xd0] sm:$0xff]  ;;  %v638_v45 = vld [vmem:[#allocation2 + $0xa8] sm:$0xff]  ;;  %v640_v46 = vld [vmem:[#allocation2 + $0xb8] sm:$0xff] }
  0x56   : > { %800 = vmatprep.subr.mxu0 %v664_v23  ;;  %716 = vmatpush1.msra.mxu1 %v653_v31  ;;  %v637_v47 = vld [vmem:[#allocation2 + $0xa0] sm:$0xff]  ;;  %v639_v48 = vld [vmem:[#allocation2 + $0xb0] sm:$0xff]  ;;  %v634_v49 = vld [vmem:[#allocation2 + $0x88] sm:$0xff] }
  0x57   : > { %801 = vmatpush1.msra.mxu0 %v663_v25  ;;  %717 = vmatprep.subr.mxu1 %v650_v33  ;;  %v636_v50 = vld [vmem:[#allocation2 + $0x98] sm:$0xff]  ;;  %v633_v51 = vld [vmem:[#allocation2 + $0x80] sm:$0xff]  ;;  %v635_v52 = vld [vmem:[#allocation2 + $0x90] sm:$0xff] }
  0x58   : > { %802 = vmatprep.subr.mxu0 %v660_v27  ;;  %718 = vmatpush1.msra.mxu1 %v649_v35  ;;  %v630_v53 = vld [vmem:[#allocation2 + $0x68] sm:$0xff]  ;;  %v632_v54 = vld [vmem:[#allocation2 + $0x78] sm:$0xff]  ;;  %v629_v55 = vld [vmem:[#allocation2 + $0x60] sm:$0xff] }
  0x59   : > { %803 = vmatpush1.msra.mxu0 %v659_v29  ;;  %719 = vmatprep.subr.mxu1 %v646_v37  ;;  %v631_v56 = vld [vmem:[#allocation2 + $0x70] sm:$0xff]  ;;  %v626_v57 = vld [vmem:[#allocation2 + $0x48] sm:$0xff]  ;;  %v628_v58 = vld [vmem:[#allocation2 + $0x58] sm:$0xff] }
  0x5a   : > { %804 = vmatprep.subr.mxu0 %v656_v30  ;;  %720 = vmatpush1.msra.mxu1 %v645_v39  ;;  %v625_v59 = vld [vmem:[#allocation2 + $0x40] sm:$0xff]  ;;  %v627_v60 = vld [vmem:[#allocation2 + $0x50] sm:$0xff]  ;;  %v622_v61 = vld [vmem:[#allocation2 + $0x28] sm:$0xff] }
  0x5b   : > { %805 = vmatpush1.msra.mxu0 %v655_v32  ;;  %721 = vmatprep.subr.mxu1 %v642_v41  ;;  %v624_v62 = vld [vmem:[#allocation2 + $0x38] sm:$0xff]  ;;  %v621_v63 = vld [vmem:[#allocation2 + $0x20] sm:$0xff]  ;;  %v623_v0 = vld [vmem:[#allocation2 + $0x30] sm:$0xff] }
  0x5c   : > { %806 = vmatprep.subr.mxu0 %v652_v34  ;;  %722 = vmatpush1.msra.mxu1 %v641_v43  ;;  %v618_v1 = vld [vmem:[#allocation2 + $0x8] sm:$0xff]  ;;  %v620_v2 = vld [vmem:[#allocation2 + $0x18] sm:$0xff]  ;;  %v617_v3 = vld [vmem:[#allocation2] sm:$0xff] }
  0x5d   : > { %807 = vmatpush1.msra.mxu0 %v651_v36  ;;  %723 = vmatprep.subr.mxu1 %v638_v45  ;;  %v619_v4 = vld [vmem:[#allocation2 + $0x10] sm:$0xff]  ;;  %v990_v6 = vld [vmem:[#allocation4 + $0x1e8] sm:$0xff]  ;;  %v2299_v9 = vld [vmem:[%s3024_s2] ss:$0 sm:$0xff] }
  0x5e   : > { %808 = vmatprep.subr.mxu0 %v648_v38  ;;  %724 = vmatpush1.msra.mxu1 %v637_v47  ;;  %v1118_v7 = vld [vmem:[#allocation4 + $0x5e8] sm:$0xff]  ;;  %v989_v18 = vld [vmem:[#allocation4 + $0x1e0] sm:$0xff] }
  0x5f   : > { %809 = vmatpush1.msra.mxu0 %v647_v40  ;;  %725 = vmatprep.subr.mxu1 %v634_v49  ;;  %v1117_v19 = vld [vmem:[#allocation4 + $0x5e0] sm:$0xff]  ;;  %v986_v20 = vld [vmem:[#allocation4 + $0x1c8] sm:$0xff] }
  0x60   : > { %810 = vmatprep.subr.mxu0 %v644_v42  ;;  %726 = vmatpush1.msra.mxu1 %v633_v51  ;;  %v1114_v21 = vld [vmem:[#allocation4 + $0x5c8] sm:$0xff]  ;;  %v985_v23 = vld [vmem:[#allocation4 + $0x1c0] sm:$0xff] }
  0x61   : > { %811 = vmatpush1.msra.mxu0 %v643_v44  ;;  %727 = vmatprep.subr.mxu1 %v630_v53  ;;  %v1113_v24 = vld [vmem:[#allocation4 + $0x5c0] sm:$0xff]  ;;  %v982_v25 = vld [vmem:[#allocation4 + $0x1a8] sm:$0xff] }
  0x62   : > { %812 = vmatprep.subr.mxu0 %v640_v46  ;;  %728 = vmatpush1.msra.mxu1 %v629_v55  ;;  %v1110_v26 = vld [vmem:[#allocation4 + $0x5a8] sm:$0xff]  ;;  %v981_v28 = vld [vmem:[#allocation4 + $0x1a0] sm:$0xff] }
  0x63   : > { %813 = vmatpush1.msra.mxu0 %v639_v48  ;;  %729 = vmatprep.subr.mxu1 %v626_v57  ;;  %v1109_v29 = vld [vmem:[#allocation4 + $0x5a0] sm:$0xff]  ;;  %v978_v30 = vld [vmem:[#allocation4 + $0x188] sm:$0xff] }
  0x64   : > { %814 = vmatprep.subr.mxu0 %v636_v50  ;;  %730 = vmatpush1.msra.mxu1 %v625_v59  ;;  %v1106_v31 = vld [vmem:[#allocation4 + $0x588] sm:$0xff]  ;;  %v977_v33 = vld [vmem:[#allocation4 + $0x180] sm:$0xff] }
  0x65   : > { %815 = vmatpush1.msra.mxu0 %v635_v52  ;;  %731 = vmatprep.subr.mxu1 %v622_v61  ;;  %v1105_v34 = vld [vmem:[#allocation4 + $0x580] sm:$0xff]  ;;  %v974_v35 = vld [vmem:[#allocation4 + $0x168] sm:$0xff] }
  0x66   : > { %816 = vmatprep.subr.mxu0 %v632_v54  ;;  %732 = vmatpush1.msra.mxu1 %v621_v63  ;;  %v1102_v36 = vld [vmem:[#allocation4 + $0x568] sm:$0xff]  ;;  %v973_v37 = vld [vmem:[#allocation4 + $0x160] sm:$0xff] }
  0x67   : > { %817 = vmatpush1.msra.mxu0 %v631_v56  ;;  %733 = vmatprep.subr.mxu1 %v618_v1  ;;  %v1101_v38 = vld [vmem:[#allocation4 + $0x560] sm:$0xff]  ;;  %v970_v39 = vld [vmem:[#allocation4 + $0x148] sm:$0xff] }
  0x68   : > { %818 = vmatprep.subr.mxu0 %v628_v58  ;;  %734 = vmatpush1.msra.mxu1 %v617_v3  ;;  %v1098_v40 = vld [vmem:[#allocation4 + $0x548] sm:$0xff]  ;;  %v969_v41 = vld [vmem:[#allocation4 + $0x140] sm:$0xff] }
  0x69   : > { %819 = vmatpush1.msra.mxu0 %v627_v60  ;;  %856 = vmatprep.mubr.f32.mxu0 %v2637_v5  ;;  %v1097_v42 = vld [vmem:[#allocation4 + $0x540] sm:$0xff]  ;;  %v966_v43 = vld [vmem:[#allocation4 + $0x128] sm:$0xff] }
  0x6a   : > { %820 = vmatprep.subr.mxu0 %v624_v62  ;;  %1207 = vmatprep.subr.mxu1 %v990_v6  ;;  %v1094_v44 = vld [vmem:[#allocation4 + $0x528] sm:$0xff]  ;;  %v965_v45 = vld [vmem:[#allocation4 + $0x120] sm:$0xff] }
  0x6b   : > { %821 = vmatpush1.msra.mxu0 %v623_v0  ;;  %v1093_v46 = vld [vmem:[#allocation4 + $0x520] sm:$0xff]  ;;  %v962_v47 = vld [vmem:[#allocation4 + $0x108] sm:$0xff] }
  0x6c   : > { %822 = vmatprep.subr.mxu0 %v620_v2  ;;  %v1090_v48 = vld [vmem:[#allocation4 + $0x508] sm:$0xff]  ;;  %v961_v49 = vld [vmem:[#allocation4 + $0x100] sm:$0xff] }
  0x6d   : > { %823 = vmatpush1.msra.mxu0 %v619_v4  ;;  %v1089_v50 = vld [vmem:[#allocation4 + $0x500] sm:$0xff]  ;;  %v958_v51 = vld [vmem:[#allocation4 + $0xe8] sm:$0xff] }
  0x6e   : > { %1296 = vmatprep.subr.mxu0 %v1118_v7  ;;  %v1086_v52 = vld [vmem:[#allocation4 + $0x4e8] sm:$0xff]  ;;  %v957_v53 = vld [vmem:[#allocation4 + $0xe0] sm:$0xff] }
  0x6f   : > { %v1085_v54 = vld [vmem:[#allocation4 + $0x4e0] sm:$0xff]  ;;  %v954_v55 = vld [vmem:[#allocation4 + $0xc8] sm:$0xff] }
  0x70   : > { %v1082_v56 = vld [vmem:[#allocation4 + $0x4c8] sm:$0xff]  ;;  %v953_v57 = vld [vmem:[#allocation4 + $0xc0] sm:$0xff] }
  0x71   : > { %v1081_v58 = vld [vmem:[#allocation4 + $0x4c0] sm:$0xff]  ;;  %v950_v59 = vld [vmem:[#allocation4 + $0xa8] sm:$0xff] }
  0x72   : > { %v1078_v60 = vld [vmem:[#allocation4 + $0x4a8] sm:$0xff]  ;;  %v949_v61 = vld [vmem:[#allocation4 + $0xa0] sm:$0xff] }
  0x73   : > { %v1077_v62 = vld [vmem:[#allocation4 + $0x4a0] sm:$0xff]  ;;  %v946_v63 = vld [vmem:[#allocation4 + $0x88] sm:$0xff] }
  0x74   : > { %v1074_v0 = vld [vmem:[#allocation4 + $0x488] sm:$0xff]  ;;  %v945_v1 = vld [vmem:[#allocation4 + $0x80] sm:$0xff] }
  0x75   : > { %v1073_v2 = vld [vmem:[#allocation4 + $0x480] sm:$0xff]  ;;  %v942_v3 = vld [vmem:[#allocation4 + $0x68] sm:$0xff] }
  0x76   : > { %v1070_v4 = vld [vmem:[#allocation4 + $0x468] sm:$0xff]  ;;  %v1069_v6 = vld [vmem:[#allocation4 + $0x460] sm:$0xff] }
  0x77   : > { %v938_v7 = vld [vmem:[#allocation4 + $0x48] sm:$0xff] }
 0x10e   : > { %v2381_v8 = vpop.f32.mrf.mxu0 }
 0x10f   : > { %v600_v13 = vadd.f32 %v2381_v8, %v2299_v9  ;;  %v1066_v8 = vld [vmem:[#allocation4 + $0x448] sm:$0xff] }
 0x110   : > { %v594_v10 = vpop.f32.mrf.mxu0 }
 0x111   : > { %v595_v11 = vadd.f32 %v2299_v9, %v594_v10  ;;  %v1065_v10 = vld [vmem:[#allocation4 + $0x440] sm:$0xff] }
 0x112   : > { %v2384_v12 = vpop.f32.mrf.mxu0 }
 0x113   : > { %2479 = vtanh.f32 %v595_v11  ;;  %v610_v16 = vadd.f32 %v2384_v12, %v2299_v9  ;;  %v934_v11 = vld [vmem:[#allocation4 + $0x28] sm:$0xff] }
 0x114   : > { %v604_v14 = vpop.f32.mrf.mxu0  ;;  %2481 = vtanh.f32 %v600_v13  ;;  %v1062_v12 = vld [vmem:[#allocation4 + $0x428] sm:$0xff]  ;;  %v933_v13 = vld [vmem:[#allocation4 + $0x20] sm:$0xff] }
 0x115   : > { %v605_v15 = vadd.f32 %v2299_v9, %v604_v14  ;;  %v937_v9 = vld [vmem:[#allocation4 + $0x40] sm:$0xff] }
 0x116   : > { %v1061_v14 = vld [vmem:[#allocation4 + $0x420] sm:$0xff] }
 0x117   : > { %2483 = vtanh.f32 %v605_v15  ;;  %v930_v15 = vld [vmem:[#allocation4 + $0x8] sm:$0xff] }
 0x118   : > { %2485 = vtanh.f32 %v610_v16  ;;  %v1058_v16 = vld [vmem:[#allocation4 + $0x408] sm:$0xff] }
 0x120   : > { %v2480_v17 = vpop.eup %2479 }
 0x121   : > { %768 = vmatmul.mubr.f32.vlgmr.msra.gmra.mxu1 %v2480_v17  ;;  %857 = vmatmul.mubr.f32.vlgmr.msra.gmra.mxu0 %v2480_v17  ;;  %v2482_v22 = vpop.eup %2481  ;;  %v929_v17 = vld [vmem:[#allocation4] sm:$0xff] }
 0x122   : > { %773 = vmatprep.mubr.f32.mxu1 %v2637_v5  ;;  %862 = vmatprep.mubr.f32.mxu0 %v2637_v5 }
 0x123   : > { %1208 = vmatpush1.msra.mxu1 %v989_v18  ;;  %1297 = vmatpush1.msra.mxu0 %v1117_v19  ;;  %v1057_v18 = vld [vmem:[#allocation4 + $0x400] sm:$0xff]  ;;  %v1054_v19 = vld [vmem:[#allocation4 + $0x3e8] sm:$0xff] }
 0x124   : > { %1209 = vmatprep.subr.mxu1 %v986_v20  ;;  %1298 = vmatprep.subr.mxu0 %v1114_v21  ;;  %v2484_v27 = vpop.eup %2483  ;;  %v1182_v20 = vld [vmem:[#allocation4 + $0x7e8] sm:$0xff]  ;;  %v1053_v21 = vld [vmem:[#allocation4 + $0x3e0] sm:$0xff] }
 0x125   : > { %774 = vmatmul.mubr.f32.gmra.mxu1 %v2482_v22  ;;  %863 = vmatmul.mubr.f32.gmra.mxu0 %v2482_v22  ;;  %v2486_v32 = vpop.eup %2485  ;;  %v1181_v22 = vld [vmem:[#allocation4 + $0x7e0] sm:$0xff] }
 0x126   : > { %779 = vmatprep.mubr.f32.mxu1 %v2637_v5  ;;  %868 = vmatprep.mubr.f32.mxu0 %v2637_v5 }
 0x127   : > { %1210 = vmatpush1.msra.mxu1 %v985_v23  ;;  %1299 = vmatpush1.msra.mxu0 %v1113_v24  ;;  %v1050_v23 = vld [vmem:[#allocation4 + $0x3c8] sm:$0xff] }
 0x128   : > { %1211 = vmatprep.subr.mxu1 %v982_v25  ;;  %1300 = vmatprep.subr.mxu0 %v1110_v26  ;;  %v1178_v24 = vld [vmem:[#allocation4 + $0x7c8] sm:$0xff]  ;;  %v1049_v25 = vld [vmem:[#allocation4 + $0x3c0] sm:$0xff] }
 0x129   : > { %780 = vmatmul.mubr.f32.gmra.mxu1 %v2484_v27  ;;  %869 = vmatmul.mubr.f32.gmra.mxu0 %v2484_v27  ;;  %v1177_v26 = vld [vmem:[#allocation4 + $0x7c0] sm:$0xff]  ;;  %v1046_v27 = vld [vmem:[#allocation4 + $0x3a8] sm:$0xff] }
 0x12a   : > { %785 = vmatprep.mubr.f32.mxu1 %v2637_v5  ;;  %874 = vmatprep.mubr.f32.mxu0 %v2637_v5  ;;  %v941_v5 = vld [vmem:[#allocation4 + $0x60] sm:$0xff] }
 0x12b   : > { %1212 = vmatpush1.msra.mxu1 %v981_v28  ;;  %1301 = vmatpush1.msra.mxu0 %v1109_v29  ;;  %v1174_v28 = vld [vmem:[#allocation4 + $0x7a8] sm:$0xff]  ;;  %v1045_v29 = vld [vmem:[#allocation4 + $0x3a0] sm:$0xff] }
 0x12c   : > { %1213 = vmatprep.subr.mxu1 %v978_v30  ;;  %1302 = vmatprep.subr.mxu0 %v1106_v31  ;;  %v1173_v30 = vld [vmem:[#allocation4 + $0x7a0] sm:$0xff]  ;;  %v1042_v31 = vld [vmem:[#allocation4 + $0x388] sm:$0xff] }
 0x12d   : > { %786 = vmatmul.mubr.f32.gmra.mxu1 %v2486_v32  ;;  %875 = vmatmul.mubr.f32.gmra.mxu0 %v2486_v32  ;;  %v1170_v32 = vld [vmem:[#allocation4 + $0x788] sm:$0xff] }
 0x12e   : > { %1214 = vmatpush1.msra.mxu1 %v977_v33  ;;  %1303 = vmatpush1.msra.mxu0 %v1105_v34  ;;  %v1041_v33 = vld [vmem:[#allocation4 + $0x380] sm:$0xff] }
 0x12f   : > { %1215 = vmatprep.subr.mxu1 %v974_v35  ;;  %1304 = vmatprep.subr.mxu0 %v1102_v36  ;;  %v1169_v34 = vld [vmem:[#allocation4 + $0x780] sm:$0xff]  ;;  %v1038_v35 = vld [vmem:[#allocation4 + $0x368] sm:$0xff] }
 0x130   : > { %1216 = vmatpush1.msra.mxu1 %v973_v37  ;;  %1305 = vmatpush1.msra.mxu0 %v1101_v38  ;;  %v1166_v36 = vld [vmem:[#allocation4 + $0x768] sm:$0xff]  ;;  %v1037_v37 = vld [vmem:[#allocation4 + $0x360] sm:$0xff] }
 0x131   : > { %1217 = vmatprep.subr.mxu1 %v970_v39  ;;  %1306 = vmatprep.subr.mxu0 %v1098_v40  ;;  %v1165_v38 = vld [vmem:[#allocation4 + $0x760] sm:$0xff]  ;;  %v1034_v39 = vld [vmem:[#allocation4 + $0x348] sm:$0xff] }
 0x132   : > { %1218 = vmatpush1.msra.mxu1 %v969_v41  ;;  %1307 = vmatpush1.msra.mxu0 %v1097_v42  ;;  %v1162_v40 = vld [vmem:[#allocation4 + $0x748] sm:$0xff]  ;;  %v1033_v41 = vld [vmem:[#allocation4 + $0x340] sm:$0xff] }
 0x133   : > { %1219 = vmatprep.subr.mxu1 %v966_v43  ;;  %1308 = vmatprep.subr.mxu0 %v1094_v44  ;;  %v1161_v42 = vld [vmem:[#allocation4 + $0x740] sm:$0xff]  ;;  %v1030_v43 = vld [vmem:[#allocation4 + $0x328] sm:$0xff] }
 0x134   : > { %1220 = vmatpush1.msra.mxu1 %v965_v45  ;;  %1309 = vmatpush1.msra.mxu0 %v1093_v46  ;;  %v1158_v44 = vld [vmem:[#allocation4 + $0x728] sm:$0xff]  ;;  %v1029_v45 = vld [vmem:[#allocation4 + $0x320] sm:$0xff] }
 0x135   : > { %1221 = vmatprep.subr.mxu1 %v962_v47  ;;  %1310 = vmatprep.subr.mxu0 %v1090_v48  ;;  %v1157_v46 = vld [vmem:[#allocation4 + $0x720] sm:$0xff]  ;;  %v1026_v47 = vld [vmem:[#allocation4 + $0x308] sm:$0xff] }
 0x136   : > { %1222 = vmatpush1.msra.mxu1 %v961_v49  ;;  %1311 = vmatpush1.msra.mxu0 %v1089_v50  ;;  %v1154_v48 = vld [vmem:[#allocation4 + $0x708] sm:$0xff]  ;;  %v1025_v49 = vld [vmem:[#allocation4 + $0x300] sm:$0xff] }
 0x137   : > { %1223 = vmatprep.subr.mxu1 %v958_v51  ;;  %1312 = vmatprep.subr.mxu0 %v1086_v52  ;;  %v1153_v50 = vld [vmem:[#allocation4 + $0x700] sm:$0xff]  ;;  %v1022_v51 = vld [vmem:[#allocation4 + $0x2e8] sm:$0xff] }
 0x138   : > { %1224 = vmatpush1.msra.mxu1 %v957_v53  ;;  %1313 = vmatpush1.msra.mxu0 %v1085_v54  ;;  %v1150_v52 = vld [vmem:[#allocation4 + $0x6e8] sm:$0xff]  ;;  %v1021_v53 = vld [vmem:[#allocation4 + $0x2e0] sm:$0xff] }
 0x139   : > { %1225 = vmatprep.subr.mxu1 %v954_v55  ;;  %1314 = vmatprep.subr.mxu0 %v1082_v56  ;;  %v1149_v54 = vld [vmem:[#allocation4 + $0x6e0] sm:$0xff]  ;;  %v1018_v55 = vld [vmem:[#allocation4 + $0x2c8] sm:$0xff] }
 0x13a   : > { %1226 = vmatpush1.msra.mxu1 %v953_v57  ;;  %1315 = vmatpush1.msra.mxu0 %v1081_v58  ;;  %v1146_v56 = vld [vmem:[#allocation4 + $0x6c8] sm:$0xff]  ;;  %v1017_v57 = vld [vmem:[#allocation4 + $0x2c0] sm:$0xff] }
 0x13b   : > { %1227 = vmatprep.subr.mxu1 %v950_v59  ;;  %1316 = vmatprep.subr.mxu0 %v1078_v60  ;;  %v1145_v58 = vld [vmem:[#allocation4 + $0x6c0] sm:$0xff]  ;;  %v1014_v59 = vld [vmem:[#allocation4 + $0x2a8] sm:$0xff] }
 0x13c   : > { %1228 = vmatpush1.msra.mxu1 %v949_v61  ;;  %1317 = vmatpush1.msra.mxu0 %v1077_v62  ;;  %v1142_v60 = vld [vmem:[#allocation4 + $0x6a8] sm:$0xff]  ;;  %v1013_v61 = vld [vmem:[#allocation4 + $0x2a0] sm:$0xff] }
 0x13d   : > { %1229 = vmatprep.subr.mxu1 %v946_v63  ;;  %1318 = vmatprep.subr.mxu0 %v1074_v0  ;;  %v1141_v62 = vld [vmem:[#allocation4 + $0x6a0] sm:$0xff]  ;;  %v1010_v63 = vld [vmem:[#allocation4 + $0x288] sm:$0xff] }
 0x13e   : > { %1230 = vmatpush1.msra.mxu1 %v945_v1  ;;  %1319 = vmatpush1.msra.mxu0 %v1073_v2  ;;  %v1138_v0 = vld [vmem:[#allocation4 + $0x688] sm:$0xff]  ;;  %v1009_v1 = vld [vmem:[#allocation4 + $0x280] sm:$0xff] }
 0x13f   : > { %1231 = vmatprep.subr.mxu1 %v942_v3  ;;  %1320 = vmatprep.subr.mxu0 %v1070_v4  ;;  %v1137_v2 = vld [vmem:[#allocation4 + $0x680] sm:$0xff]  ;;  %v1006_v3 = vld [vmem:[#allocation4 + $0x268] sm:$0xff] }
 0x140   : > { %1232 = vmatpush1.msra.mxu1 %v941_v5  ;;  %1321 = vmatpush1.msra.mxu0 %v1069_v6  ;;  %v1134_v4 = vld [vmem:[#allocation4 + $0x668] sm:$0xff]  ;;  %v1005_v5 = vld [vmem:[#allocation4 + $0x260] sm:$0xff] }
 0x141   : > { %1233 = vmatprep.subr.mxu1 %v938_v7  ;;  %1322 = vmatprep.subr.mxu0 %v1066_v8  ;;  %v1133_v6 = vld [vmem:[#allocation4 + $0x660] sm:$0xff]  ;;  %v1002_v7 = vld [vmem:[#allocation4 + $0x248] sm:$0xff] }
 0x142   : > { %1234 = vmatpush1.msra.mxu1 %v937_v9  ;;  %1323 = vmatpush1.msra.mxu0 %v1065_v10  ;;  %v1130_v8 = vld [vmem:[#allocation4 + $0x648] sm:$0xff]  ;;  %v1001_v9 = vld [vmem:[#allocation4 + $0x240] sm:$0xff] }
 0x143   : > { %1235 = vmatprep.subr.mxu1 %v934_v11  ;;  %1324 = vmatprep.subr.mxu0 %v1062_v12  ;;  %v1129_v10 = vld [vmem:[#allocation4 + $0x640] sm:$0xff]  ;;  %v998_v11 = vld [vmem:[#allocation4 + $0x228] sm:$0xff] }
 0x144   : > { %1236 = vmatpush1.msra.mxu1 %v933_v13  ;;  %1325 = vmatpush1.msra.mxu0 %v1061_v14  ;;  %v1126_v12 = vld [vmem:[#allocation4 + $0x628] sm:$0xff]  ;;  %v997_v13 = vld [vmem:[#allocation4 + $0x220] sm:$0xff] }
 0x145   : > { %1237 = vmatprep.subr.mxu1 %v930_v15  ;;  %1326 = vmatprep.subr.mxu0 %v1058_v16  ;;  %v1125_v14 = vld [vmem:[#allocation4 + $0x620] sm:$0xff]  ;;  %v994_v15 = vld [vmem:[#allocation4 + $0x208] sm:$0xff] }
 0x146   : > { %1238 = vmatpush1.msra.mxu1 %v929_v17  ;;  %1327 = vmatpush1.msra.mxu0 %v1057_v18  ;;  %v1122_v16 = vld [vmem:[#allocation4 + $0x608] sm:$0xff]  ;;  %v993_v17 = vld [vmem:[#allocation4 + $0x200] sm:$0xff] }
 0x147   : > { %1239 = vmatprep.subr.mxu1 %v1054_v19  ;;  %1328 = vmatprep.subr.mxu0 %v1182_v20  ;;  %v1121_v18 = vld [vmem:[#allocation4 + $0x600] sm:$0xff]  ;;  %v992_v19 = vld [vmem:[#allocation4 + $0x1f8] sm:$0xff] }
 0x148   : > { %1240 = vmatpush2.msra.mxu1 %v1053_v21  ;;  %1329 = vmatpush2.msra.mxu0 %v1181_v22  ;;  %v1120_v20 = vld [vmem:[#allocation4 + $0x5f8] sm:$0xff]  ;;  %v683_v21 = vlaneseq }
 0x149   : > { %1241 = vmatprep.subr.mxu1 %v1050_v23  ;;  %1330 = vmatprep.subr.mxu0 %v1178_v24 }
 0x14a   : > { %1242 = vmatpush2.msra.mxu1 %v1049_v25  ;;  %1331 = vmatpush2.msra.mxu0 %v1177_v26  ;;  %v2816_v22 = vshrl.u32 %v683_v21, 7  ;;  %v681_v25 = vld [vmem:[%s3026_s4] sm:$0xf]  ;;  %v1111_v21 = vld [vmem:[#allocation4 + $0x5b0] sm:$0xff] }
 0x14b   : > { %1243 = vmatprep.subr.mxu1 %v1046_v27  ;;  %1332 = vmatprep.subr.mxu0 %v1174_v28 }
 0x14c   : > { %1244 = vmatpush2.msra.mxu1 %v1045_v29  ;;  %1333 = vmatpush2.msra.mxu0 %v1173_v30  ;;  %v2819_v23 = vsub.s32 0, %v2816_v22  ;;  %v693_v24 = vsub.s32 2, %v2816_v22  ;;  %v2826_v26 = vsub.s32 1, %v2816_v22  ;;  %v697_v27 = vsub.s32 3, %v2816_v22 }
 0x14d   : > { %1245 = vmatprep.subr.mxu1 %v1042_v31  ;;  %1334 = vmatprep.subr.mxu0 %v1170_v32 }
 0x14e   : > { %1246 = vmatpush2.msra.mxu1 %v1041_v33  ;;  %1335 = vmatpush2.msra.mxu0 %v1169_v34  ;;  %v2830_v28 = vrot.slane %v681_v25, %v2819_v23  ;;  %v2834_v29 = vrot.slane %v681_v25, %v693_v24  ;;  %v2837_v32 = vrot.slane %v681_v25, %v2826_v26 }
 0x14f   : > { %1247 = vmatprep.subr.mxu1 %v1038_v35  ;;  %1336 = vmatprep.subr.mxu0 %v1166_v36  ;;  %v2841_v33 = vrot.slane %v681_v25, %v697_v27 }
 0x150   : > { %1248 = vmatpush2.msra.mxu1 %v1037_v37  ;;  %1337 = vmatpush2.msra.mxu0 %v1165_v38 }
 0x151   : > { %1249 = vmatprep.subr.mxu1 %v1034_v39  ;;  %1338 = vmatprep.subr.mxu0 %v1162_v40 }
 0x152   : > { %1250 = vmatpush2.msra.mxu1 %v1033_v41  ;;  %1339 = vmatpush2.msra.mxu0 %v1161_v42 }
 0x153   : > { %1251 = vmatprep.subr.mxu1 %v1030_v43  ;;  %1340 = vmatprep.subr.mxu0 %v1158_v44 }
 0x154   : > { %1252 = vmatpush2.msra.mxu1 %v1029_v45  ;;  %1341 = vmatpush2.msra.mxu0 %v1157_v46 }
 0x155   : > { %1253 = vmatprep.subr.mxu1 %v1026_v47  ;;  %1342 = vmatprep.subr.mxu0 %v1154_v48 }
 0x156   : > { %1254 = vmatpush2.msra.mxu1 %v1025_v49  ;;  %1343 = vmatpush2.msra.mxu0 %v1153_v50 }
 0x157   : > { %1255 = vmatprep.subr.mxu1 %v1022_v51  ;;  %1344 = vmatprep.subr.mxu0 %v1150_v52  ;;  %v991_v52 = vld [vmem:[#allocation4 + $0x1f0] sm:$0xff] }
 0x158   : > { %1256 = vmatpush2.msra.mxu1 %v1021_v53  ;;  %1345 = vmatpush2.msra.mxu0 %v1149_v54 }
 0x159   : > { %1257 = vmatprep.subr.mxu1 %v1018_v55  ;;  %1346 = vmatprep.subr.mxu0 %v1146_v56 }
 0x15a   : > { %1258 = vmatpush2.msra.mxu1 %v1017_v57  ;;  %1347 = vmatpush2.msra.mxu0 %v1145_v58 }
 0x15b   : > { %1259 = vmatprep.subr.mxu1 %v1014_v59  ;;  %1348 = vmatprep.subr.mxu0 %v1142_v60  ;;  %v1119_v59 = vld [vmem:[#allocation4 + $0x5f0] sm:$0xff]  ;;  %v988_v60 = vld [vmem:[#allocation4 + $0x1d8] sm:$0xff] }
 0x15c   : > { %1260 = vmatpush2.msra.mxu1 %v1013_v61  ;;  %1349 = vmatpush2.msra.mxu0 %v1141_v62  ;;  %v1116_v61 = vld [vmem:[#allocation4 + $0x5d8] sm:$0xff] }
 0x15d   : > { %1261 = vmatprep.subr.mxu1 %v1010_v63  ;;  %1350 = vmatprep.subr.mxu0 %v1138_v0 }
 0x15e   : > { %1262 = vmatpush2.msra.mxu1 %v1009_v1  ;;  %1351 = vmatpush2.msra.mxu0 %v1137_v2 }
 0x15f   : > { %1263 = vmatprep.subr.mxu1 %v1006_v3  ;;  %1352 = vmatprep.subr.mxu0 %v1134_v4 }
 0x160   : > { %1264 = vmatpush2.msra.mxu1 %v1005_v5  ;;  %1353 = vmatpush2.msra.mxu0 %v1133_v6  ;;  %v987_v5 = vld [vmem:[#allocation4 + $0x1d0] sm:$0xff] }
 0x161   : > { %1265 = vmatprep.subr.mxu1 %v1002_v7  ;;  %1354 = vmatprep.subr.mxu0 %v1130_v8  ;;  %v1115_v6 = vld [vmem:[#allocation4 + $0x5d0] sm:$0xff] }
 0x162   : > { %1266 = vmatpush2.msra.mxu1 %v1001_v9  ;;  %1355 = vmatpush2.msra.mxu0 %v1129_v10 }
 0x163   : > { %1267 = vmatprep.subr.mxu1 %v998_v11  ;;  %1356 = vmatprep.subr.mxu0 %v1126_v12 }
 0x164   : > { %1268 = vmatpush2.msra.mxu1 %v997_v13  ;;  %1357 = vmatpush2.msra.mxu0 %v1125_v14  ;;  %v984_v14 = vld [vmem:[#allocation4 + $0x1b8] sm:$0xff] }
 0x165   : > { %1269 = vmatprep.subr.mxu1 %v994_v15  ;;  %1358 = vmatprep.subr.mxu0 %v1122_v16  ;;  %v1112_v15 = vld [vmem:[#allocation4 + $0x5b8] sm:$0xff] }
 0x166   : > { %1270 = vmatpush2.msra.mxu1 %v993_v17  ;;  %1359 = vmatpush2.msra.mxu0 %v1121_v18 }
 0x167   : > { %1385 = vmatprep.subr.mxu1 %v992_v19  ;;  %1474 = vmatprep.subr.mxu0 %v1120_v20  ;;  %v983_v20 = vld [vmem:[#allocation4 + $0x1b0] sm:$0xff] }
 0x1e1   : > { %v769_v30 = vpop.f32.mrf.mxu1  ;;  %v858_v31 = vpop.f32.mrf.mxu0 }
 0x1e2   : > { %v770_v34 = vadd.f32 %v769_v30, %v2830_v28  ;;  %v859_v35 = vadd.f32 %v858_v31, %v2834_v29 }
 0x1e3   : > { %v771_v36 = vpop.f32.mrf.mxu1  ;;  %v860_v37 = vpop.f32.mrf.mxu0 }
 0x1e4   : > { %vm881_vm1 = vcmp.ge.f32.partialorder %v770_v34, 0.0  ;;  %v897_v38 = vmul.f32 0.01, %v770_v34  ;;  %v772_v39 = vadd.f32 %v771_v36, %v2837_v32  ;;  %v861_v40 = vadd.f32 %v860_v37, %v2841_v33  ;;  %v980_v37 = vld [vmem:[#allocation4 + $0x198] sm:$0xff] }
 0x1e5   : > { %v775_v41 = vpop.f32.mrf.mxu1  ;;  %v864_v42 = vpop.f32.mrf.mxu0  ;;  %vm883_vm2 = vcmp.ge.f32.partialorder %v859_v35, 0.0  ;;  %v899_v43 = vmul.f32 0.01, %v859_v35 }
 0x1e6   : > { %v776_v44 = vadd.f32 %v775_v41, %v2830_v28  ;;  %v865_v45 = vadd.f32 %v864_v42, %v2834_v29  ;;  %v898_v46 = vmul.f32 0.01, %v772_v39  ;;  %v900_v47 = vmul.f32 0.01, %v861_v40  ;;  %v1107_v41 = vld [vmem:[#allocation4 + $0x590] sm:$0xff] }
 0x1e7   : > { %v777_v48 = vpop.f32.mrf.mxu1  ;;  %v866_v49 = vpop.f32.mrf.mxu0  ;;  %vm882_vm3 = vcmp.ge.f32.partialorder %v772_v39, 0.0  ;;  %vm884_vm4 = vcmp.ge.f32.partialorder %v861_v40, 0.0  ;;  %v2852_v53 = vsel %vm881_vm1, %v770_v34, %v897_v38  ;;  %v2859_v62 = vsel %vm883_vm2, %v859_v35, %v899_v43  ;;  %v1108_v38 = vld [vmem:[#allocation4 + $0x598] sm:$0xff] }
 0x1e8   : > { %v778_v50 = vadd.f32 %v777_v48, %v2837_v32  ;;  %v867_v51 = vadd.f32 %v866_v49, %v2841_v33  ;;  %v901_v54 = vmul.f32 0.01, %v776_v44  ;;  %v2854_v57 = vsel %vm882_vm3, %v772_v39, %v898_v46  ;;  %v1104_v43 = vld [vmem:[#allocation4 + $0x578] sm:$0xff]  ;;  %v1103_v48 = vld [vmem:[#allocation4 + $0x570] sm:$0xff] }
 0x1e9   : > { %v781_v55 = vpop.f32.mrf.mxu1  ;;  %v870_v56 = vpop.f32.mrf.mxu0  ;;  %v2856_v58 = vsel %vm884_vm4, %v861_v40, %v900_v47  ;;  %v903_v63 = vmul.f32 0.01, %v865_v45  ;;  %1271 = vmatprep.mubr.f32.mxu1 %v2854_v57  ;;  %vm885_vm7 = vcmp.ge.f32.partialorder %v776_v44, 0.0  ;;  %vm887_vm8 = vcmp.ge.f32.partialorder %v865_v45, 0.0  ;;  %v979_v40 = vld [vmem:[#allocation4 + $0x190] sm:$0xff] }
 0x1ea   : > { %v902_v0 = vmul.f32 0.01, %v778_v50  ;;  %v904_v1 = vmul.f32 0.01, %v867_v51  ;;  %1360 = vmatprep.mubr.f32.mxu0 %v2856_v58  ;;  %v2864_v2 = vadd.f32 %v781_v55, %v2830_v28  ;;  %1272 = vmatmul.mubr.f32.vlgmr.msra.gmra.mxu1 %v2852_v53  ;;  %vm886_vm5 = vcmp.ge.f32.partialorder %v778_v50, 0.0  ;;  %v975_v47 = vld [vmem:[#allocation4 + $0x170] sm:$0xff] }
 0x1eb   : > { %1361 = vmatmul.mubr.f32.vlgmr.msra.gmra.mxu0 %v2859_v62  ;;  %v783_v3 = vpop.f32.mrf.mxu1  ;;  %v872_v4 = vpop.f32.mrf.mxu0  ;;  %vm888_vm6 = vcmp.ge.f32.partialorder %v867_v51, 0.0  ;;  %v871_v7 = vadd.f32 %v870_v56, %v2834_v29  ;;  %1386 = vmatpush1.msra.mxu1 %v991_v52  ;;  %v2878_v18 = vsel %vm885_vm7, %v776_v44, %v901_v54  ;;  %v2881_v19 = vsel %vm887_vm8, %v865_v45, %v903_v63  ;;  %v1100_v52 = vld [vmem:[#allocation4 + $0x558] sm:$0xff]  ;;  %v971_v54 = vld [vmem:[#allocation4 + $0x150] sm:$0xff] }
 0x1ec   : > { %1475 = vmatpush1.msra.mxu0 %v1119_v59  ;;  %v784_v8 = vadd.f32 %v783_v3, %v2837_v32  ;;  %v873_v9 = vadd.f32 %v872_v4, %v2841_v33  ;;  %1387 = vmatprep.subr.mxu1 %v988_v60  ;;  %v2871_v12 = vsel %vm886_vm5, %v778_v50, %v902_v0  ;;  %v905_v31 = vmul.f32 0.01, %v2864_v2  ;;  %v1099_v55 = vld [vmem:[#allocation4 + $0x550] sm:$0xff]  ;;  %v968_v60 = vld [vmem:[#allocation4 + $0x138] sm:$0xff] }
 0x1ed   : > { %1476 = vmatprep.subr.mxu0 %v1116_v61  ;;  %v787_v10 = vpop.f32.mrf.mxu1  ;;  %v876_v11 = vpop.f32.mrf.mxu0  ;;  %v2873_v13 = vsel %vm888_vm6, %v867_v51, %v904_v1  ;;  %1388 = vmatpush1.msra.mxu1 %v987_v5  ;;  %v907_v34 = vmul.f32 0.01, %v871_v7  ;;  %vm889_vm11 = vcmp.ge.f32.partialorder %v2864_v2, 0.0  ;;  %vm891_vm12 = vcmp.ge.f32.partialorder %v871_v7, 0.0  ;;  %v972_v51 = vld [vmem:[#allocation4 + $0x158] sm:$0xff]  ;;  %v967_v1 = vld [vmem:[#allocation4 + $0x130] sm:$0xff] }
 0x1ee   : > { %v906_v16 = vmul.f32 0.01, %v784_v8  ;;  %v908_v17 = vmul.f32 0.01, %v873_v9  ;;  %1477 = vmatpush1.msra.mxu0 %v1115_v6  ;;  %1277 = vmatprep.mubr.f32.mxu1 %v2871_v12  ;;  %vm890_vm9 = vcmp.ge.f32.partialorder %v784_v8, 0.0  ;;  %vm892_vm10 = vcmp.ge.f32.partialorder %v873_v9, 0.0 }
 0x1ef   : > { %1366 = vmatprep.mubr.f32.mxu0 %v2873_v13  ;;  %v789_v25 = vpop.f32.mrf.mxu1  ;;  %v878_v30 = vpop.f32.mrf.mxu0  ;;  %1389 = vmatprep.subr.mxu1 %v984_v14  ;;  %v788_v39 = vadd.f32 %v787_v10, %v2830_v28  ;;  %v877_v42 = vadd.f32 %v876_v11, %v2834_v29  ;;  %v976_v28 = vld [vmem:[#allocation4 + $0x178] sm:$0xff]  ;;  %v2898_v46 = vsel %vm889_vm11, %v2864_v2, %v905_v31  ;;  %v1095_v2 = vld [vmem:[#allocation4 + $0x530] sm:$0xff] }
 0x1f0   : > { %1478 = vmatprep.subr.mxu0 %v1112_v15  ;;  %v790_v35 = vadd.f32 %v789_v25, %v2837_v32  ;;  %v879_v36 = vadd.f32 %v878_v30, %v2841_v33  ;;  %1278 = vmatmul.mubr.f32.gmra.mxu1 %v2878_v18  ;;  %v2892_v32 = vsel %vm890_vm9, %v784_v8, %v906_v16  ;;  %v1096_v61 = vld [vmem:[#allocation4 + $0x538] sm:$0xff]  ;;  %v963_v5 = vld [vmem:[#allocation4 + $0x110] sm:$0xff] }
 0x1f1   : > { %1367 = vmatmul.mubr.f32.gmra.mxu0 %v2881_v19  ;;  %1390 = vmatpush1.msra.mxu1 %v983_v20  ;;  %v2895_v33 = vsel %vm892_vm10, %v873_v9, %v908_v17  ;;  %v2900_v29 = vsel %vm891_vm12, %v871_v7, %v907_v34  ;;  %v909_v49 = vmul.f32 0.01, %v788_v39  ;;  %v911_v50 = vmul.f32 0.01, %v877_v42  ;;  %v964_v3 = vld [vmem:[#allocation4 + $0x118] sm:$0xff]  ;;  %v1091_v6 = vld [vmem:[#allocation4 + $0x510] sm:$0xff] }
 0x1f2   : > { %1479 = vmatpush1.msra.mxu0 %v1111_v21  ;;  %1391 = vmatprep.subr.mxu1 %v980_v37  ;;  %v910_v44 = vmul.f32 0.01, %v790_v35  ;;  %v912_v45 = vmul.f32 0.01, %v879_v36  ;;  %vm894_vm13 = vcmp.ge.f32.partialorder %v790_v35, 0.0  ;;  %vm896_vm14 = vcmp.ge.f32.partialorder %v879_v36, 0.0 }
 0x1f3   : > { %1480 = vmatprep.subr.mxu0 %v1108_v38  ;;  %1392 = vmatpush1.msra.mxu1 %v979_v40  ;;  %vm893_vm15 = vcmp.ge.f32.partialorder %v788_v39, 0.0  ;;  %vm895_vm1 = vcmp.ge.f32.partialorder %v877_v42, 0.0  ;;  %v1092_v4 = vld [vmem:[#allocation4 + $0x518] sm:$0xff]  ;;  %v959_v9 = vld [vmem:[#allocation4 + $0xf0] sm:$0xff] }
 0x1f4   : > { %1481 = vmatpush1.msra.mxu0 %v1107_v41  ;;  %1283 = vmatprep.mubr.f32.mxu1 %v2892_v32  ;;  %v2907_v56 = vsel %vm894_vm13, %v790_v35, %v910_v44  ;;  %v2910_v59 = vsel %vm896_vm14, %v879_v36, %v912_v45  ;;  %v2912_v63 = vsel %vm893_vm15, %v788_v39, %v909_v49  ;;  %v960_v7 = vld [vmem:[#allocation4 + $0xf8] sm:$0xff]  ;;  %v1087_v10 = vld [vmem:[#allocation4 + $0x4f0] sm:$0xff] }
 0x1f5   : > { %1372 = vmatprep.mubr.f32.mxu0 %v2895_v33  ;;  %1393 = vmatprep.subr.mxu1 %v976_v28  ;;  %v2914_v0 = vsel %vm895_vm1, %v877_v42, %v911_v50  ;;  %v1088_v8 = vld [vmem:[#allocation4 + $0x4f8] sm:$0xff]  ;;  %v955_v15 = vld [vmem:[#allocation4 + $0xd0] sm:$0xff] }
 0x1f6   : > { %1482 = vmatprep.subr.mxu0 %v1104_v43  ;;  %1284 = vmatmul.mubr.f32.gmra.mxu1 %v2898_v46  ;;  %v956_v11 = vld [vmem:[#allocation4 + $0xd8] sm:$0xff]  ;;  %v1083_v16 = vld [vmem:[#allocation4 + $0x4d0] sm:$0xff] }
 0x1f7   : > { %1373 = vmatmul.mubr.f32.gmra.mxu0 %v2900_v29  ;;  %1394 = vmatpush1.msra.mxu1 %v975_v47  ;;  %v1084_v14 = vld [vmem:[#allocation4 + $0x4d8] sm:$0xff]  ;;  %v1079_v21 = vld [vmem:[#allocation4 + $0x4b0] sm:$0xff] }
 0x1f8   : > { %1483 = vmatpush1.msra.mxu0 %v1103_v48  ;;  %1395 = vmatprep.subr.mxu1 %v972_v51  ;;  %v952_v17 = vld [vmem:[#allocation4 + $0xb8] sm:$0xff]  ;;  %v947_v30 = vld [vmem:[#allocation4 + $0x90] sm:$0xff] }
 0x1f9   : > { %1484 = vmatprep.subr.mxu0 %v1100_v52  ;;  %1396 = vmatpush1.msra.mxu1 %v971_v54  ;;  %v1080_v20 = vld [vmem:[#allocation4 + $0x4b8] sm:$0xff]  ;;  %v1075_v31 = vld [vmem:[#allocation4 + $0x490] sm:$0xff] }
 0x1fa   : > { %1485 = vmatpush1.msra.mxu0 %v1099_v55  ;;  %1289 = vmatprep.mubr.f32.mxu1 %v2907_v56  ;;  %v1076_v25 = vld [vmem:[#allocation4 + $0x498] sm:$0xff]  ;;  %v943_v36 = vld [vmem:[#allocation4 + $0x70] sm:$0xff] }
 0x1fb   : > { %1378 = vmatprep.mubr.f32.mxu0 %v2910_v59  ;;  %1397 = vmatprep.subr.mxu1 %v968_v60  ;;  %v944_v34 = vld [vmem:[#allocation4 + $0x78] sm:$0xff]  ;;  %v1071_v37 = vld [vmem:[#allocation4 + $0x470] sm:$0xff] }
 0x1fc   : > { %1486 = vmatprep.subr.mxu0 %v1096_v61  ;;  %1290 = vmatmul.mubr.f32.gmra.mxu1 %v2912_v63  ;;  %v1072_v35 = vld [vmem:[#allocation4 + $0x478] sm:$0xff]  ;;  %v939_v40 = vld [vmem:[#allocation4 + $0x50] sm:$0xff] }
 0x1fd   : > { %1379 = vmatmul.mubr.f32.gmra.mxu0 %v2914_v0  ;;  %1398 = vmatpush1.msra.mxu1 %v967_v1  ;;  %v940_v38 = vld [vmem:[#allocation4 + $0x58] sm:$0xff]  ;;  %v1067_v41 = vld [vmem:[#allocation4 + $0x450] sm:$0xff] }
 0x1fe   : > { %1487 = vmatpush1.msra.mxu0 %v1095_v2  ;;  %1399 = vmatprep.subr.mxu1 %v964_v3  ;;  %v1068_v39 = vld [vmem:[#allocation4 + $0x458] sm:$0xff]  ;;  %v935_v43 = vld [vmem:[#allocation4 + $0x30] sm:$0xff] }
 0x1ff   : > { %1449 = vmatprep.mubr.f32.mxu1 %v2854_v57  ;;  %1488 = vmatprep.subr.mxu0 %v1092_v4  ;;  %v951_v57 = vld [vmem:[#allocation4 + $0xb0] sm:$0xff]  ;;  %v936_v42 = vld [vmem:[#allocation4 + $0x38] sm:$0xff] }
 0x200   : > { %1538 = vmatprep.mubr.f32.mxu0 %v2856_v58  ;;  %1400 = vmatpush1.msra.mxu1 %v963_v5  ;;  %v948_v58 = vld [vmem:[#allocation4 + $0x98] sm:$0xff]  ;;  %v1063_v44 = vld [vmem:[#allocation4 + $0x430] sm:$0xff] }
 0x201   : > { %1489 = vmatpush1.msra.mxu0 %v1091_v6  ;;  %1401 = vmatprep.subr.mxu1 %v960_v7  ;;  %v1064_v28 = vld [vmem:[#allocation4 + $0x438] sm:$0xff]  ;;  %v931_v48 = vld [vmem:[#allocation4 + $0x10] sm:$0xff] }
 0x202   : > { %1490 = vmatprep.subr.mxu0 %v1088_v8  ;;  %1402 = vmatpush1.msra.mxu1 %v959_v9  ;;  %v932_v45 = vld [vmem:[#allocation4 + $0x18] sm:$0xff]  ;;  %v1059_v49 = vld [vmem:[#allocation4 + $0x410] sm:$0xff] }
 0x203   : > { %1491 = vmatpush1.msra.mxu0 %v1087_v10  ;;  %1403 = vmatprep.subr.mxu1 %v956_v11  ;;  %v1060_v47 = vld [vmem:[#allocation4 + $0x418] sm:$0xff]  ;;  %v1055_v52 = vld [vmem:[#allocation4 + $0x3f0] sm:$0xff] }
 0x204   : > { %1492 = vmatprep.subr.mxu0 %v1084_v14  ;;  %1404 = vmatpush1.msra.mxu1 %v955_v15  ;;  %v1056_v50 = vld [vmem:[#allocation4 + $0x3f8] sm:$0xff]  ;;  %v1183_v54 = vld [vmem:[#allocation4 + $0x7f0] sm:$0xff] }
 0x205   : > { %1493 = vmatpush1.msra.mxu0 %v1083_v16  ;;  %1405 = vmatprep.subr.mxu1 %v952_v17  ;;  %v1184_v51 = vld [vmem:[#allocation4 + $0x7f8] sm:$0xff]  ;;  %v1051_v61 = vld [vmem:[#allocation4 + $0x3d0] sm:$0xff] }
 0x206   : > { %1494 = vmatprep.subr.mxu0 %v1080_v20  ;;  %1406 = vmatpush1.msra.mxu1 %v951_v57  ;;  %v1052_v55 = vld [vmem:[#allocation4 + $0x3d8] sm:$0xff]  ;;  %v1179_v1 = vld [vmem:[#allocation4 + $0x7d0] sm:$0xff] }
 0x207   : > { %1495 = vmatpush1.msra.mxu0 %v1079_v21  ;;  %1407 = vmatprep.subr.mxu1 %v948_v58  ;;  %v1180_v60 = vld [vmem:[#allocation4 + $0x7d8] sm:$0xff]  ;;  %v1047_v4 = vld [vmem:[#allocation4 + $0x3b0] sm:$0xff] }
 0x208   : > { %1496 = vmatprep.subr.mxu0 %v1076_v25  ;;  %1408 = vmatpush1.msra.mxu1 %v947_v30  ;;  %v1048_v2 = vld [vmem:[#allocation4 + $0x3b8] sm:$0xff]  ;;  %v1175_v5 = vld [vmem:[#allocation4 + $0x7b0] sm:$0xff] }
 0x209   : > { %1497 = vmatpush1.msra.mxu0 %v1075_v31  ;;  %1409 = vmatprep.subr.mxu1 %v944_v34  ;;  %v1176_v3 = vld [vmem:[#allocation4 + $0x7b8] sm:$0xff]  ;;  %v1043_v8 = vld [vmem:[#allocation4 + $0x390] sm:$0xff] }
 0x20a   : > { %1498 = vmatprep.subr.mxu0 %v1072_v35  ;;  %1410 = vmatpush1.msra.mxu1 %v943_v36  ;;  %v1044_v6 = vld [vmem:[#allocation4 + $0x398] sm:$0xff]  ;;  %v1171_v9 = vld [vmem:[#allocation4 + $0x790] sm:$0xff] }
 0x20b   : > { %1499 = vmatpush1.msra.mxu0 %v1071_v37  ;;  %1411 = vmatprep.subr.mxu1 %v940_v38  ;;  %v1172_v7 = vld [vmem:[#allocation4 + $0x798] sm:$0xff]  ;;  %v1039_v14 = vld [vmem:[#allocation4 + $0x370] sm:$0xff] }
 0x20c   : > { %1500 = vmatprep.subr.mxu0 %v1068_v39  ;;  %1412 = vmatpush1.msra.mxu1 %v939_v40  ;;  %v1040_v10 = vld [vmem:[#allocation4 + $0x378] sm:$0xff]  ;;  %v1167_v15 = vld [vmem:[#allocation4 + $0x770] sm:$0xff] }
 0x20d   : > { %1501 = vmatpush1.msra.mxu0 %v1067_v41  ;;  %1413 = vmatprep.subr.mxu1 %v936_v42  ;;  %v1168_v11 = vld [vmem:[#allocation4 + $0x778] sm:$0xff]  ;;  %v1035_v20 = vld [vmem:[#allocation4 + $0x350] sm:$0xff] }
 0x20e   : > { %1502 = vmatprep.subr.mxu0 %v1064_v28  ;;  %1414 = vmatpush1.msra.mxu1 %v935_v43  ;;  %v1036_v16 = vld [vmem:[#allocation4 + $0x358] sm:$0xff]  ;;  %v1163_v57 = vld [vmem:[#allocation4 + $0x750] sm:$0xff] }
 0x20f   : > { %1503 = vmatpush1.msra.mxu0 %v1063_v44  ;;  %1415 = vmatprep.subr.mxu1 %v932_v45  ;;  %v1164_v17 = vld [vmem:[#allocation4 + $0x758] sm:$0xff]  ;;  %v1031_v25 = vld [vmem:[#allocation4 + $0x330] sm:$0xff] }
 0x210   : > { %1504 = vmatprep.subr.mxu0 %v1060_v47  ;;  %1416 = vmatpush1.msra.mxu1 %v931_v48  ;;  %v1032_v21 = vld [vmem:[#allocation4 + $0x338] sm:$0xff]  ;;  %v1159_v30 = vld [vmem:[#allocation4 + $0x730] sm:$0xff] }
 0x211   : > { %1505 = vmatpush1.msra.mxu0 %v1059_v49  ;;  %1417 = vmatprep.subr.mxu1 %v1056_v50  ;;  %v1160_v58 = vld [vmem:[#allocation4 + $0x738] sm:$0xff]  ;;  %v1027_v35 = vld [vmem:[#allocation4 + $0x310] sm:$0xff] }
 0x212   : > { %1506 = vmatprep.subr.mxu0 %v1184_v51  ;;  %1418 = vmatpush2.msra.mxu1 %v1055_v52  ;;  %v1028_v31 = vld [vmem:[#allocation4 + $0x318] sm:$0xff]  ;;  %v1155_v36 = vld [vmem:[#allocation4 + $0x710] sm:$0xff] }
 0x213   : > { %1507 = vmatpush2.msra.mxu0 %v1183_v54  ;;  %1419 = vmatprep.subr.mxu1 %v1052_v55  ;;  %v1156_v34 = vld [vmem:[#allocation4 + $0x718] sm:$0xff]  ;;  %v1023_v39 = vld [vmem:[#allocation4 + $0x2f0] sm:$0xff] }
 0x214   : > { %1508 = vmatprep.subr.mxu0 %v1180_v60  ;;  %1420 = vmatpush2.msra.mxu1 %v1051_v61  ;;  %v1024_v37 = vld [vmem:[#allocation4 + $0x2f8] sm:$0xff]  ;;  %v1151_v40 = vld [vmem:[#allocation4 + $0x6f0] sm:$0xff] }
 0x215   : > { %1509 = vmatpush2.msra.mxu0 %v1179_v1  ;;  %1421 = vmatprep.subr.mxu1 %v1048_v2  ;;  %v1152_v38 = vld [vmem:[#allocation4 + $0x6f8] sm:$0xff]  ;;  %v1019_v28 = vld [vmem:[#allocation4 + $0x2d0] sm:$0xff] }
 0x216   : > { %1510 = vmatprep.subr.mxu0 %v1176_v3  ;;  %1422 = vmatpush2.msra.mxu1 %v1047_v4  ;;  %v1020_v41 = vld [vmem:[#allocation4 + $0x2d8] sm:$0xff]  ;;  %v1147_v43 = vld [vmem:[#allocation4 + $0x6d0] sm:$0xff] }
 0x217   : > { %1511 = vmatpush2.msra.mxu0 %v1175_v5  ;;  %1423 = vmatprep.subr.mxu1 %v1044_v6  ;;  %v1148_v42 = vld [vmem:[#allocation4 + $0x6d8] sm:$0xff]  ;;  %v1015_v47 = vld [vmem:[#allocation4 + $0x2b0] sm:$0xff] }
 0x218   : > { %1512 = vmatprep.subr.mxu0 %v1172_v7  ;;  %1424 = vmatpush2.msra.mxu1 %v1043_v8  ;;  %v1016_v44 = vld [vmem:[#allocation4 + $0x2b8] sm:$0xff]  ;;  %v1143_v48 = vld [vmem:[#allocation4 + $0x6b0] sm:$0xff] }
 0x219   : > { %1513 = vmatpush2.msra.mxu0 %v1171_v9  ;;  %1425 = vmatprep.subr.mxu1 %v1040_v10  ;;  %v1144_v45 = vld [vmem:[#allocation4 + $0x6b8] sm:$0xff]  ;;  %v1011_v51 = vld [vmem:[#allocation4 + $0x290] sm:$0xff] }
 0x21a   : > { %1514 = vmatprep.subr.mxu0 %v1168_v11  ;;  %1426 = vmatpush2.msra.mxu1 %v1039_v14  ;;  %v1012_v49 = vld [vmem:[#allocation4 + $0x298] sm:$0xff]  ;;  %v1139_v52 = vld [vmem:[#allocation4 + $0x690] sm:$0xff] }
 0x21b   : > { %1515 = vmatpush2.msra.mxu0 %v1167_v15  ;;  %1427 = vmatprep.subr.mxu1 %v1036_v16  ;;  %v1140_v50 = vld [vmem:[#allocation4 + $0x698] sm:$0xff]  ;;  %v1007_v60 = vld [vmem:[#allocation4 + $0x270] sm:$0xff] }
 0x21c   : > { %1516 = vmatprep.subr.mxu0 %v1164_v17  ;;  %1428 = vmatpush2.msra.mxu1 %v1035_v20  ;;  %v1008_v54 = vld [vmem:[#allocation4 + $0x278] sm:$0xff]  ;;  %v1135_v61 = vld [vmem:[#allocation4 + $0x670] sm:$0xff]  ;;  %v1640_v17 = vld [vmem:[#allocation6 + $0xe8] sm:$0xff] }
 0x21d   : > { %1517 = vmatpush2.msra.mxu0 %v1163_v57  ;;  %1429 = vmatprep.subr.mxu1 %v1032_v21  ;;  %v1136_v55 = vld [vmem:[#allocation4 + $0x678] sm:$0xff]  ;;  %v1003_v3 = vld [vmem:[#allocation4 + $0x250] sm:$0xff]  ;;  %v1639_v20 = vld [vmem:[#allocation6 + $0xe0] sm:$0xff] }
 0x21e   : > { %1518 = vmatprep.subr.mxu0 %v1160_v58  ;;  %1430 = vmatpush2.msra.mxu1 %v1031_v25  ;;  %v1004_v1 = vld [vmem:[#allocation4 + $0x258] sm:$0xff]  ;;  %v1131_v4 = vld [vmem:[#allocation4 + $0x650] sm:$0xff]  ;;  %v1700_v21 = vld [vmem:[#allocation6 + $0x2c8] sm:$0xff] }
 0x21f   : > { %1519 = vmatpush2.msra.mxu0 %v1159_v30  ;;  %1431 = vmatprep.subr.mxu1 %v1028_v31  ;;  %v1132_v2 = vld [vmem:[#allocation4 + $0x658] sm:$0xff]  ;;  %v999_v7 = vld [vmem:[#allocation4 + $0x230] sm:$0xff]  ;;  %v1631_v58 = vld [vmem:[#allocation6 + $0xa0] sm:$0xff] }
 0x220   : > { %1520 = vmatprep.subr.mxu0 %v1156_v34  ;;  %1432 = vmatpush2.msra.mxu1 %v1027_v35  ;;  %v1000_v5 = vld [vmem:[#allocation4 + $0x238] sm:$0xff]  ;;  %v1127_v8 = vld [vmem:[#allocation4 + $0x630] sm:$0xff]  ;;  %v1699_v25 = vld [vmem:[#allocation6 + $0x2c0] sm:$0xff] }
 0x221   : > { %1521 = vmatpush2.msra.mxu0 %v1155_v36  ;;  %1433 = vmatprep.subr.mxu1 %v1024_v37  ;;  %v1128_v6 = vld [vmem:[#allocation4 + $0x638] sm:$0xff]  ;;  %v995_v11 = vld [vmem:[#allocation4 + $0x210] sm:$0xff]  ;;  %v1628_v34 = vld [vmem:[#allocation6 + $0x88] sm:$0xff] }
 0x222   : > { %1522 = vmatprep.subr.mxu0 %v1152_v38  ;;  %1434 = vmatpush2.msra.mxu1 %v1023_v39  ;;  %v996_v9 = vld [vmem:[#allocation4 + $0x218] sm:$0xff]  ;;  %v1123_v14 = vld [vmem:[#allocation4 + $0x610] sm:$0xff]  ;;  %v1696_v35 = vld [vmem:[#allocation6 + $0x2a8] sm:$0xff] }
 0x223   : > { %1523 = vmatpush2.msra.mxu0 %v1151_v40  ;;  %1435 = vmatprep.subr.mxu1 %v1020_v41  ;;  %v1124_v10 = vld [vmem:[#allocation4 + $0x618] sm:$0xff]  ;;  %v1641_v16 = vld [vmem:[#allocation6 + $0xf0] sm:$0xff]  ;;  %v1627_v36 = vld [vmem:[#allocation6 + $0x80] sm:$0xff] }
 0x224   : > { %1524 = vmatprep.subr.mxu0 %v1148_v42  ;;  %1436 = vmatpush2.msra.mxu1 %v1019_v28  ;;  %v1642_v15 = vld [vmem:[#allocation6 + $0xf8] sm:$0xff]  ;;  %v1633_v57 = vld [vmem:[#allocation6 + $0xb0] sm:$0xff]  ;;  %v1695_v37 = vld [vmem:[#allocation6 + $0x2a0] sm:$0xff] }
 0x225   : > { %1525 = vmatpush2.msra.mxu0 %v1147_v43  ;;  %1437 = vmatprep.subr.mxu1 %v1016_v44  ;;  %v1630_v30 = vld [vmem:[#allocation6 + $0x98] sm:$0xff]  ;;  %v1697_v31 = vld [vmem:[#allocation6 + $0x2b0] sm:$0xff]  ;;  %v1624_v42 = vld [vmem:[#allocation6 + $0x68] sm:$0xff] }
 0x226   : > { %1526 = vmatprep.subr.mxu0 %v1144_v45  ;;  %1438 = vmatpush2.msra.mxu1 %v1015_v47  ;;  %v1626_v38 = vld [vmem:[#allocation6 + $0x78] sm:$0xff]  ;;  %v1625_v40 = vld [vmem:[#allocation6 + $0x70] sm:$0xff]  ;;  %v1692_v28 = vld [vmem:[#allocation6 + $0x288] sm:$0xff] }
 0x227   : > { %1527 = vmatpush2.msra.mxu0 %v1143_v48  ;;  %1439 = vmatprep.subr.mxu1 %v1012_v49  ;;  %v1694_v39 = vld [vmem:[#allocation6 + $0x298] sm:$0xff]  ;;  %v1693_v41 = vld [vmem:[#allocation6 + $0x290] sm:$0xff]  ;;  %v1623_v43 = vld [vmem:[#allocation6 + $0x60] sm:$0xff] }
 0x228   : > { %1528 = vmatprep.subr.mxu0 %v1140_v50  ;;  %1440 = vmatpush2.msra.mxu1 %v1011_v51  ;;  %v1691_v44 = vld [vmem:[#allocation6 + $0x280] sm:$0xff]  ;;  %v1622_v45 = vld [vmem:[#allocation6 + $0x58] sm:$0xff]  ;;  %v1621_v48 = vld [vmem:[#allocation6 + $0x50] sm:$0xff] }
 0x229   : > { %1529 = vmatpush2.msra.mxu0 %v1139_v52  ;;  %1441 = vmatprep.subr.mxu1 %v1008_v54  ;;  %v1690_v47 = vld [vmem:[#allocation6 + $0x278] sm:$0xff]  ;;  %v1689_v49 = vld [vmem:[#allocation6 + $0x270] sm:$0xff]  ;;  %v1620_v50 = vld [vmem:[#allocation6 + $0x48] sm:$0xff] }
 0x22a   : > { %1530 = vmatprep.subr.mxu0 %v1136_v55  ;;  %1442 = vmatpush2.msra.mxu1 %v1007_v60  ;;  %v1688_v51 = vld [vmem:[#allocation6 + $0x268] sm:$0xff]  ;;  %v1619_v52 = vld [vmem:[#allocation6 + $0x40] sm:$0xff]  ;;  %v1618_v55 = vld [vmem:[#allocation6 + $0x38] sm:$0xff] }
 0x22b   : > { %1531 = vmatpush2.msra.mxu0 %v1135_v61  ;;  %1443 = vmatprep.subr.mxu1 %v1004_v1  ;;  %v1687_v54 = vld [vmem:[#allocation6 + $0x260] sm:$0xff]  ;;  %v1686_v60 = vld [vmem:[#allocation6 + $0x258] sm:$0xff]  ;;  %v1617_v61 = vld [vmem:[#allocation6 + $0x30] sm:$0xff] }
 0x22c   : > { %1532 = vmatprep.subr.mxu0 %v1132_v2  ;;  %1444 = vmatpush2.msra.mxu1 %v1003_v3  ;;  %v1685_v1 = vld [vmem:[#allocation6 + $0x250] sm:$0xff]  ;;  %v1616_v2 = vld [vmem:[#allocation6 + $0x28] sm:$0xff] }
 0x22d   : > { %1533 = vmatpush2.msra.mxu0 %v1131_v4  ;;  %1445 = vmatprep.subr.mxu1 %v1000_v5  ;;  %v1684_v3 = vld [vmem:[#allocation6 + $0x248] sm:$0xff]  ;;  %v1615_v4 = vld [vmem:[#allocation6 + $0x20] sm:$0xff] }
 0x22e   : > { %1534 = vmatprep.subr.mxu0 %v1128_v6  ;;  %1446 = vmatpush2.msra.mxu1 %v999_v7  ;;  %v1683_v5 = vld [vmem:[#allocation6 + $0x240] sm:$0xff]  ;;  %v1614_v6 = vld [vmem:[#allocation6 + $0x18] sm:$0xff] }
 0x22f   : > { %1535 = vmatpush2.msra.mxu0 %v1127_v8  ;;  %1447 = vmatprep.subr.mxu1 %v996_v9  ;;  %v1682_v7 = vld [vmem:[#allocation6 + $0x238] sm:$0xff]  ;;  %v1613_v8 = vld [vmem:[#allocation6 + $0x10] sm:$0xff] }
 0x230   : > { %1536 = vmatprep.subr.mxu0 %v1124_v10  ;;  %1448 = vmatpush2.msra.mxu1 %v995_v11  ;;  %v1681_v9 = vld [vmem:[#allocation6 + $0x230] sm:$0xff]  ;;  %v1612_v10 = vld [vmem:[#allocation6 + $0x8] sm:$0xff] }
 0x231   : > { %1537 = vmatpush2.msra.mxu0 %v1123_v14  ;;  %1450 = vmatmul.mubr.f32.vlgmr.msra.gmra.mxu1 %v2852_v53  ;;  %v1638_v53 = vld [vmem:[#allocation6 + $0xd8] sm:$0xff]  ;;  %v1680_v11 = vld [vmem:[#allocation6 + $0x228] sm:$0xff]  ;;  %v1611_v14 = vld [vmem:[#allocation6] sm:$0xff] }
 0x232   : > { %1539 = vmatmul.mubr.f32.vlgmr.msra.gmra.mxu0 %v2859_v62  ;;  %1455 = vmatprep.mubr.f32.mxu1 %v2871_v12  ;;  %v1706_v62 = vld [vmem:[#allocation6 + $0x2f8] sm:$0xff]  ;;  %v1637_v12 = vld [vmem:[#allocation6 + $0xd0] sm:$0xff] }
 0x233   : > { %1544 = vmatprep.mubr.f32.mxu0 %v2873_v13  ;;  %1751 = vmatprep.subr.mxu1 %v1642_v15  ;;  %v1705_v13 = vld [vmem:[#allocation6 + $0x2f0] sm:$0xff]  ;;  %v1679_v15 = vld [vmem:[#allocation6 + $0x220] sm:$0xff] }
 0x234   : > { %1752 = vmatpush1.msra.mxu1 %v1641_v16  ;;  %1840 = vmatprep.subr.mxu0 %v1706_v62  ;;  %v1674_v16 = vld [vmem:[#allocation6 + $0x1f8] sm:$0xff]  ;;  %v1672_v62 = vld [vmem:[#allocation6 + $0x1e8] sm:$0xff] }
 0x235   : > { %1456 = vmatmul.mubr.f32.gmra.mxu1 %v2878_v18  ;;  %1753 = vmatprep.subr.mxu1 %v1640_v17  ;;  %v1636_v18 = vld [vmem:[#allocation6 + $0xc8] sm:$0xff]  ;;  %v1678_v17 = vld [vmem:[#allocation6 + $0x218] sm:$0xff] }
 0x236   : > { %1545 = vmatmul.mubr.f32.gmra.mxu0 %v2881_v19  ;;  %1461 = vmatprep.mubr.f32.mxu1 %v2892_v32  ;;  %v1704_v19 = vld [vmem:[#allocation6 + $0x2e8] sm:$0xff]  ;;  %v1635_v32 = vld [vmem:[#allocation6 + $0xc0] sm:$0xff] }
 0x237   : > { %1550 = vmatprep.mubr.f32.mxu0 %v2895_v33  ;;  %1754 = vmatpush1.msra.mxu1 %v1639_v20  ;;  %v1703_v33 = vld [vmem:[#allocation6 + $0x2e0] sm:$0xff]  ;;  %v1673_v20 = vld [vmem:[#allocation6 + $0x1f0] sm:$0xff] }
 0x238   : > { %1755 = vmatprep.subr.mxu1 %v1638_v53  ;;  %1841 = vmatpush1.msra.mxu0 %v1705_v13  ;;  %v1677_v53 = vld [vmem:[#allocation6 + $0x210] sm:$0xff]  ;;  %v1671_v13 = vld [vmem:[#allocation6 + $0x1e0] sm:$0xff] }
 0x239   : > { %1462 = vmatmul.mubr.f32.gmra.mxu1 %v2898_v46  ;;  %v1634_v46 = vld [vmem:[#allocation6 + $0xb8] sm:$0xff]  ;;  %1842 = vmatprep.subr.mxu0 %v1704_v19 }
 0x23a   : > { %1551 = vmatmul.mubr.f32.gmra.mxu0 %v2900_v29  ;;  %1467 = vmatprep.mubr.f32.mxu1 %v2907_v56  ;;  %v1702_v29 = vld [vmem:[#allocation6 + $0x2d8] sm:$0xff]  ;;  %v1701_v56 = vld [vmem:[#allocation6 + $0x2d0] sm:$0xff] }
 0x23b   : > { %1556 = vmatprep.mubr.f32.mxu0 %v2910_v59  ;;  %1756 = vmatpush1.msra.mxu1 %v1637_v12  ;;  %v1632_v59 = vld [vmem:[#allocation6 + $0xa8] sm:$0xff]  ;;  %v1670_v19 = vld [vmem:[#allocation6 + $0x1d8] sm:$0xff] }
 0x23c   : > { %1757 = vmatprep.subr.mxu1 %v1636_v18  ;;  %1843 = vmatpush1.msra.mxu0 %v1703_v33  ;;  %v1676_v12 = vld [vmem:[#allocation6 + $0x208] sm:$0xff]  ;;  %v1675_v18 = vld [vmem:[#allocation6 + $0x200] sm:$0xff]  ;;  %v1669_v33 = vld [vmem:[#allocation6 + $0x1d0] sm:$0xff] }
 0x23d   : > { %1468 = vmatmul.mubr.f32.gmra.mxu1 %v2912_v63  ;;  %1844 = vmatprep.subr.mxu0 %v1702_v29  ;;  %v1698_v63 = vld [vmem:[#allocation6 + $0x2b8] sm:$0xff]  ;;  %v1668_v29 = vld [vmem:[#allocation6 + $0x1c8] sm:$0xff] }
 0x23e   : > { %1557 = vmatmul.mubr.f32.gmra.mxu0 %v2914_v0  ;;  %1758 = vmatpush1.msra.mxu1 %v1635_v32  ;;  %v1629_v0 = vld [vmem:[#allocation6 + $0x90] sm:$0xff]  ;;  %v1738_v32 = vld [vmem:[#allocation6 + $0x3f8] sm:$0xff] }
 0x23f   : > { %1759 = vmatprep.subr.mxu1 %v1634_v46  ;;  %1845 = vmatpush1.msra.mxu0 %v1701_v56  ;;  %v1737_v46 = vld [vmem:[#allocation6 + $0x3f0] sm:$0xff]  ;;  %v1667_v56 = vld [vmem:[#allocation6 + $0x1c0] sm:$0xff] }
 0x240   : > { %1760 = vmatpush1.msra.mxu1 %v1633_v57  ;;  %1846 = vmatprep.subr.mxu0 %v1700_v21  ;;  %v1736_v57 = vld [vmem:[#allocation6 + $0x3e8] sm:$0xff]  ;;  %v1666_v21 = vld [vmem:[#allocation6 + $0x1b8] sm:$0xff] }
 0x241   : > { %1761 = vmatprep.subr.mxu1 %v1632_v59  ;;  %1847 = vmatpush1.msra.mxu0 %v1699_v25  ;;  %v1735_v59 = vld [vmem:[#allocation6 + $0x3e0] sm:$0xff]  ;;  %v1665_v25 = vld [vmem:[#allocation6 + $0x1b0] sm:$0xff] }
 0x242   : > { %1762 = vmatpush1.msra.mxu1 %v1631_v58  ;;  %1848 = vmatprep.subr.mxu0 %v1698_v63  ;;  %v1734_v58 = vld [vmem:[#allocation6 + $0x3d8] sm:$0xff]  ;;  %v1664_v63 = vld [vmem:[#allocation6 + $0x1a8] sm:$0xff] }
 0x243   : > { %1763 = vmatprep.subr.mxu1 %v1630_v30  ;;  %1849 = vmatpush1.msra.mxu0 %v1697_v31  ;;  %v1733_v30 = vld [vmem:[#allocation6 + $0x3d0] sm:$0xff]  ;;  %v1663_v31 = vld [vmem:[#allocation6 + $0x1a0] sm:$0xff] }
 0x244   : > { %1764 = vmatpush1.msra.mxu1 %v1629_v0  ;;  %1850 = vmatprep.subr.mxu0 %v1696_v35  ;;  %v1732_v0 = vld [vmem:[#allocation6 + $0x3c8] sm:$0xff]  ;;  %v1662_v35 = vld [vmem:[#allocation6 + $0x198] sm:$0xff] }
 0x245   : > { %1765 = vmatprep.subr.mxu1 %v1628_v34  ;;  %1851 = vmatpush1.msra.mxu0 %v1695_v37  ;;  %v1731_v34 = vld [vmem:[#allocation6 + $0x3c0] sm:$0xff]  ;;  %v1661_v37 = vld [vmem:[#allocation6 + $0x190] sm:$0xff] }
 0x246   : > { %1766 = vmatpush1.msra.mxu1 %v1627_v36  ;;  %1852 = vmatprep.subr.mxu0 %v1694_v39  ;;  %v1730_v36 = vld [vmem:[#allocation6 + $0x3b8] sm:$0xff]  ;;  %v1660_v39 = vld [vmem:[#allocation6 + $0x188] sm:$0xff] }
 0x247   : > { %1767 = vmatprep.subr.mxu1 %v1626_v38  ;;  %1853 = vmatpush1.msra.mxu0 %v1693_v41  ;;  %v1729_v38 = vld [vmem:[#allocation6 + $0x3b0] sm:$0xff]  ;;  %v1659_v41 = vld [vmem:[#allocation6 + $0x180] sm:$0xff] }
 0x248   : > { %1768 = vmatpush1.msra.mxu1 %v1625_v40  ;;  %1854 = vmatprep.subr.mxu0 %v1692_v28  ;;  %v1728_v40 = vld [vmem:[#allocation6 + $0x3a8] sm:$0xff]  ;;  %v1658_v28 = vld [vmem:[#allocation6 + $0x178] sm:$0xff] }
 0x249   : > { %1769 = vmatprep.subr.mxu1 %v1624_v42  ;;  %1855 = vmatpush1.msra.mxu0 %v1691_v44  ;;  %v1727_v42 = vld [vmem:[#allocation6 + $0x3a0] sm:$0xff]  ;;  %v1657_v44 = vld [vmem:[#allocation6 + $0x170] sm:$0xff] }
 0x24a   : > { %1770 = vmatpush1.msra.mxu1 %v1623_v43  ;;  %1856 = vmatprep.subr.mxu0 %v1690_v47  ;;  %v1726_v43 = vld [vmem:[#allocation6 + $0x398] sm:$0xff]  ;;  %v1656_v47 = vld [vmem:[#allocation6 + $0x168] sm:$0xff] }
 0x24b   : > { %1771 = vmatprep.subr.mxu1 %v1622_v45  ;;  %1857 = vmatpush1.msra.mxu0 %v1689_v49  ;;  %v1725_v45 = vld [vmem:[#allocation6 + $0x390] sm:$0xff]  ;;  %v1655_v49 = vld [vmem:[#allocation6 + $0x160] sm:$0xff] }
 0x24c   : > { %1772 = vmatpush1.msra.mxu1 %v1621_v48  ;;  %1858 = vmatprep.subr.mxu0 %v1688_v51  ;;  %v1724_v48 = vld [vmem:[#allocation6 + $0x388] sm:$0xff]  ;;  %v1654_v51 = vld [vmem:[#allocation6 + $0x158] sm:$0xff] }
 0x24d   : > { %1773 = vmatprep.subr.mxu1 %v1620_v50  ;;  %1859 = vmatpush1.msra.mxu0 %v1687_v54  ;;  %v1723_v50 = vld [vmem:[#allocation6 + $0x380] sm:$0xff]  ;;  %v1653_v54 = vld [vmem:[#allocation6 + $0x150] sm:$0xff] }
 0x24e   : > { %1774 = vmatpush1.msra.mxu1 %v1619_v52  ;;  %1860 = vmatprep.subr.mxu0 %v1686_v60  ;;  %v1722_v52 = vld [vmem:[#allocation6 + $0x378] sm:$0xff]  ;;  %v1652_v60 = vld [vmem:[#allocation6 + $0x148] sm:$0xff] }
 0x24f   : > { %1775 = vmatprep.subr.mxu1 %v1618_v55  ;;  %1861 = vmatpush1.msra.mxu0 %v1685_v1  ;;  %v1721_v55 = vld [vmem:[#allocation6 + $0x370] sm:$0xff]  ;;  %v1651_v1 = vld [vmem:[#allocation6 + $0x140] sm:$0xff] }
 0x250   : > { %1776 = vmatpush1.msra.mxu1 %v1617_v61  ;;  %1862 = vmatprep.subr.mxu0 %v1684_v3  ;;  %v1720_v61 = vld [vmem:[#allocation6 + $0x368] sm:$0xff]  ;;  %v1650_v3 = vld [vmem:[#allocation6 + $0x138] sm:$0xff] }
 0x251   : > { %1777 = vmatprep.subr.mxu1 %v1616_v2  ;;  %1863 = vmatpush1.msra.mxu0 %v1683_v5  ;;  %v1719_v2 = vld [vmem:[#allocation6 + $0x360] sm:$0xff]  ;;  %v1649_v5 = vld [vmem:[#allocation6 + $0x130] sm:$0xff] }
 0x252   : > { %1778 = vmatpush1.msra.mxu1 %v1615_v4  ;;  %1864 = vmatprep.subr.mxu0 %v1682_v7  ;;  %v1718_v4 = vld [vmem:[#allocation6 + $0x358] sm:$0xff]  ;;  %v1647_v7 = vld [vmem:[#allocation6 + $0x120] sm:$0xff] }
 0x253   : > { %1779 = vmatprep.subr.mxu1 %v1614_v6  ;;  %1865 = vmatpush1.msra.mxu0 %v1681_v9  ;;  %v1648_v6 = vld [vmem:[#allocation6 + $0x128] sm:$0xff]  ;;  %v1646_v9 = vld [vmem:[#allocation6 + $0x118] sm:$0xff] }
 0x254   : > { %1780 = vmatpush1.msra.mxu1 %v1613_v8  ;;  %1866 = vmatprep.subr.mxu0 %v1680_v11  ;;  %v1717_v8 = vld [vmem:[#allocation6 + $0x350] sm:$0xff] }
 0x255   : > { %1781 = vmatprep.subr.mxu1 %v1612_v10  ;;  %1867 = vmatpush1.msra.mxu0 %v1679_v15  ;;  %v1716_v10 = vld [vmem:[#allocation6 + $0x348] sm:$0xff]  ;;  %v1645_v11 = vld [vmem:[#allocation6 + $0x110] sm:$0xff] }
 0x256   : > { %1782 = vmatpush1.msra.mxu1 %v1611_v14  ;;  %1868 = vmatprep.subr.mxu0 %v1678_v17  ;;  %v1715_v14 = vld [vmem:[#allocation6 + $0x340] sm:$0xff]  ;;  %v1644_v15 = vld [vmem:[#allocation6 + $0x108] sm:$0xff] }
 0x257   : > { %1783 = vmatprep.subr.mxu1 %v1674_v16  ;;  %1869 = vmatpush1.msra.mxu0 %v1677_v53  ;;  %v1714_v16 = vld [vmem:[#allocation6 + $0x338] sm:$0xff]  ;;  %v1643_v17 = vld [vmem:[#allocation6 + $0x100] sm:$0xff]  ;;  %v1712_v53 = vld [vmem:[#allocation6 + $0x328] sm:$0xff] }
 0x258   : > { %1784 = vmatpush2.msra.mxu1 %v1673_v20  ;;  %1870 = vmatprep.subr.mxu0 %v1676_v12  ;;  %v1713_v20 = vld [vmem:[#allocation6 + $0x330] sm:$0xff]  ;;  %v1710_v12 = vld [vmem:[#allocation6 + $0x318] sm:$0xff] }
 0x259   : > { %1785 = vmatprep.subr.mxu1 %v1672_v62  ;;  %1871 = vmatpush1.msra.mxu0 %v1675_v18  ;;  %v1711_v62 = vld [vmem:[#allocation6 + $0x320] sm:$0xff]  ;;  %v1708_v18 = vld [vmem:[#allocation6 + $0x308] sm:$0xff] }
 0x25a   : > { %1786 = vmatpush2.msra.mxu1 %v1671_v13  ;;  %1872 = vmatprep.subr.mxu0 %v1738_v32  ;;  %v1709_v13 = vld [vmem:[#allocation6 + $0x310] sm:$0xff]  ;;  %v2939_v32 = vld [vmem:[%s3028_s6] sm:$0xf] }
 0x25b   : > { %1787 = vmatprep.subr.mxu1 %v1670_v19  ;;  %1873 = vmatpush2.msra.mxu0 %v1737_v46  ;;  %v1707_v19 = vld [vmem:[#allocation6 + $0x300] sm:$0xff]  ;;  %v1194_v46 = vrot.slane %v2939_v32, %v2826_v26 }
 0x25c   : > { %1788 = vmatpush2.msra.mxu1 %v1669_v33  ;;  %1874 = vmatprep.subr.mxu0 %v1736_v57  ;;  %v1190_v33 = vrot.slane %v2939_v32, %v2819_v23 }
 0x25d   : > { %1789 = vmatprep.subr.mxu1 %v1668_v29  ;;  %1875 = vmatpush2.msra.mxu0 %v1735_v59 }
 0x25e   : > { %1790 = vmatpush2.msra.mxu1 %v1667_v56  ;;  %1876 = vmatprep.subr.mxu0 %v1734_v58 }
 0x25f   : > { %1791 = vmatprep.subr.mxu1 %v1666_v21  ;;  %1877 = vmatpush2.msra.mxu0 %v1733_v30 }
 0x260   : > { %1792 = vmatpush2.msra.mxu1 %v1665_v25  ;;  %1878 = vmatprep.subr.mxu0 %v1732_v0 }
 0x261   : > { %1793 = vmatprep.subr.mxu1 %v1664_v63  ;;  %1879 = vmatpush2.msra.mxu0 %v1731_v34 }
 0x262   : > { %1794 = vmatpush2.msra.mxu1 %v1663_v31  ;;  %1880 = vmatprep.subr.mxu0 %v1730_v36 }
 0x263   : > { %1795 = vmatprep.subr.mxu1 %v1662_v35  ;;  %1881 = vmatpush2.msra.mxu0 %v1729_v38 }
 0x264   : > { %1796 = vmatpush2.msra.mxu1 %v1661_v37  ;;  %1882 = vmatprep.subr.mxu0 %v1728_v40 }
 0x265   : > { %1797 = vmatprep.subr.mxu1 %v1660_v39  ;;  %1883 = vmatpush2.msra.mxu0 %v1727_v42 }
 0x266   : > { %1798 = vmatpush2.msra.mxu1 %v1659_v41  ;;  %1884 = vmatprep.subr.mxu0 %v1726_v43 }
 0x267   : > { %1799 = vmatprep.subr.mxu1 %v1658_v28  ;;  %1885 = vmatpush2.msra.mxu0 %v1725_v45 }
 0x268   : > { %1800 = vmatpush2.msra.mxu1 %v1657_v44  ;;  %1886 = vmatprep.subr.mxu0 %v1724_v48 }
 0x269   : > { %1801 = vmatprep.subr.mxu1 %v1656_v47  ;;  %1887 = vmatpush2.msra.mxu0 %v1723_v50 }
 0x26a   : > { %1802 = vmatpush2.msra.mxu1 %v1655_v49  ;;  %1888 = vmatprep.subr.mxu0 %v1722_v52 }
 0x26b   : > { %1803 = vmatprep.subr.mxu1 %v1654_v51  ;;  %1889 = vmatpush2.msra.mxu0 %v1721_v55 }
 0x26c   : > { %1804 = vmatpush2.msra.mxu1 %v1653_v54  ;;  %1890 = vmatprep.subr.mxu0 %v1720_v61 }
 0x26d   : > { %1805 = vmatprep.subr.mxu1 %v1652_v60  ;;  %1891 = vmatpush2.msra.mxu0 %v1719_v2 }
 0x26e   : > { %1806 = vmatpush2.msra.mxu1 %v1651_v1  ;;  %1892 = vmatprep.subr.mxu0 %v1718_v4 }
 0x26f   : > { %1807 = vmatprep.subr.mxu1 %v1650_v3  ;;  %1893 = vmatpush2.msra.mxu0 %v1717_v8 }
 0x270   : > { %1808 = vmatpush2.msra.mxu1 %v1649_v5  ;;  %1894 = vmatprep.subr.mxu0 %v1716_v10 }
 0x271   : > { %1809 = vmatprep.subr.mxu1 %v1648_v6  ;;  %1895 = vmatpush2.msra.mxu0 %v1715_v14 }
 0x272   : > { %1810 = vmatpush2.msra.mxu1 %v1647_v7  ;;  %1896 = vmatprep.subr.mxu0 %v1714_v16 }
 0x273   : > { %1811 = vmatprep.subr.mxu1 %v1646_v9  ;;  %1897 = vmatpush2.msra.mxu0 %v1713_v20  ;;  %v1202_v20 = vrot.slane %v2939_v32, %v697_v27 }
 0x274   : > { %1812 = vmatpush2.msra.mxu1 %v1645_v11  ;;  %1898 = vmatprep.subr.mxu0 %v1712_v53 }
 0x275   : > { %1813 = vmatprep.subr.mxu1 %v1644_v15  ;;  %1899 = vmatpush2.msra.mxu0 %v1711_v62 }
 0x276   : > { %1814 = vmatpush2.msra.mxu1 %v1643_v17  ;;  %1900 = vmatprep.subr.mxu0 %v1710_v12  ;;  %v1198_v17 = vrot.slane %v2939_v32, %v693_v24 }
 0x277   : > { %1901 = vmatpush2.msra.mxu0 %v1709_v13 }
 0x278   : > { %1902 = vmatprep.subr.mxu0 %v1708_v18 }
 0x279   : > { %1903 = vmatpush2.msra.mxu0 %v1707_v19 }
 0x2aa   : > { %v1273_v29 = vpop.f32.mrf.mxu1 }
 0x2ab   : > { %v1362_v57 = vpop.f32.mrf.mxu0  ;;  %v1274_v56 = vadd.f32 %v1273_v29, %v1190_v33 }
 0x2ac   : > { %v1275_v59 = vpop.f32.mrf.mxu1 }
 0x2ad   : > { %v1364_v21 = vpop.f32.mrf.mxu0  ;;  %v1363_v58 = vadd.f32 %v1362_v57, %v1274_v56  ;;  %v1276_v25 = vadd.f32 %v1275_v59, %v1194_v46 }
 0x2af   : > { %v1365_v30 = vadd.f32 %v1364_v21, %v1276_v25  ;;  %v1579_v63 = vmul.f32 0.01, %v1363_v58  ;;  %vm1563_vm2 = vcmp.ge.f32.partialorder %v1363_v58, 0.0 }
 0x2b0   : > { %v1279_v0 = vpop.f32.mrf.mxu1 }
 0x2b1   : > { %v1368_v31 = vpop.f32.mrf.mxu0  ;;  %v1580_v34 = vmul.f32 0.01, %v1365_v30  ;;  %v1280_v35 = vadd.f32 %v1279_v0, %v1190_v33  ;;  %vm1564_vm3 = vcmp.ge.f32.partialorder %v1365_v30, 0.0  ;;  %v1595_v40 = vsel %vm1563_vm2, %v1363_v58, %v1579_v63 }
 0x2b2   : > { %v1281_v36 = vpop.f32.mrf.mxu1 }
 0x2b3   : > { %v1369_v37 = vadd.f32 %v1368_v31, %v1280_v35  ;;  %v1282_v38 = vadd.f32 %v1281_v36, %v1194_v46  ;;  %v1596_v39 = vsel %vm1564_vm3, %v1365_v30, %v1580_v34  ;;  %v1370_v41 = vpop.f32.mrf.mxu0 }
 0x2b4   : > { %1815 = vmatprep.mubr.f32.mxu1 %v1596_v39 }
 0x2b5   : > { %v1371_v42 = vadd.f32 %v1370_v41, %v1282_v38  ;;  %1816 = vmatmul.mubr.f32.vlgmr.msra.gmra.mxu1 %v1595_v40  ;;  %v1583_v28 = vmul.f32 0.01, %v1369_v37  ;;  %vm1567_vm5 = vcmp.ge.f32.partialorder %v1369_v37, 0.0 }
 0x2b6   : > { %v1285_v43 = vpop.f32.mrf.mxu1 }
 0x2b7   : > { %v1374_v44 = vpop.f32.mrf.mxu0  ;;  %v1584_v45 = vmul.f32 0.01, %v1371_v42  ;;  %vm1568_vm4 = vcmp.ge.f32.partialorder %v1371_v42, 0.0  ;;  %v1286_v47 = vadd.f32 %v1285_v43, %v1190_v33  ;;  %v1599_v54 = vsel %vm1567_vm5, %v1369_v37, %v1583_v28 }
 0x2b8   : > { %v1287_v48 = vpop.f32.mrf.mxu1 }
 0x2b9   : > { %v1376_v49 = vpop.f32.mrf.mxu0  ;;  %v1600_v50 = vsel %vm1568_vm4, %v1371_v42, %v1584_v45  ;;  %v1288_v51 = vadd.f32 %v1287_v48, %v1194_v46  ;;  %v1375_v52 = vadd.f32 %v1374_v44, %v1286_v47 }
 0x2ba   : > { %1821 = vmatprep.mubr.f32.mxu1 %v1600_v50 }
 0x2bb   : > { %1822 = vmatmul.mubr.f32.gmra.mxu1 %v1599_v54  ;;  %v1587_v55 = vmul.f32 0.01, %v1375_v52  ;;  %v1377_v60 = vadd.f32 %v1376_v49, %v1288_v51  ;;  %vm1571_vm6 = vcmp.ge.f32.partialorder %v1375_v52, 0.0 }
 0x2bc   : > { %v1291_v61 = vpop.f32.mrf.mxu1 }
 0x2bd   : > { %v1380_v1 = vpop.f32.mrf.mxu0  ;;  %v1292_v2 = vadd.f32 %v1291_v61, %v1190_v33  ;;  %v1588_v3 = vmul.f32 0.01, %v1377_v60  ;;  %vm1572_vm7 = vcmp.ge.f32.partialorder %v1377_v60, 0.0  ;;  %v1603_v6 = vsel %vm1571_vm6, %v1375_v52, %v1587_v55 }
 0x2be   : > { %v1293_v4 = vpop.f32.mrf.mxu1 }
 0x2bf   : > { %v1382_v5 = vpop.f32.mrf.mxu0  ;;  %v1294_v7 = vadd.f32 %v1293_v4, %v1194_v46  ;;  %v1381_v8 = vadd.f32 %v1380_v1, %v1292_v2  ;;  %v1604_v9 = vsel %vm1572_vm7, %v1377_v60, %v1588_v3  ;;  %v1968_v3 = vld [vmem:[#allocation7 + $0xf8] sm:$0xff] }
 0x2c0   : > { %1827 = vmatprep.mubr.f32.mxu1 %v1604_v9  ;;  %v1952_v4 = vld [vmem:[#allocation7 + $0x78] sm:$0xff]  ;;  %2313 = vmatprep.subr.mxu1 %v1968_v3  ;;  %v1965_v9 = vld [vmem:[#allocation7 + $0xe0] sm:$0xff] }
 0x2c1   : > { %v1591_v10 = vmul.f32 0.01, %v1381_v8  ;;  %v1383_v11 = vadd.f32 %v1382_v5, %v1294_v7  ;;  %1828 = vmatmul.mubr.f32.gmra.mxu1 %v1603_v6  ;;  %vm1575_vm8 = vcmp.ge.f32.partialorder %v1381_v8, 0.0  ;;  %v1967_v5 = vld [vmem:[#allocation7 + $0xf0] sm:$0xff]  ;;  %v1966_v7 = vld [vmem:[#allocation7 + $0xe8] sm:$0xff] }
 0x2c2   : > { %v1951_v6 = vld [vmem:[#allocation7 + $0x70] sm:$0xff]  ;;  %2314 = vmatpush3.msra.mxu1 %v1952_v4 }
 0x2c3   : > { %v1592_v14 = vmul.f32 0.01, %v1383_v11  ;;  %vm1576_vm9 = vcmp.ge.f32.partialorder %v1383_v11, 0.0  ;;  %v1607_v15 = vsel %vm1575_vm8, %v1381_v8, %v1591_v10  ;;  %2315 = vmatprep.subr.mxu1 %v1967_v5  ;;  %v1950_v8 = vld [vmem:[#allocation7 + $0x68] sm:$0xff]  ;;  %v1949_v10 = vld [vmem:[#allocation7 + $0x60] sm:$0xff] }
 0x2c4   : > { %2316 = vmatpush3.msra.mxu1 %v1951_v6 }
 0x2c5   : > { %v1608_v16 = vsel %vm1576_vm9, %v1383_v11, %v1592_v14  ;;  %2317 = vmatprep.subr.mxu1 %v1966_v7  ;;  %v1964_v11 = vld [vmem:[#allocation7 + $0xd8] sm:$0xff] }
 0x2c6   : > { %1833 = vmatprep.mubr.f32.mxu1 %v1608_v16  ;;  %2318 = vmatpush3.msra.mxu1 %v1950_v8  ;;  %v1948_v14 = vld [vmem:[#allocation7 + $0x58] sm:$0xff]  ;;  %v1947_v16 = vld [vmem:[#allocation7 + $0x50] sm:$0xff] }
 0x2c7   : > { %1834 = vmatmul.mubr.f32.gmra.mxu1 %v1607_v15  ;;  %2319 = vmatprep.subr.mxu1 %v1965_v9  ;;  %v1963_v15 = vld [vmem:[#allocation7 + $0xd0] sm:$0xff] }
 0x2c8   : > { %2320 = vmatpush3.msra.mxu1 %v1949_v10 }
 0x2c9   : > { %2321 = vmatprep.subr.mxu1 %v1964_v11 }
 0x2ca   : > { %2322 = vmatpush3.msra.mxu1 %v1948_v14 }
 0x2cb   : > { %2323 = vmatprep.subr.mxu1 %v1963_v15 }
 0x2cc   : > { %2324 = vmatpush3.msra.mxu1 %v1947_v16 }
 0x2f1   : > { %v1451_v53 = vpop.f32.mrf.mxu1 }
 0x2f2   : > { %v1540_v62 = vpop.f32.mrf.mxu0  ;;  %v1452_v12 = vadd.f32 %v1451_v53, %v1198_v17  ;;  %v1961_v53 = vld [vmem:[#allocation7 + $0xc0] sm:$0xff] }
 0x2f3   : > { %v1453_v13 = vpop.f32.mrf.mxu1 }
 0x2f4   : > { %v1542_v18 = vpop.f32.mrf.mxu0  ;;  %v1541_v19 = vadd.f32 %v1540_v62, %v1452_v12  ;;  %v1454_v33 = vadd.f32 %v1453_v13, %v1202_v20  ;;  %v1945_v62 = vld [vmem:[#allocation7 + $0x40] sm:$0xff]  ;;  %v1960_v12 = vld [vmem:[#allocation7 + $0xb8] sm:$0xff] }
 0x2f5   : > { %v1457_v46 = vpop.f32.mrf.mxu1  ;;  %v1944_v13 = vld [vmem:[#allocation7 + $0x38] sm:$0xff] }
 0x2f6   : > { %v1546_v29 = vpop.f32.mrf.mxu0  ;;  %v1543_v57 = vadd.f32 %v1542_v18, %v1454_v33  ;;  %v1458_v56 = vadd.f32 %v1457_v46, %v1198_v17  ;;  %v1581_v59 = vmul.f32 0.01, %v1541_v19  ;;  %vm1565_vm10 = vcmp.ge.f32.partialorder %v1541_v19, 0.0  ;;  %v1959_v18 = vld [vmem:[#allocation7 + $0xb0] sm:$0xff]  ;;  %v1958_v33 = vld [vmem:[#allocation7 + $0xa8] sm:$0xff] }
 0x2f7   : > { %v1459_v21 = vpop.f32.mrf.mxu1  ;;  %v1942_v46 = vld [vmem:[#allocation7 + $0x28] sm:$0xff] }
 0x2f8   : > { %v1548_v58 = vpop.f32.mrf.mxu0  ;;  %v1582_v24 = vmul.f32 0.01, %v1543_v57  ;;  %v1547_v25 = vadd.f32 %v1546_v29, %v1458_v56  ;;  %v1460_v22 = vadd.f32 %v1459_v21, %v1202_v20  ;;  %vm1566_vm11 = vcmp.ge.f32.partialorder %v1543_v57, 0.0  ;;  %v1957_v29 = vld [vmem:[#allocation7 + $0xa0] sm:$0xff]  ;;  %v1956_v56 = vld [vmem:[#allocation7 + $0x98] sm:$0xff]  ;;  %v1955_v21 = vld [vmem:[#allocation7 + $0x90] sm:$0xff] }
 0x2f9   : > { %v1463_v30 = vpop.f32.mrf.mxu1  ;;  %v1597_v31 = vsel %vm1565_vm10, %v1541_v19, %v1581_v59  ;;  %v1943_v19 = vld [vmem:[#allocation7 + $0x30] sm:$0xff]  ;;  %v1940_v59 = vld [vmem:[#allocation7 + $0x18] sm:$0xff] }
 0x2fa   : > { %v1552_v27 = vpop.f32.mrf.mxu0  ;;  %v1549_v32 = vadd.f32 %v1548_v58, %v1460_v22  ;;  %v1464_v63 = vadd.f32 %v1463_v30, %v1198_v17  ;;  %v1598_v0 = vsel %vm1566_vm11, %v1543_v57, %v1582_v24  ;;  %v1585_v34 = vmul.f32 0.01, %v1547_v25  ;;  %v1941_v57 = vld [vmem:[#allocation7 + $0x20] sm:$0xff]  ;;  %v1939_v58 = vld [vmem:[#allocation7 + $0x10] sm:$0xff]  ;;  %v1954_v24 = vld [vmem:[#allocation7 + $0x88] sm:$0xff] }
 0x2fb   : > { %v1465_v35 = vpop.f32.mrf.mxu1  ;;  %1904 = vmatprep.mubr.f32.mxu0 %v1598_v0  ;;  %vm1569_vm12 = vcmp.ge.f32.partialorder %v1547_v25, 0.0  ;;  %v1953_v22 = vld [vmem:[#allocation7 + $0x80] sm:$0xff] }
 0x2fc   : > { %v1554_v36 = vpop.f32.mrf.mxu0  ;;  %v1586_v37 = vmul.f32 0.01, %v1549_v32  ;;  %v1553_v38 = vadd.f32 %v1552_v27, %v1464_v63  ;;  %v1466_v39 = vadd.f32 %v1465_v35, %v1202_v20  ;;  %1905 = vmatmul.mubr.f32.vlgmr.msra.gmra.mxu0 %v1597_v31  ;;  %vm1570_vm13 = vcmp.ge.f32.partialorder %v1549_v32, 0.0  ;;  %v1937_v30 = vld [vmem:[#allocation7] sm:$0xff]  ;;  %v2088_v27 = vld [vmem:[%s3033_s11 + $0x78] sm:$0xff]  ;;  %v2086_v63 = vld [vmem:[%s3033_s11 + $0x68] sm:$0xff] }
 0x2fd   : > { %v1469_v40 = vpop.f32.mrf.mxu1  ;;  %v1601_v47 = vsel %vm1569_vm12, %v1547_v25, %v1585_v34  ;;  %v1938_v25 = vld [vmem:[#allocation7 + $0x8] sm:$0xff]  ;;  %2385 = vmatprep.subr.mxu0 %v2088_v27  ;;  %v2085_v0 = vld [vmem:[%s3033_s11 + $0x60] sm:$0xff]  ;;  %v2084_v31 = vld [vmem:[%s3033_s11 + $0x58] sm:$0xff] }
 0x2fe   : > { %v1558_v41 = vpop.f32.mrf.mxu0  ;;  %v1555_v42 = vadd.f32 %v1554_v36, %v1466_v39  ;;  %v1470_v28 = vadd.f32 %v1469_v40, %v1198_v17  ;;  %v1602_v43 = vsel %vm1570_vm13, %v1549_v32, %v1586_v37  ;;  %v1589_v44 = vmul.f32 0.01, %v1553_v38  ;;  %v1962_v17 = vld [vmem:[#allocation7 + $0xc8] sm:$0xff]  ;;  %v2087_v32 = vld [vmem:[%s3033_s11 + $0x70] sm:$0xff]  ;;  %2386 = vmatpush3.msra.mxu0 %v2088_v27  ;;  %v2081_v36 = vld [vmem:[%s3033_s11 + $0x40] sm:$0xff] }
 0x2ff   : > { %v1471_v45 = vpop.f32.mrf.mxu1  ;;  %1910 = vmatprep.mubr.f32.mxu0 %v1602_v43  ;;  %vm1573_vm14 = vcmp.ge.f32.partialorder %v1553_v38, 0.0  ;;  %2325 = vmatprep.subr.mxu1 %v1962_v17  ;;  %v2083_v34 = vld [vmem:[%s3033_s11 + $0x50] sm:$0xff]  ;;  %v2082_v35 = vld [vmem:[%s3033_s11 + $0x48] sm:$0xff]  ;;  %v2080_v37 = vld [vmem:[%s3033_s11 + $0x38] sm:$0xff] }
 0x300   : > { %v1590_v48 = vmul.f32 0.01, %v1555_v42  ;;  %v1559_v49 = vadd.f32 %v1558_v41, %v1470_v28  ;;  %v1472_v50 = vadd.f32 %v1471_v45, %v1202_v20  ;;  %1911 = vmatmul.mubr.f32.gmra.mxu0 %v1601_v47  ;;  %vm1574_vm15 = vcmp.ge.f32.partialorder %v1555_v42, 0.0  ;;  %v1560_v51 = vpop.f32.mrf.mxu0  ;;  %v1946_v20 = vld [vmem:[#allocation7 + $0x48] sm:$0xff]  ;;  %2387 = vmatprep.subr.mxu0 %v2087_v32  ;;  %v1739_v41 = vld [vmem:[%s3030_s8] sm:$0x3] }
 0x301   : > { %v1605_v60 = vsel %vm1573_vm14, %v1553_v38, %v1589_v44  ;;  %2326 = vmatpush3.msra.mxu1 %v1946_v20  ;;  %2388 = vmatpush3.msra.mxu0 %v2087_v32  ;;  %v1748_v43 = vrot.slane %v1739_v41, %v2826_v26 }
 0x302   : > { %v1561_v52 = vadd.f32 %v1560_v51, %v1472_v50  ;;  %v1606_v54 = vsel %vm1574_vm15, %v1555_v42, %v1590_v48  ;;  %v1593_v55 = vmul.f32 0.01, %v1559_v49  ;;  %vm1577_vm2 = vcmp.ge.f32.partialorder %v1559_v49, 0.0  ;;  %2327 = vmatprep.subr.mxu1 %v1961_v53  ;;  %2389 = vmatprep.subr.mxu0 %v2086_v63 }
 0x303   : > { %1916 = vmatprep.mubr.f32.mxu0 %v1606_v54  ;;  %2328 = vmatpush3.msra.mxu1 %v1945_v62  ;;  %v1744_v42 = vrot.slane %v1739_v41, %v2819_v23 }
 0x304   : > { %v1594_v61 = vmul.f32 0.01, %v1561_v52  ;;  %1917 = vmatmul.mubr.f32.gmra.mxu0 %v1605_v60  ;;  %vm1578_vm1 = vcmp.ge.f32.partialorder %v1561_v52, 0.0  ;;  %v1609_v2 = vsel %vm1577_vm2, %v1559_v49, %v1593_v55  ;;  %2329 = vmatprep.subr.mxu1 %v1960_v12 }
 0x305   : > { %2330 = vmatpush3.msra.mxu1 %v1944_v13  ;;  %2390 = vmatpush3.msra.mxu0 %v2086_v63 }
 0x306   : > { %v1610_v1 = vsel %vm1578_vm1, %v1561_v52, %v1594_v61  ;;  %2331 = vmatprep.subr.mxu1 %v1959_v18  ;;  %2391 = vmatprep.subr.mxu0 %v2085_v0 }
 0x307   : > { %1922 = vmatprep.mubr.f32.mxu0 %v1610_v1  ;;  %2332 = vmatpush3.msra.mxu1 %v1943_v19 }
 0x308   : > { %1923 = vmatmul.mubr.f32.gmra.mxu0 %v1609_v2  ;;  %2333 = vmatprep.subr.mxu1 %v1958_v33  ;;  %v2079_v33 = vld [vmem:[%s3033_s11 + $0x30] sm:$0xff] }
 0x309   : > { %2334 = vmatpush3.msra.mxu1 %v1942_v46  ;;  %2392 = vmatpush3.msra.mxu0 %v2085_v0  ;;  %v2078_v46 = vld [vmem:[%s3033_s11 + $0x28] sm:$0xff] }
 0x30a   : > { %2335 = vmatprep.subr.mxu1 %v1957_v29  ;;  %2393 = vmatprep.subr.mxu0 %v2084_v31  ;;  %v2077_v29 = vld [vmem:[%s3033_s11 + $0x20] sm:$0xff] }
 0x30b   : > { %2336 = vmatpush3.msra.mxu1 %v1941_v57  ;;  %2394 = vmatpush3.msra.mxu0 %v2084_v31  ;;  %v2076_v57 = vld [vmem:[%s3033_s11 + $0x18] sm:$0xff] }
 0x30c   : > { %2337 = vmatprep.subr.mxu1 %v1956_v56  ;;  %2395 = vmatprep.subr.mxu0 %v2083_v34  ;;  %v2075_v56 = vld [vmem:[%s3033_s11 + $0x10] sm:$0xff] }
 0x30d   : > { %2338 = vmatpush3.msra.mxu1 %v1940_v59  ;;  %2396 = vmatpush3.msra.mxu0 %v2083_v34  ;;  %v2074_v59 = vld [vmem:[%s3033_s11 + $0x8] sm:$0xff] }
 0x30e   : > { %2339 = vmatprep.subr.mxu1 %v1955_v21  ;;  %2397 = vmatprep.subr.mxu0 %v2082_v35  ;;  %v2073_v21 = vld [vmem:[%s3033_s11] sm:$0xff] }
 0x30f   : > { %2340 = vmatpush3.msra.mxu1 %v1939_v58  ;;  %2398 = vmatpush3.msra.mxu0 %v2082_v35 }
 0x310   : > { %2341 = vmatprep.subr.mxu1 %v1954_v24  ;;  %2399 = vmatprep.subr.mxu0 %v2081_v36  ;;  %v2304_v24 = vld [vmem:[%s3032_s10] ss:$0 sm:$0xff] }
 0x311   : > { %2342 = vmatpush3.msra.mxu1 %v1938_v25  ;;  %2400 = vmatpush3.msra.mxu0 %v2081_v36 }
 0x312   : > { %2343 = vmatprep.subr.mxu1 %v1953_v22  ;;  %2401 = vmatprep.subr.mxu0 %v2080_v37 }
 0x313   : > { %2344 = vmatpush3.msra.mxu1 %v1937_v30  ;;  %2402 = vmatpush3.msra.mxu0 %v2080_v37 }
 0x314   : > { %2403 = vmatprep.subr.mxu0 %v2079_v33 }
 0x315   : > { %2404 = vmatpush3.msra.mxu0 %v2079_v33 }
 0x316   : > { %2405 = vmatprep.subr.mxu0 %v2078_v46 }
 0x317   : > { %2406 = vmatpush3.msra.mxu0 %v2078_v46 }
 0x318   : > { %2407 = vmatprep.subr.mxu0 %v2077_v29 }
 0x319   : > { %2408 = vmatpush3.msra.mxu0 %v2077_v29 }
 0x31a   : > { %2409 = vmatprep.subr.mxu0 %v2076_v57 }
 0x31b   : > { %2410 = vmatpush3.msra.mxu0 %v2076_v57 }
 0x31c   : > { %2411 = vmatprep.subr.mxu0 %v2075_v56 }
 0x31d   : > { %2412 = vmatpush3.msra.mxu0 %v2075_v56 }
 0x31e   : > { %2413 = vmatprep.subr.mxu0 %v2074_v59 }
 0x31f   : > { %2414 = vmatpush3.msra.mxu0 %v2074_v59 }
 0x320   : > { %2415 = vmatprep.subr.mxu0 %v2073_v21 }
 0x321   : > { %2416 = vmatpush3.msra.mxu0 %v2073_v21 }
 0x375   : > { %v1817_v38 = vpop.f32.mrf.mxu1 }
 0x376   : > { %v1818_v45 = vadd.f32 %v1817_v38, %v1744_v42 }
 0x377   : > { %v1819_v39 = vpop.f32.mrf.mxu1 }
 0x378   : > { %v1820_v48 = vadd.f32 %v1819_v39, %v1748_v43 }
 0x37b   : > { %v1823_v40 = vpop.f32.mrf.mxu1 }
 0x37c   : > { %v1824_v54 = vadd.f32 %v1823_v40, %v1744_v42 }
 0x37d   : > { %v1825_v28 = vpop.f32.mrf.mxu1 }
 0x37e   : > { %v1826_v60 = vadd.f32 %v1825_v28, %v1748_v43 }
 0x381   : > { %v1829_v44 = vpop.f32.mrf.mxu1 }
 0x382   : > { %v1830_v3 = vadd.f32 %v1829_v44, %v1744_v42 }
 0x383   : > { %v1831_v49 = vpop.f32.mrf.mxu1 }
 0x384   : > { %v1832_v26 = vadd.f32 %v1831_v49, %v1748_v43 }
 0x387   : > { %v1835_v61 = vpop.f32.mrf.mxu1 }
 0x388   : > { %v1836_v9 = vadd.f32 %v1835_v61, %v1744_v42 }
 0x389   : > { %v1837_v5 = vpop.f32.mrf.mxu1 }
 0x38a   : > { %v1838_v11 = vadd.f32 %v1837_v5, %v1748_v43 }
 0x3bc   : > { %v1906_v47 = vpop.f32.mrf.mxu0 }
 0x3bd   : > { %v1907_v50 = vadd.f32 %v1906_v47, %v1818_v45 }
 0x3be   : > { %v1908_v51 = vpop.f32.mrf.mxu0 }
 0x3bf   : > { %v1909_v52 = vadd.f32 %v1908_v51, %v1820_v48 }
 0x3c0   : > { %v1912_v55 = vpop.f32.mrf.mxu0 }
 0x3c1   : > { %2487 = vtanh.f32 %v1909_v52  ;;  %v1913_v1 = vadd.f32 %v1912_v55, %v1824_v54 }
 0x3c2   : > { %2489 = vtanh.f32 %v1907_v50  ;;  %v1914_v2 = vpop.f32.mrf.mxu0  ;;  %v2305_v50 = vld [vmem:[%s3034_s12] ss:$0 sm:$0xff] }
 0x3c3   : > { %v1915_v23 = vadd.f32 %v1914_v2, %v1826_v60 }
 0x3c4   : > { %v1918_v4 = vpop.f32.mrf.mxu0 }
 0x3c5   : > { %2491 = vtanh.f32 %v1915_v23  ;;  %v1919_v6 = vadd.f32 %v1918_v4, %v1830_v3 }
 0x3c6   : > { %2493 = vtanh.f32 %v1913_v1  ;;  %v1920_v7 = vpop.f32.mrf.mxu0 }
 0x3c7   : > { %v1921_v8 = vadd.f32 %v1920_v7, %v1832_v26 }
 0x3c8   : > { %v1924_v10 = vpop.f32.mrf.mxu0 }
 0x3c9   : > { %2495 = vtanh.f32 %v1921_v8  ;;  %v1925_v14 = vadd.f32 %v1924_v10, %v1836_v9 }
 0x3ca   : > { %2497 = vtanh.f32 %v1919_v6  ;;  %v1926_v15 = vpop.f32.mrf.mxu0 }
 0x3cb   : > { %v1927_v16 = vadd.f32 %v1926_v15, %v1838_v11 }
 0x3cd   : > { %2499 = vtanh.f32 %v1927_v16 }
 0x3ce   : > { %v2488_v17 = vpop.eup %2487  ;;  %2501 = vtanh.f32 %v1925_v14 }
 0x3cf   : > { %v2490_v20 = vpop.eup %2489  ;;  %2040 = vmatprep.mubr.f32.mxu1 %v2488_v17 }
 0x3d0   : > { %2041 = vmatmul.mubr.f32.vlgmr.msra.gmra.mxu1 %v2490_v20 }
 0x3d2   : > { %v2492_v53 = vpop.eup %2491 }
 0x3d3   : > { %v2494_v62 = vpop.eup %2493  ;;  %2045 = vmatprep.mubr.f32.mxu1 %v2492_v53 }
 0x3d4   : > { %2046 = vmatmul.mubr.f32.gmra.mxu1 %v2494_v62 }
 0x3d6   : > { %v2496_v12 = vpop.eup %2495 }
 0x3d7   : > { %v2498_v13 = vpop.eup %2497  ;;  %2050 = vmatprep.mubr.f32.mxu1 %v2496_v12 }
 0x3d8   : > { %2051 = vmatmul.mubr.f32.gmra.mxu1 %v2498_v13 }
 0x3da   : > { %v2500_v18 = vpop.eup %2499 }
 0x3db   : > { %v2502_v19 = vpop.eup %2501  ;;  %2055 = vmatprep.mubr.f32.mxu1 %v2500_v18 }
 0x3dc   : > { %2056 = vmatmul.mubr.f32.gmra.mxu1 %v2502_v19 }
 0x490   : > { %v2345_v58 = vpop.f32.mrf.mxu1 }
 0x492   : > { %v2346_v25 = vpop.f32.mrf.mxu1 }
 0x493   : > { %v2347_v22 = vadd.f32 %v2346_v25, %v2345_v58 }
 0x494   : > { %v2348_v30 = vpop.f32.mrf.mxu1 }
 0x495   : > { %v2043_v27 = vadd.f32 %v2347_v22, %v2304_v24 }
 0x496   : > { %v2349_v32 = vpop.f32.mrf.mxu1 }
 0x497   : > { %v2350_v63 = vadd.f32 %v2349_v32, %v2348_v30  ;;  %vm2061_vm3 = vcmp.ge.f32.partialorder %v2043_v27, 0.0  ;;  %v2065_v0 = vmul.f32 0.01, %v2043_v27 }
 0x498   : > { %v2351_v31 = vpop.f32.mrf.mxu1 }
 0x499   : > { %v2048_v34 = vadd.f32 %v2350_v63, %v2304_v24  ;;  %v2069_v35 = vsel %vm2061_vm3, %v2043_v27, %v2065_v0 }
 0x49a   : > { %v2352_v36 = vpop.f32.mrf.mxu1  ;;  %2417 = vmatprep.mubr.f32.mxu0 %v2069_v35 }
 0x49b   : > { %vm2062_vm4 = vcmp.ge.f32.partialorder %v2048_v34, 0.0  ;;  %v2066_v37 = vmul.f32 0.01, %v2048_v34  ;;  %v2353_v38 = vadd.f32 %v2352_v36, %v2351_v31 }
 0x49c   : > { %v2354_v39 = vpop.f32.mrf.mxu1 }
 0x49d   : > { %v2053_v40 = vadd.f32 %v2353_v38, %v2304_v24  ;;  %v2070_v41 = vsel %vm2062_vm4, %v2048_v34, %v2066_v37 }
 0x49e   : > { %v2355_v42 = vpop.f32.mrf.mxu1  ;;  %2418 = vmatmul.mubr.f32.vlgmr.msra.gmra.mxu0 %v2070_v41 }
 0x49f   : > { %v2356_v28 = vadd.f32 %v2355_v42, %v2354_v39  ;;  %vm2063_vm5 = vcmp.ge.f32.partialorder %v2053_v40, 0.0  ;;  %v2067_v43 = vmul.f32 0.01, %v2053_v40 }
 0x4a1   : > { %v2058_v44 = vadd.f32 %v2356_v28, %v2304_v24  ;;  %v2071_v45 = vsel %vm2063_vm5, %v2053_v40, %v2067_v43 }
 0x4a2   : > { %2420 = vmatprep.mubr.f32.mxu0 %v2071_v45 }
 0x4a3   : > { %vm2064_vm6 = vcmp.ge.f32.partialorder %v2058_v44, 0.0  ;;  %v2068_v47 = vmul.f32 0.01, %v2058_v44 }
 0x4a5   : > { %v2072_v48 = vsel %vm2064_vm6, %v2058_v44, %v2068_v47 }
 0x4a6   : > { %2421 = vmatmul.mubr.f32.gmra.mxu0 %v2072_v48 }
 0x55e   : > { %v2419_v49 = vpop.f32.mrf.mxu0 }
 0x55f   : > { %v2168_v54 = vadd.f32 %v2419_v49, %v2305_v50 }
 0x560   : > { %v2162_v51 = vpop.f32.mrf.mxu0 }
 0x561   : > { %v2163_v52 = vadd.f32 %v2305_v50, %v2162_v51  ;;  %2182 = vst.msk [vmem:[%s501_s23 + $0x8] sm:$0xff] %vm515_vm0, %v2168_v54 }
 0x563   : > { %2181 = vst.msk [vmem:[%s501_s23] sm:$0xff] %vm515_vm0, %v2163_v52 }
 0x566   : > { %v2422_v55 = vpop.f32.mrf.mxu0 }
 0x567   : > { %v2178_v1 = vadd.f32 %v2422_v55, %v2305_v50 }
 0x568   : > { %v2172_v60 = vpop.f32.mrf.mxu0 }
 0x569   : > { %v2173_v61 = vadd.f32 %v2305_v50, %v2172_v60  ;;  %2184 = vst.msk [vmem:[%s501_s23 + $0x18] sm:$0xff] %vm515_vm0, %v2178_v1 }
 0x56b   : > { %2183 = vst.msk [vmem:[%s501_s23 + $0x10] sm:$0xff] %vm515_vm0, %v2173_v61 }
 0x56c PF: > { %s26_s25 = sadd.s32 1, %s2625_s25  }
 0x56d   : > { %p23_p2 = scmp.ge.s32.totalorder %s26_s25, 4  }
 0x56f   :  { %25 = sbr.rel (!%p23_p2) target bundleno = 3 (0x3), region = 119 }
 0x574   :  { %2207 = vsyncpa [#allocation3], 1 }
 0x575   :  { %2209 = vsyncpa [#allocation3 + $0x1], 1 }
 0x576   :  { %2210 = vsyncpa [#allocation5], 1 }
 0x577   :  { %2211 = vsyncpa [#allocation8], 1 }

// kernel: tpu_custom_call.1
= control target key start
LH: loop header
LB: loop body
LE: loop exit
PB: predicated region body
PF: predicated region fallthrough
CT: control target
= control target key end

     0   :  { %18 = vsyncpa [#allocation3], 0  ;;  %s3022_s0 = inlined_call_operand.vmem [shape: f32[64,8], index: 0, kind: input, shape index: {}]   ;;  %s3023_s1 = inlined_call_operand.vmem [shape: f32[8,128], index: 1, kind: input, shape index: {}]   ;;  %s3024_s2 = inlined_call_operand.vmem [shape: f32[1,128], index: 2, kind: input, shape index: {}]   ;;  %s3025_s3 = inlined_call_operand.hbm [shape: f32[128,512], index: 3, kind: input, shape index: {}]   ;;  %s3026_s4 = inlined_call_operand.vmem [shape: f32[1,512], index: 4, kind: input, shape index: {}]   ;;  %s3027_s5 = inlined_call_operand.hbm [shape: f32[512,512], index: 5, kind: input, shape index: {}]   ;;  %s3028_s6 = inlined_call_operand.vmem [shape: f32[1,512], index: 6, kind: input, shape index: {}]   ;;  %s3029_s7 = inlined_call_operand.hbm [shape: f32[512,256], index: 7, kind: input, shape index: {}]   ;;  %s3030_s8 = inlined_call_operand.vmem [shape: f32[1,256], index: 8, kind: input, shape index: {}]   ;;  %s3031_s9 = inlined_call_operand.hbm [shape: f32[256,128], index: 9, kind: input, shape index: {}]   ;;  %s3032_s10 = inlined_call_operand.vmem [shape: f32[1,128], index: 10, kind: input, shape index: {}]   ;;  %s3033_s11 = inlined_call_operand.vmem [shape: f32[128,8], index: 11, kind: input, shape index: {}]   ;;  %s3034_s12 = inlined_call_operand.vmem [shape: f32[1,8], index: 12, kind: input, shape index: {}]   ;;  %s3035_s13 = inlined_call_operand.vmem [shape: f32[64,8], index: 13, kind: output, shape index: {}]  }
   0x1   :  { %19 = vsyncpa [#allocation5], 0 }
   0x2   :  { %20 = vsyncpa [#allocation8], 0  ;;  %s2708_s25 = smov 0  }
   0x3 LB: > { %s2282_s26 = sadd.s32 4294967295, %s2625_s25   ;;  %p2284_p0 = scmp.ge.s32.totalorder %s2625_s25, 1  ;;  %s2625_s25 = sphi %s2708_s25, %s26_s25  }
   0x4   : > { %p335_p1 = scmp.lt.s32.totalorder %s2625_s25, 3  ;;  %p2718_p2 = scmp.eq.s32.totalorder %s2282_s26, 0 }
   0x5   : > { %s2627_s29 = smov [#allocation4]   ;;  %s2628_s14 = smov [#allocation2]  }
   0x6   : > { %p2722_p3 = pnand %p2284_p0, %p335_p1  ;;  %s369_s30 = sshll.u32 %s2627_s29, 4  ;;  %s370_s30 = int_to_ptr.vmem [resolvable:$true] %s369_s30 }
   0x7   : > { %s353_s15 = sshll.u32 %s2628_s14, 4  ;;  %s2629_s17 = smov [#allocation6]   ;;  %s2728_s15 = int_to_ptr.vmem [resolvable:$true] %s353_s15 }
   0x8   : > { %p2439_p4 = pneg %p2722_p3  ;;  %s385_s18 = sshll.u32 %s2629_s17, 4  ;;  %s2736_s18 = int_to_ptr.vmem [resolvable:$true] %s385_s18 }
   0x9   : > { %s2514_s19 = scalar_lea.vmem %s370_s30, 32768  ;;  %p2522_p10 = scmp.lt.s32.totalorder %s370_s30, %s370_s30 }
   0xa   : > { %p2732_p5 = pnand %p2718_p2, %p2439_p4  ;;  %p2515_p7 = scmp.ne.s32.totalorder %s370_s30, %s2514_s19 }
   0xb   : > { %p2523_p11 = scmp.lt.s32.totalorder %s2514_s19, %s2514_s19 }
   0xc   : > { %p2505_p6 = pneg %p2732_p5 }
   0xd   : > { %p2524_p12 = por %p2523_p11, %p2522_p10 }
   0xe   : > { %p2517_p8 = pnand %p2515_p7, %p2505_p6 }
  0x10   : > { %p2518_p9 = pneg %p2517_p8 }
  0x12   : > { %p2525_p13 = pnand %p2524_p12, %p2518_p9 }
  0x14   : > { %2528 = shalt.err (!%p2525_p13)
}
  0x15   : > { %s2630_s20 = smov 512   ;;  %s2631_s21 = smov 32  }
  0x16   : > { %2445 = dma.hbm_to_vmem [thread:$0]  (!%p2732_p5), %s3027_s5, 32768, %s370_s30, [#allocation5], %s2630_s20, %s2630_s20, %s2631_s21  }
  0x17   : > { %s2540_s24 = scalar_lea.vmem %s2728_s15, 8192  ;;  %p2548_p7 = scmp.lt.s32.totalorder %s2728_s15, %s2728_s15 }
  0x18   : > { %p2541_p0 = scmp.ne.s32.totalorder %s2728_s15, %s2540_s24  ;;  %p2549_p8 = scmp.lt.s32.totalorder %s2540_s24, %s2540_s24 }
  0x1a   : > { %p2543_p1 = pnand %p2541_p0, %p2505_p6  ;;  %p2550_p9 = por %p2549_p8, %p2548_p7 }
  0x1c   : > { %p2544_p4 = pneg %p2543_p1 }
  0x1e   : > { %p2551_p10 = pnand %p2550_p9, %p2544_p4 }
  0x20   : > { %2554 = shalt.err (!%p2551_p10)
}
  0x21   : > { %2442 = dma.hbm_to_vmem [thread:$0]  (!%p2732_p5), %s3025_s3, 8192, %s2728_s15, [#allocation3], %s2630_s20, %s2630_s20, %s2631_s21  }
  0x22   : > { %s2566_s30 = scalar_lea.vmem %s2736_s18, 16384  ;;  %p2574_p0 = scmp.lt.s32.totalorder %s2736_s18, %s2736_s18 }
  0x23   : > { %p2567_p11 = scmp.ne.s32.totalorder %s2736_s18, %s2566_s30  ;;  %p2575_p1 = scmp.lt.s32.totalorder %s2566_s30, %s2566_s30 }
  0x25   : > { %p2569_p12 = pnand %p2567_p11, %p2505_p6  ;;  %p2576_p4 = por %p2575_p1, %p2574_p0 }
  0x27   : > { %p2570_p13 = pneg %p2569_p12 }
  0x29   : > { %p2577_p7 = pnand %p2576_p4, %p2570_p13 }
  0x2b   : > { %2580 = shalt.err (!%p2577_p7)
}
  0x2c   : > { %s2632_s17 = smov 256   ;;  %s2633_s19 = smov 16  }
  0x2d   : > { %2448 = dma.hbm_to_vmem [thread:$0]  (!%p2732_p5), %s3029_s7, 16384, %s2736_s18, [#allocation5], %s2632_s17, %s2632_s17, %s2633_s19  }
  0x2e   : > { %s2634_s20 = smov [#allocation7]  }
  0x2f   : > { %s401_s21 = sshll.u32 %s2634_s20, 4  ;;  %s402_s21 = int_to_ptr.vmem [resolvable:$true] %s401_s21 }
  0x30   : > { %s2592_s23 = scalar_lea.vmem %s402_s21, 4096  ;;  %p2600_p11 = scmp.lt.s32.totalorder %s402_s21, %s402_s21 }
  0x31   : > { %p2593_p8 = scmp.ne.s32.totalorder %s402_s21, %s2592_s23  ;;  %p2601_p12 = scmp.lt.s32.totalorder %s2592_s23, %s2592_s23 }
  0x33   : > { %p2595_p9 = pnand %p2593_p8, %p2505_p6  ;;  %p2602_p13 = por %p2601_p12, %p2600_p11 }
  0x35   : > { %p2596_p10 = pneg %p2595_p9 }
  0x37   : > { %p2603_p0 = pnand %p2602_p13, %p2596_p10 }
  0x39   : > { %2606 = shalt.err (!%p2603_p0)
}
  0x3a   : > { %s2635_s24 = smov 128   ;;  %s2636_s29 = smov 8  }
  0x3b   : > { %2451 = dma.hbm_to_vmem [thread:$0]  (!%p2732_p5), %s3031_s9, 4096, %s402_s21, [#allocation8], %s2635_s24, %s2635_s24, %s2636_s29  }
  0x3c   : > { %435 = sbr.rel (%p2722_p3) target bundleno = 1388 (0x56c), region = 72 }
  0x41   : > { %2612 = dma.done.wait (%p2718_p2), [#allocation3], 8192  }
  0x42   : > { %2614 = vsyncadd (%p2718_p2), [#allocation3], 4294959104 }
  0x43   : > { %2616 = dma.done.wait (%p2718_p2), [#allocation5], 49152  }
  0x44   : > { %2618 = vsyncadd (%p2718_p2), [#allocation5], 4294918144 }
  0x45   : > { %2620 = dma.done.wait (%p2718_p2), [#allocation8], 4096  }
  0x46   : > { %2622 = vsyncadd (%p2718_p2), [#allocation8], 4294963200  ;;  %s2295_s28 = sshll.u32 %s2282_s26, 2  ;;  %vm515_vm0 = vcmask 64512   ;;  %v507_v0 = vld [vmem:[%s3023_s1] sm:$0xff]  ;;  %v678_v4 = vld [vmem:[#allocation2 + $0x1e8] sm:$0xff] }
  0x47   : > { %p492_p3 = scmp.lt.s32.totalorder %s2295_s28, 7  ;;  %2377 = vmatprep.subr.mxu0 %v507_v0  ;;  %703 = vmatprep.subr.mxu1 %v678_v4  ;;  %v680_v5 = vld [vmem:[#allocation2 + $0x1f8] sm:$0xff]  ;;  %v677_v6 = vld [vmem:[#allocation2 + $0x1e0] sm:$0xff]  ;;  %v679_v7 = vld [vmem:[#allocation2 + $0x1f0] sm:$0xff] }
  0x48   : > { %2378 = vmatpush3.msra.mxu0 %v507_v0  ;;  %v674_v8 = vld [vmem:[#allocation2 + $0x1c8] sm:$0xff]  ;;  %v676_v9 = vld [vmem:[#allocation2 + $0x1d8] sm:$0xff]  ;;  %v673_v10 = vld [vmem:[#allocation2 + $0x1c0] sm:$0xff]  ;;  %704 = vmatpush1.msra.mxu1 %v677_v6 }
  0x49   : > { %s3040_s28 = smov (!%p492_p3, %s2295_s28), 7  ;;  %792 = vmatprep.subr.mxu0 %v680_v5  ;;  %v670_v12 = vld [vmem:[#allocation2 + $0x1a8] sm:$0xff]  ;;  %705 = vmatprep.subr.mxu1 %v674_v8  ;;  %v675_v13 = vld [vmem:[#allocation2 + $0x1d0] sm:$0xff]  ;;  %v669_v14 = vld [vmem:[#allocation2 + $0x1a0] sm:$0xff]  ;;  %v2637_v5 = vmov 0.0  }
  0x4a   : > { %s2296_s16 = sshll.u32 %s3040_s28, 3  ;;  %706 = vmatpush1.msra.mxu1 %v673_v10  ;;  %v672_v15 = vld [vmem:[#allocation2 + $0x1b8] sm:$0xff]  ;;  %v666_v16 = vld [vmem:[#allocation2 + $0x188] sm:$0xff]  ;;  %v671_v17 = vld [vmem:[#allocation2 + $0x1b0] sm:$0xff]  ;;  %767 = vmatprep.mubr.f32.mxu1 %v2637_v5 }
  0x4b   : > { %s495_s19 = scalar_lea.vmem %s3022_s0, %s2296_s16  ;;  %707 = vmatprep.subr.mxu1 %v670_v12  ;;  %v665_v18 = vld [vmem:[#allocation2 + $0x180] sm:$0xff]  ;;  %v668_v19 = vld [vmem:[#allocation2 + $0x198] sm:$0xff]  ;;  %v662_v20 = vld [vmem:[#allocation2 + $0x168] sm:$0xff]  ;;  %s501_s23 = scalar_lea.vmem %s3035_s13, %s2296_s16 }
  0x4c   : > { %v503_v1 = vld [vmem:[%s495_s19] sm:$0xff]  ;;  %v504_v2 = vld [vmem:[%s495_s19 + $0x8] sm:$0xff]  ;;  %v505_v3 = vld [vmem:[%s495_s19 + $0x10] sm:$0xff]  ;;  %708 = vmatpush1.msra.mxu1 %v669_v14 }
  0x4d   : > { %2379 = vmatprep.mubr.msk.f32.mxu0 %vm515_vm0, %v503_v1  ;;  %v506_v11 = vld [vmem:[%s495_s19 + $0x18] sm:$0xff]  ;;  %709 = vmatprep.subr.mxu1 %v666_v16  ;;  %v667_v21 = vld [vmem:[#allocation2 + $0x190] sm:$0xff]  ;;  %v661_v22 = vld [vmem:[#allocation2 + $0x160] sm:$0xff] }
  0x4e   : > { %2380 = vmatmul.mubr.msk.f32.vlgmr.msra.gmra.mxu0 %vm515_vm0, %v504_v2  ;;  %710 = vmatpush1.msra.mxu1 %v665_v18  ;;  %v664_v23 = vld [vmem:[#allocation2 + $0x178] sm:$0xff]  ;;  %v658_v24 = vld [vmem:[#allocation2 + $0x148] sm:$0xff]  ;;  %v663_v25 = vld [vmem:[#allocation2 + $0x170] sm:$0xff] }
  0x4f   : > { %2382 = vmatprep.mubr.msk.f32.mxu0 %vm515_vm0, %v505_v3  ;;  %793 = vmatpush1.msra.mxu0 %v679_v7  ;;  %v657_v26 = vld [vmem:[#allocation2 + $0x140] sm:$0xff]  ;;  %v660_v27 = vld [vmem:[#allocation2 + $0x158] sm:$0xff]  ;;  %v654_v28 = vld [vmem:[#allocation2 + $0x128] sm:$0xff] }
  0x50   : > { %794 = vmatprep.subr.mxu0 %v676_v9  ;;  %711 = vmatprep.subr.mxu1 %v662_v20  ;;  %v659_v29 = vld [vmem:[#allocation2 + $0x150] sm:$0xff]  ;;  %v656_v30 = vld [vmem:[#allocation2 + $0x138] sm:$0xff]  ;;  %v653_v31 = vld [vmem:[#allocation2 + $0x120] sm:$0xff] }
  0x51   : > { %795 = vmatpush1.msra.mxu0 %v675_v13  ;;  %712 = vmatpush1.msra.mxu1 %v661_v22  ;;  %v655_v32 = vld [vmem:[#allocation2 + $0x130] sm:$0xff]  ;;  %v650_v33 = vld [vmem:[#allocation2 + $0x108] sm:$0xff]  ;;  %v652_v34 = vld [vmem:[#allocation2 + $0x118] sm:$0xff] }
  0x52   : > { %2383 = vmatmul.mubr.msk.f32.gmra.mxu0 %vm515_vm0, %v506_v11  ;;  %796 = vmatprep.subr.mxu0 %v672_v15  ;;  %v649_v35 = vld [vmem:[#allocation2 + $0x100] sm:$0xff]  ;;  %v651_v36 = vld [vmem:[#allocation2 + $0x110] sm:$0xff]  ;;  %v646_v37 = vld [vmem:[#allocation2 + $0xe8] sm:$0xff] }
  0x53   : > { %797 = vmatpush1.msra.mxu0 %v671_v17  ;;  %713 = vmatprep.subr.mxu1 %v658_v24  ;;  %v648_v38 = vld [vmem:[#allocation2 + $0xf8] sm:$0xff]  ;;  %v645_v39 = vld [vmem:[#allocation2 + $0xe0] sm:$0xff]  ;;  %v647_v40 = vld [vmem:[#allocation2 + $0xf0] sm:$0xff] }
  0x54   : > { %798 = vmatprep.subr.mxu0 %v668_v19  ;;  %714 = vmatpush1.msra.mxu1 %v657_v26  ;;  %v642_v41 = vld [vmem:[#allocation2 + $0xc8] sm:$0xff]  ;;  %v644_v42 = vld [vmem:[#allocation2 + $0xd8] sm:$0xff]  ;;  %v641_v43 = vld [vmem:[#allocation2 + $0xc0] sm:$0xff] }
  0x55   : > { %799 = vmatpush1.msra.mxu0 %v667_v21  ;;  %715 = vmatprep.subr.mxu1 %v654_v28  ;;  %v643_v44 = vld [vmem:[#allocation2 + $0xd0] sm:$0xff]  ;;  %v638_v45 = vld [vmem:[#allocation2 + $0xa8] sm:$0xff]  ;;  %v640_v46 = vld [vmem:[#allocation2 + $0xb8] sm:$0xff] }
  0x56   : > { %800 = vmatprep.subr.mxu0 %v664_v23  ;;  %716 = vmatpush1.msra.mxu1 %v653_v31  ;;  %v637_v47 = vld [vmem:[#allocation2 + $0xa0] sm:$0xff]  ;;  %v639_v48 = vld [vmem:[#allocation2 + $0xb0] sm:$0xff]  ;;  %v634_v49 = vld [vmem:[#allocation2 + $0x88] sm:$0xff] }
  0x57   : > { %801 = vmatpush1.msra.mxu0 %v663_v25  ;;  %717 = vmatprep.subr.mxu1 %v650_v33  ;;  %v636_v50 = vld [vmem:[#allocation2 + $0x98] sm:$0xff]  ;;  %v633_v51 = vld [vmem:[#allocation2 + $0x80] sm:$0xff]  ;;  %v635_v52 = vld [vmem:[#allocation2 + $0x90] sm:$0xff] }
  0x58   : > { %802 = vmatprep.subr.mxu0 %v660_v27  ;;  %718 = vmatpush1.msra.mxu1 %v649_v35  ;;  %v630_v53 = vld [vmem:[#allocation2 + $0x68] sm:$0xff]  ;;  %v632_v54 = vld [vmem:[#allocation2 + $0x78] sm:$0xff]  ;;  %v629_v55 = vld [vmem:[#allocation2 + $0x60] sm:$0xff] }
  0x59   : > { %803 = vmatpush1.msra.mxu0 %v659_v29  ;;  %719 = vmatprep.subr.mxu1 %v646_v37  ;;  %v631_v56 = vld [vmem:[#allocation2 + $0x70] sm:$0xff]  ;;  %v626_v57 = vld [vmem:[#allocation2 + $0x48] sm:$0xff]  ;;  %v628_v58 = vld [vmem:[#allocation2 + $0x58] sm:$0xff] }
  0x5a   : > { %804 = vmatprep.subr.mxu0 %v656_v30  ;;  %720 = vmatpush1.msra.mxu1 %v645_v39  ;;  %v625_v59 = vld [vmem:[#allocation2 + $0x40] sm:$0xff]  ;;  %v627_v60 = vld [vmem:[#allocation2 + $0x50] sm:$0xff]  ;;  %v622_v61 = vld [vmem:[#allocation2 + $0x28] sm:$0xff] }
  0x5b   : > { %805 = vmatpush1.msra.mxu0 %v655_v32  ;;  %721 = vmatprep.subr.mxu1 %v642_v41  ;;  %v624_v62 = vld [vmem:[#allocation2 + $0x38] sm:$0xff]  ;;  %v621_v63 = vld [vmem:[#allocation2 + $0x20] sm:$0xff]  ;;  %v623_v0 = vld [vmem:[#allocation2 + $0x30] sm:$0xff] }
  0x5c   : > { %806 = vmatprep.subr.mxu0 %v652_v34  ;;  %722 = vmatpush1.msra.mxu1 %v641_v43  ;;  %v618_v1 = vld [vmem:[#allocation2 + $0x8] sm:$0xff]  ;;  %v620_v2 = vld [vmem:[#allocation2 + $0x18] sm:$0xff]  ;;  %v617_v3 = vld [vmem:[#allocation2] sm:$0xff] }
  0x5d   : > { %807 = vmatpush1.msra.mxu0 %v651_v36  ;;  %723 = vmatprep.subr.mxu1 %v638_v45  ;;  %v619_v4 = vld [vmem:[#allocation2 + $0x10] sm:$0xff]  ;;  %v990_v6 = vld [vmem:[#allocation4 + $0x1e8] sm:$0xff]  ;;  %v2299_v9 = vld [vmem:[%s3024_s2] ss:$0 sm:$0xff] }
  0x5e   : > { %808 = vmatprep.subr.mxu0 %v648_v38  ;;  %724 = vmatpush1.msra.mxu1 %v637_v47  ;;  %v1118_v7 = vld [vmem:[#allocation4 + $0x5e8] sm:$0xff]  ;;  %v989_v18 = vld [vmem:[#allocation4 + $0x1e0] sm:$0xff] }
  0x5f   : > { %809 = vmatpush1.msra.mxu0 %v647_v40  ;;  %725 = vmatprep.subr.mxu1 %v634_v49  ;;  %v1117_v19 = vld [vmem:[#allocation4 + $0x5e0] sm:$0xff]  ;;  %v986_v20 = vld [vmem:[#allocation4 + $0x1c8] sm:$0xff] }
  0x60   : > { %810 = vmatprep.subr.mxu0 %v644_v42  ;;  %726 = vmatpush1.msra.mxu1 %v633_v51  ;;  %v1114_v21 = vld [vmem:[#allocation4 + $0x5c8] sm:$0xff]  ;;  %v985_v23 = vld [vmem:[#allocation4 + $0x1c0] sm:$0xff] }
  0x61   : > { %811 = vmatpush1.msra.mxu0 %v643_v44  ;;  %727 = vmatprep.subr.mxu1 %v630_v53  ;;  %v1113_v24 = vld [vmem:[#allocation4 + $0x5c0] sm:$0xff]  ;;  %v982_v25 = vld [vmem:[#allocation4 + $0x1a8] sm:$0xff] }
  0x62   : > { %812 = vmatprep.subr.mxu0 %v640_v46  ;;  %728 = vmatpush1.msra.mxu1 %v629_v55  ;;  %v1110_v26 = vld [vmem:[#allocation4 + $0x5a8] sm:$0xff]  ;;  %v981_v28 = vld [vmem:[#allocation4 + $0x1a0] sm:$0xff] }
  0x63   : > { %813 = vmatpush1.msra.mxu0 %v639_v48  ;;  %729 = vmatprep.subr.mxu1 %v626_v57  ;;  %v1109_v29 = vld [vmem:[#allocation4 + $0x5a0] sm:$0xff]  ;;  %v978_v30 = vld [vmem:[#allocation4 + $0x188] sm:$0xff] }
  0x64   : > { %814 = vmatprep.subr.mxu0 %v636_v50  ;;  %730 = vmatpush1.msra.mxu1 %v625_v59  ;;  %v1106_v31 = vld [vmem:[#allocation4 + $0x588] sm:$0xff]  ;;  %v977_v33 = vld [vmem:[#allocation4 + $0x180] sm:$0xff] }
  0x65   : > { %815 = vmatpush1.msra.mxu0 %v635_v52  ;;  %731 = vmatprep.subr.mxu1 %v622_v61  ;;  %v1105_v34 = vld [vmem:[#allocation4 + $0x580] sm:$0xff]  ;;  %v974_v35 = vld [vmem:[#allocation4 + $0x168] sm:$0xff] }
  0x66   : > { %816 = vmatprep.subr.mxu0 %v632_v54  ;;  %732 = vmatpush1.msra.mxu1 %v621_v63  ;;  %v1102_v36 = vld [vmem:[#allocation4 + $0x568] sm:$0xff]  ;;  %v973_v37 = vld [vmem:[#allocation4 + $0x160] sm:$0xff] }
  0x67   : > { %817 = vmatpush1.msra.mxu0 %v631_v56  ;;  %733 = vmatprep.subr.mxu1 %v618_v1  ;;  %v1101_v38 = vld [vmem:[#allocation4 + $0x560] sm:$0xff]  ;;  %v970_v39 = vld [vmem:[#allocation4 + $0x148] sm:$0xff] }
  0x68   : > { %818 = vmatprep.subr.mxu0 %v628_v58  ;;  %734 = vmatpush1.msra.mxu1 %v617_v3  ;;  %v1098_v40 = vld [vmem:[#allocation4 + $0x548] sm:$0xff]  ;;  %v969_v41 = vld [vmem:[#allocation4 + $0x140] sm:$0xff] }
  0x69   : > { %819 = vmatpush1.msra.mxu0 %v627_v60  ;;  %856 = vmatprep.mubr.f32.mxu0 %v2637_v5  ;;  %v1097_v42 = vld [vmem:[#allocation4 + $0x540] sm:$0xff]  ;;  %v966_v43 = vld [vmem:[#allocation4 + $0x128] sm:$0xff] }
  0x6a   : > { %820 = vmatprep.subr.mxu0 %v624_v62  ;;  %1207 = vmatprep.subr.mxu1 %v990_v6  ;;  %v1094_v44 = vld [vmem:[#allocation4 + $0x528] sm:$0xff]  ;;  %v965_v45 = vld [vmem:[#allocation4 + $0x120] sm:$0xff] }
  0x6b   : > { %821 = vmatpush1.msra.mxu0 %v623_v0  ;;  %v1093_v46 = vld [vmem:[#allocation4 + $0x520] sm:$0xff]  ;;  %v962_v47 = vld [vmem:[#allocation4 + $0x108] sm:$0xff] }
  0x6c   : > { %822 = vmatprep.subr.mxu0 %v620_v2  ;;  %v1090_v48 = vld [vmem:[#allocation4 + $0x508] sm:$0xff]  ;;  %v961_v49 = vld [vmem:[#allocation4 + $0x100] sm:$0xff] }
  0x6d   : > { %823 = vmatpush1.msra.mxu0 %v619_v4  ;;  %v1089_v50 = vld [vmem:[#allocation4 + $0x500] sm:$0xff]  ;;  %v958_v51 = vld [vmem:[#allocation4 + $0xe8] sm:$0xff] }
  0x6e   : > { %1296 = vmatprep.subr.mxu0 %v1118_v7  ;;  %v1086_v52 = vld [vmem:[#allocation4 + $0x4e8] sm:$0xff]  ;;  %v957_v53 = vld [vmem:[#allocation4 + $0xe0] sm:$0xff] }
  0x6f   : > { %v1085_v54 = vld [vmem:[#allocation4 + $0x4e0] sm:$0xff]  ;;  %v954_v55 = vld [vmem:[#allocation4 + $0xc8] sm:$0xff] }
  0x70   : > { %v1082_v56 = vld [vmem:[#allocation4 + $0x4c8] sm:$0xff]  ;;  %v953_v57 = vld [vmem:[#allocation4 + $0xc0] sm:$0xff] }
  0x71   : > { %v1081_v58 = vld [vmem:[#allocation4 + $0x4c0] sm:$0xff]  ;;  %v950_v59 = vld [vmem:[#allocation4 + $0xa8] sm:$0xff] }
  0x72   : > { %v1078_v60 = vld [vmem:[#allocation4 + $0x4a8] sm:$0xff]  ;;  %v949_v61 = vld [vmem:[#allocation4 + $0xa0] sm:$0xff] }
  0x73   : > { %v1077_v62 = vld [vmem:[#allocation4 + $0x4a0] sm:$0xff]  ;;  %v946_v63 = vld [vmem:[#allocation4 + $0x88] sm:$0xff] }
  0x74   : > { %v1074_v0 = vld [vmem:[#allocation4 + $0x488] sm:$0xff]  ;;  %v945_v1 = vld [vmem:[#allocation4 + $0x80] sm:$0xff] }
  0x75   : > { %v1073_v2 = vld [vmem:[#allocation4 + $0x480] sm:$0xff]  ;;  %v942_v3 = vld [vmem:[#allocation4 + $0x68] sm:$0xff] }
  0x76   : > { %v1070_v4 = vld [vmem:[#allocation4 + $0x468] sm:$0xff]  ;;  %v1069_v6 = vld [vmem:[#allocation4 + $0x460] sm:$0xff] }
  0x77   : > { %v938_v7 = vld [vmem:[#allocation4 + $0x48] sm:$0xff] }
 0x10e   : > { %v2381_v8 = vpop.f32.mrf.mxu0 }
 0x10f   : > { %v600_v13 = vadd.f32 %v2381_v8, %v2299_v9  ;;  %v1066_v8 = vld [vmem:[#allocation4 + $0x448] sm:$0xff] }
 0x110   : > { %v594_v10 = vpop.f32.mrf.mxu0 }
 0x111   : > { %v595_v11 = vadd.f32 %v2299_v9, %v594_v10  ;;  %v1065_v10 = vld [vmem:[#allocation4 + $0x440] sm:$0xff] }
 0x112   : > { %v2384_v12 = vpop.f32.mrf.mxu0 }
 0x113   : > { %2479 = vtanh.f32 %v595_v11  ;;  %v610_v16 = vadd.f32 %v2384_v12, %v2299_v9  ;;  %v934_v11 = vld [vmem:[#allocation4 + $0x28] sm:$0xff] }
 0x114   : > { %v604_v14 = vpop.f32.mrf.mxu0  ;;  %2481 = vtanh.f32 %v600_v13  ;;  %v1062_v12 = vld [vmem:[#allocation4 + $0x428] sm:$0xff]  ;;  %v933_v13 = vld [vmem:[#allocation4 + $0x20] sm:$0xff] }
 0x115   : > { %v605_v15 = vadd.f32 %v2299_v9, %v604_v14  ;;  %v937_v9 = vld [vmem:[#allocation4 + $0x40] sm:$0xff] }
 0x116   : > { %v1061_v14 = vld [vmem:[#allocation4 + $0x420] sm:$0xff] }
 0x117   : > { %2483 = vtanh.f32 %v605_v15  ;;  %v930_v15 = vld [vmem:[#allocation4 + $0x8] sm:$0xff] }
 0x118   : > { %2485 = vtanh.f32 %v610_v16  ;;  %v1058_v16 = vld [vmem:[#allocation4 + $0x408] sm:$0xff] }
 0x120   : > { %v2480_v17 = vpop.eup %2479 }
 0x121   : > { %768 = vmatmul.mubr.f32.vlgmr.msra.gmra.mxu1 %v2480_v17  ;;  %857 = vmatmul.mubr.f32.vlgmr.msra.gmra.mxu0 %v2480_v17  ;;  %v2482_v22 = vpop.eup %2481  ;;  %v929_v17 = vld [vmem:[#allocation4] sm:$0xff] }
 0x122   : > { %773 = vmatprep.mubr.f32.mxu1 %v2637_v5  ;;  %862 = vmatprep.mubr.f32.mxu0 %v2637_v5 }
 0x123   : > { %1208 = vmatpush1.msra.mxu1 %v989_v18  ;;  %1297 = vmatpush1.msra.mxu0 %v1117_v19  ;;  %v1057_v18 = vld [vmem:[#allocation4 + $0x400] sm:$0xff]  ;;  %v1054_v19 = vld [vmem:[#allocation4 + $0x3e8] sm:$0xff] }
 0x124   : > { %1209 = vmatprep.subr.mxu1 %v986_v20  ;;  %1298 = vmatprep.subr.mxu0 %v1114_v21  ;;  %v2484_v27 = vpop.eup %2483  ;;  %v1182_v20 = vld [vmem:[#allocation4 + $0x7e8] sm:$0xff]  ;;  %v1053_v21 = vld [vmem:[#allocation4 + $0x3e0] sm:$0xff] }
 0x125   : > { %774 = vmatmul.mubr.f32.gmra.mxu1 %v2482_v22  ;;  %863 = vmatmul.mubr.f32.gmra.mxu0 %v2482_v22  ;;  %v2486_v32 = vpop.eup %2485  ;;  %v1181_v22 = vld [vmem:[#allocation4 + $0x7e0] sm:$0xff] }
 0x126   : > { %779 = vmatprep.mubr.f32.mxu1 %v2637_v5  ;;  %868 = vmatprep.mubr.f32.mxu0 %v2637_v5 }
 0x127   : > { %1210 = vmatpush1.msra.mxu1 %v985_v23  ;;  %1299 = vmatpush1.msra.mxu0 %v1113_v24  ;;  %v1050_v23 = vld [vmem:[#allocation4 + $0x3c8] sm:$0xff] }
 0x128   : > { %1211 = vmatprep.subr.mxu1 %v982_v25  ;;  %1300 = vmatprep.subr.mxu0 %v1110_v26  ;;  %v1178_v24 = vld [vmem:[#allocation4 + $0x7c8] sm:$0xff]  ;;  %v1049_v25 = vld [vmem:[#allocation4 + $0x3c0] sm:$0xff] }
 0x129   : > { %780 = vmatmul.mubr.f32.gmra.mxu1 %v2484_v27  ;;  %869 = vmatmul.mubr.f32.gmra.mxu0 %v2484_v27  ;;  %v1177_v26 = vld [vmem:[#allocation4 + $0x7c0] sm:$0xff]  ;;  %v1046_v27 = vld [vmem:[#allocation4 + $0x3a8] sm:$0xff] }
 0x12a   : > { %785 = vmatprep.mubr.f32.mxu1 %v2637_v5  ;;  %874 = vmatprep.mubr.f32.mxu0 %v2637_v5  ;;  %v941_v5 = vld [vmem:[#allocation4 + $0x60] sm:$0xff] }
 0x12b   : > { %1212 = vmatpush1.msra.mxu1 %v981_v28  ;;  %1301 = vmatpush1.msra.mxu0 %v1109_v29  ;;  %v1174_v28 = vld [vmem:[#allocation4 + $0x7a8] sm:$0xff]  ;;  %v1045_v29 = vld [vmem:[#allocation4 + $0x3a0] sm:$0xff] }
 0x12c   : > { %1213 = vmatprep.subr.mxu1 %v978_v30  ;;  %1302 = vmatprep.subr.mxu0 %v1106_v31  ;;  %v1173_v30 = vld [vmem:[#allocation4 + $0x7a0] sm:$0xff]  ;;  %v1042_v31 = vld [vmem:[#allocation4 + $0x388] sm:$0xff] }
 0x12d   : > { %786 = vmatmul.mubr.f32.gmra.mxu1 %v2486_v32  ;;  %875 = vmatmul.mubr.f32.gmra.mxu0 %v2486_v32  ;;  %v1170_v32 = vld [vmem:[#allocation4 + $0x788] sm:$0xff] }
 0x12e   : > { %1214 = vmatpush1.msra.mxu1 %v977_v33  ;;  %1303 = vmatpush1.msra.mxu0 %v1105_v34  ;;  %v1041_v33 = vld [vmem:[#allocation4 + $0x380] sm:$0xff] }
 0x12f   : > { %1215 = vmatprep.subr.mxu1 %v974_v35  ;;  %1304 = vmatprep.subr.mxu0 %v1102_v36  ;;  %v1169_v34 = vld [vmem:[#allocation4 + $0x780] sm:$0xff]  ;;  %v1038_v35 = vld [vmem:[#allocation4 + $0x368] sm:$0xff] }
 0x130   : > { %1216 = vmatpush1.msra.mxu1 %v973_v37  ;;  %1305 = vmatpush1.msra.mxu0 %v1101_v38  ;;  %v1166_v36 = vld [vmem:[#allocation4 + $0x768] sm:$0xff]  ;;  %v1037_v37 = vld [vmem:[#allocation4 + $0x360] sm:$0xff] }
 0x131   : > { %1217 = vmatprep.subr.mxu1 %v970_v39  ;;  %1306 = vmatprep.subr.mxu0 %v1098_v40  ;;  %v1165_v38 = vld [vmem:[#allocation4 + $0x760] sm:$0xff]  ;;  %v1034_v39 = vld [vmem:[#allocation4 + $0x348] sm:$0xff] }
 0x132   : > { %1218 = vmatpush1.msra.mxu1 %v969_v41  ;;  %1307 = vmatpush1.msra.mxu0 %v1097_v42  ;;  %v1162_v40 = vld [vmem:[#allocation4 + $0x748] sm:$0xff]  ;;  %v1033_v41 = vld [vmem:[#allocation4 + $0x340] sm:$0xff] }
 0x133   : > { %1219 = vmatprep.subr.mxu1 %v966_v43  ;;  %1308 = vmatprep.subr.mxu0 %v1094_v44  ;;  %v1161_v42 = vld [vmem:[#allocation4 + $0x740] sm:$0xff]  ;;  %v1030_v43 = vld [vmem:[#allocation4 + $0x328] sm:$0xff] }
 0x134   : > { %1220 = vmatpush1.msra.mxu1 %v965_v45  ;;  %1309 = vmatpush1.msra.mxu0 %v1093_v46  ;;  %v1158_v44 = vld [vmem:[#allocation4 + $0x728] sm:$0xff]  ;;  %v1029_v45 = vld [vmem:[#allocation4 + $0x320] sm:$0xff] }
 0x135   : > { %1221 = vmatprep.subr.mxu1 %v962_v47  ;;  %1310 = vmatprep.subr.mxu0 %v1090_v48  ;;  %v1157_v46 = vld [vmem:[#allocation4 + $0x720] sm:$0xff]  ;;  %v1026_v47 = vld [vmem:[#allocation4 + $0x308] sm:$0xff] }
 0x136   : > { %1222 = vmatpush1.msra.mxu1 %v961_v49  ;;  %1311 = vmatpush1.msra.mxu0 %v1089_v50  ;;  %v1154_v48 = vld [vmem:[#allocation4 + $0x708] sm:$0xff]  ;;  %v1025_v49 = vld [vmem:[#allocation4 + $0x300] sm:$0xff] }
 0x137   : > { %1223 = vmatprep.subr.mxu1 %v958_v51  ;;  %1312 = vmatprep.subr.mxu0 %v1086_v52  ;;  %v1153_v50 = vld [vmem:[#allocation4 + $0x700] sm:$0xff]  ;;  %v1022_v51 = vld [vmem:[#allocation4 + $0x2e8] sm:$0xff] }
 0x138   : > { %1224 = vmatpush1.msra.mxu1 %v957_v53  ;;  %1313 = vmatpush1.msra.mxu0 %v1085_v54  ;;  %v1150_v52 = vld [vmem:[#allocation4 + $0x6e8] sm:$0xff]  ;;  %v1021_v53 = vld [vmem:[#allocation4 + $0x2e0] sm:$0xff] }
 0x139   : > { %1225 = vmatprep.subr.mxu1 %v954_v55  ;;  %1314 = vmatprep.subr.mxu0 %v1082_v56  ;;  %v1149_v54 = vld [vmem:[#allocation4 + $0x6e0] sm:$0xff]  ;;  %v1018_v55 = vld [vmem:[#allocation4 + $0x2c8] sm:$0xff] }
 0x13a   : > { %1226 = vmatpush1.msra.mxu1 %v953_v57  ;;  %1315 = vmatpush1.msra.mxu0 %v1081_v58  ;;  %v1146_v56 = vld [vmem:[#allocation4 + $0x6c8] sm:$0xff]  ;;  %v1017_v57 = vld [vmem:[#allocation4 + $0x2c0] sm:$0xff] }
 0x13b   : > { %1227 = vmatprep.subr.mxu1 %v950_v59  ;;  %1316 = vmatprep.subr.mxu0 %v1078_v60  ;;  %v1145_v58 = vld [vmem:[#allocation4 + $0x6c0] sm:$0xff]  ;;  %v1014_v59 = vld [vmem:[#allocation4 + $0x2a8] sm:$0xff] }
 0x13c   : > { %1228 = vmatpush1.msra.mxu1 %v949_v61  ;;  %1317 = vmatpush1.msra.mxu0 %v1077_v62  ;;  %v1142_v60 = vld [vmem:[#allocation4 + $0x6a8] sm:$0xff]  ;;  %v1013_v61 = vld [vmem:[#allocation4 + $0x2a0] sm:$0xff] }
 0x13d   : > { %1229 = vmatprep.subr.mxu1 %v946_v63  ;;  %1318 = vmatprep.subr.mxu0 %v1074_v0  ;;  %v1141_v62 = vld [vmem:[#allocation4 + $0x6a0] sm:$0xff]  ;;  %v1010_v63 = vld [vmem:[#allocation4 + $0x288] sm:$0xff] }
 0x13e   : > { %1230 = vmatpush1.msra.mxu1 %v945_v1  ;;  %1319 = vmatpush1.msra.mxu0 %v1073_v2  ;;  %v1138_v0 = vld [vmem:[#allocation4 + $0x688] sm:$0xff]  ;;  %v1009_v1 = vld [vmem:[#allocation4 + $0x280] sm:$0xff] }
 0x13f   : > { %1231 = vmatprep.subr.mxu1 %v942_v3  ;;  %1320 = vmatprep.subr.mxu0 %v1070_v4  ;;  %v1137_v2 = vld [vmem:[#allocation4 + $0x680] sm:$0xff]  ;;  %v1006_v3 = vld [vmem:[#allocation4 + $0x268] sm:$0xff] }
 0x140   : > { %1232 = vmatpush1.msra.mxu1 %v941_v5  ;;  %1321 = vmatpush1.msra.mxu0 %v1069_v6  ;;  %v1134_v4 = vld [vmem:[#allocation4 + $0x668] sm:$0xff]  ;;  %v1005_v5 = vld [vmem:[#allocation4 + $0x260] sm:$0xff] }
 0x141   : > { %1233 = vmatprep.subr.mxu1 %v938_v7  ;;  %1322 = vmatprep.subr.mxu0 %v1066_v8  ;;  %v1133_v6 = vld [vmem:[#allocation4 + $0x660] sm:$0xff]  ;;  %v1002_v7 = vld [vmem:[#allocation4 + $0x248] sm:$0xff] }
 0x142   : > { %1234 = vmatpush1.msra.mxu1 %v937_v9  ;;  %1323 = vmatpush1.msra.mxu0 %v1065_v10  ;;  %v1130_v8 = vld [vmem:[#allocation4 + $0x648] sm:$0xff]  ;;  %v1001_v9 = vld [vmem:[#allocation4 + $0x240] sm:$0xff] }
 0x143   : > { %1235 = vmatprep.subr.mxu1 %v934_v11  ;;  %1324 = vmatprep.subr.mxu0 %v1062_v12  ;;  %v1129_v10 = vld [vmem:[#allocation4 + $0x640] sm:$0xff]  ;;  %v998_v11 = vld [vmem:[#allocation4 + $0x228] sm:$0xff] }
 0x144   : > { %1236 = vmatpush1.msra.mxu1 %v933_v13  ;;  %1325 = vmatpush1.msra.mxu0 %v1061_v14  ;;  %v1126_v12 = vld [vmem:[#allocation4 + $0x628] sm:$0xff]  ;;  %v997_v13 = vld [vmem:[#allocation4 + $0x220] sm:$0xff] }
 0x145   : > { %1237 = vmatprep.subr.mxu1 %v930_v15  ;;  %1326 = vmatprep.subr.mxu0 %v1058_v16  ;;  %v1125_v14 = vld [vmem:[#allocation4 + $0x620] sm:$0xff]  ;;  %v994_v15 = vld [vmem:[#allocation4 + $0x208] sm:$0xff] }
 0x146   : > { %1238 = vmatpush1.msra.mxu1 %v929_v17  ;;  %1327 = vmatpush1.msra.mxu0 %v1057_v18  ;;  %v1122_v16 = vld [vmem:[#allocation4 + $0x608] sm:$0xff]  ;;  %v993_v17 = vld [vmem:[#allocation4 + $0x200] sm:$0xff] }
 0x147   : > { %1239 = vmatprep.subr.mxu1 %v1054_v19  ;;  %1328 = vmatprep.subr.mxu0 %v1182_v20  ;;  %v1121_v18 = vld [vmem:[#allocation4 + $0x600] sm:$0xff]  ;;  %v992_v19 = vld [vmem:[#allocation4 + $0x1f8] sm:$0xff] }
 0x148   : > { %1240 = vmatpush2.msra.mxu1 %v1053_v21  ;;  %1329 = vmatpush2.msra.mxu0 %v1181_v22  ;;  %v1120_v20 = vld [vmem:[#allocation4 + $0x5f8] sm:$0xff]  ;;  %v683_v21 = vlaneseq }
 0x149   : > { %1241 = vmatprep.subr.mxu1 %v1050_v23  ;;  %1330 = vmatprep.subr.mxu0 %v1178_v24 }
 0x14a   : > { %1242 = vmatpush2.msra.mxu1 %v1049_v25  ;;  %1331 = vmatpush2.msra.mxu0 %v1177_v26  ;;  %v2816_v22 = vshrl.u32 %v683_v21, 7  ;;  %v681_v25 = vld [vmem:[%s3026_s4] sm:$0xf]  ;;  %v1111_v21 = vld [vmem:[#allocation4 + $0x5b0] sm:$0xff] }
 0x14b   : > { %1243 = vmatprep.subr.mxu1 %v1046_v27  ;;  %1332 = vmatprep.subr.mxu0 %v1174_v28 }
 0x14c   : > { %1244 = vmatpush2.msra.mxu1 %v1045_v29  ;;  %1333 = vmatpush2.msra.mxu0 %v1173_v30  ;;  %v2819_v23 = vsub.s32 0, %v2816_v22  ;;  %v693_v24 = vsub.s32 2, %v2816_v22  ;;  %v2826_v26 = vsub.s32 1, %v2816_v22  ;;  %v697_v27 = vsub.s32 3, %v2816_v22 }
 0x14d   : > { %1245 = vmatprep.subr.mxu1 %v1042_v31  ;;  %1334 = vmatprep.subr.mxu0 %v1170_v32 }
 0x14e   : > { %1246 = vmatpush2.msra.mxu1 %v1041_v33  ;;  %1335 = vmatpush2.msra.mxu0 %v1169_v34  ;;  %v2830_v28 = vrot.slane %v681_v25, %v2819_v23  ;;  %v2834_v29 = vrot.slane %v681_v25, %v693_v24  ;;  %v2837_v32 = vrot.slane %v681_v25, %v2826_v26 }
 0x14f   : > { %1247 = vmatprep.subr.mxu1 %v1038_v35  ;;  %1336 = vmatprep.subr.mxu0 %v1166_v36  ;;  %v2841_v33 = vrot.slane %v681_v25, %v697_v27 }
 0x150   : > { %1248 = vmatpush2.msra.mxu1 %v1037_v37  ;;  %1337 = vmatpush2.msra.mxu0 %v1165_v38 }
 0x151   : > { %1249 = vmatprep.subr.mxu1 %v1034_v39  ;;  %1338 = vmatprep.subr.mxu0 %v1162_v40 }
 0x152   : > { %1250 = vmatpush2.msra.mxu1 %v1033_v41  ;;  %1339 = vmatpush2.msra.mxu0 %v1161_v42 }
 0x153   : > { %1251 = vmatprep.subr.mxu1 %v1030_v43  ;;  %1340 = vmatprep.subr.mxu0 %v1158_v44 }
 0x154   : > { %1252 = vmatpush2.msra.mxu1 %v1029_v45  ;;  %1341 = vmatpush2.msra.mxu0 %v1157_v46 }
 0x155   : > { %1253 = vmatprep.subr.mxu1 %v1026_v47  ;;  %1342 = vmatprep.subr.mxu0 %v1154_v48 }
 0x156   : > { %1254 = vmatpush2.msra.mxu1 %v1025_v49  ;;  %1343 = vmatpush2.msra.mxu0 %v1153_v50 }
 0x157   : > { %1255 = vmatprep.subr.mxu1 %v1022_v51  ;;  %1344 = vmatprep.subr.mxu0 %v1150_v52  ;;  %v991_v52 = vld [vmem:[#allocation4 + $0x1f0] sm:$0xff] }
 0x158   : > { %1256 = vmatpush2.msra.mxu1 %v1021_v53  ;;  %1345 = vmatpush2.msra.mxu0 %v1149_v54 }
 0x159   : > { %1257 = vmatprep.subr.mxu1 %v1018_v55  ;;  %1346 = vmatprep.subr.mxu0 %v1146_v56 }
 0x15a   : > { %1258 = vmatpush2.msra.mxu1 %v1017_v57  ;;  %1347 = vmatpush2.msra.mxu0 %v1145_v58 }
 0x15b   : > { %1259 = vmatprep.subr.mxu1 %v1014_v59  ;;  %1348 = vmatprep.subr.mxu0 %v1142_v60  ;;  %v1119_v59 = vld [vmem:[#allocation4 + $0x5f0] sm:$0xff]  ;;  %v988_v60 = vld [vmem:[#allocation4 + $0x1d8] sm:$0xff] }
 0x15c   : > { %1260 = vmatpush2.msra.mxu1 %v1013_v61  ;;  %1349 = vmatpush2.msra.mxu0 %v1141_v62  ;;  %v1116_v61 = vld [vmem:[#allocation4 + $0x5d8] sm:$0xff] }
 0x15d   : > { %1261 = vmatprep.subr.mxu1 %v1010_v63  ;;  %1350 = vmatprep.subr.mxu0 %v1138_v0 }
 0x15e   : > { %1262 = vmatpush2.msra.mxu1 %v1009_v1  ;;  %1351 = vmatpush2.msra.mxu0 %v1137_v2 }
 0x15f   : > { %1263 = vmatprep.subr.mxu1 %v1006_v3  ;;  %1352 = vmatprep.subr.mxu0 %v1134_v4 }
 0x160   : > { %1264 = vmatpush2.msra.mxu1 %v1005_v5  ;;  %1353 = vmatpush2.msra.mxu0 %v1133_v6  ;;  %v987_v5 = vld [vmem:[#allocation4 + $0x1d0] sm:$0xff] }
 0x161   : > { %1265 = vmatprep.subr.mxu1 %v1002_v7  ;;  %1354 = vmatprep.subr.mxu0 %v1130_v8  ;;  %v1115_v6 = vld [vmem:[#allocation4 + $0x5d0] sm:$0xff] }
 0x162   : > { %1266 = vmatpush2.msra.mxu1 %v1001_v9  ;;  %1355 = vmatpush2.msra.mxu0 %v1129_v10 }
 0x163   : > { %1267 = vmatprep.subr.mxu1 %v998_v11  ;;  %1356 = vmatprep.subr.mxu0 %v1126_v12 }
 0x164   : > { %1268 = vmatpush2.msra.mxu1 %v997_v13  ;;  %1357 = vmatpush2.msra.mxu0 %v1125_v14  ;;  %v984_v14 = vld [vmem:[#allocation4 + $0x1b8] sm:$0xff] }
 0x165   : > { %1269 = vmatprep.subr.mxu1 %v994_v15  ;;  %1358 = vmatprep.subr.mxu0 %v1122_v16  ;;  %v1112_v15 = vld [vmem:[#allocation4 + $0x5b8] sm:$0xff] }
 0x166   : > { %1270 = vmatpush2.msra.mxu1 %v993_v17  ;;  %1359 = vmatpush2.msra.mxu0 %v1121_v18 }
 0x167   : > { %1385 = vmatprep.subr.mxu1 %v992_v19  ;;  %1474 = vmatprep.subr.mxu0 %v1120_v20  ;;  %v983_v20 = vld [vmem:[#allocation4 + $0x1b0] sm:$0xff] }
 0x1e1   : > { %v769_v30 = vpop.f32.mrf.mxu1  ;;  %v858_v31 = vpop.f32.mrf.mxu0 }
 0x1e2   : > { %v770_v34 = vadd.f32 %v769_v30, %v2830_v28  ;;  %v859_v35 = vadd.f32 %v858_v31, %v2834_v29 }
 0x1e3   : > { %v771_v36 = vpop.f32.mrf.mxu1  ;;  %v860_v37 = vpop.f32.mrf.mxu0 }
 0x1e4   : > { %vm881_vm1 = vcmp.ge.f32.partialorder %v770_v34, 0.0  ;;  %v897_v38 = vmul.f32 0.01, %v770_v34  ;;  %v772_v39 = vadd.f32 %v771_v36, %v2837_v32  ;;  %v861_v40 = vadd.f32 %v860_v37, %v2841_v33  ;;  %v980_v37 = vld [vmem:[#allocation4 + $0x198] sm:$0xff] }
 0x1e5   : > { %v775_v41 = vpop.f32.mrf.mxu1  ;;  %v864_v42 = vpop.f32.mrf.mxu0  ;;  %vm883_vm2 = vcmp.ge.f32.partialorder %v859_v35, 0.0  ;;  %v899_v43 = vmul.f32 0.01, %v859_v35 }
 0x1e6   : > { %v776_v44 = vadd.f32 %v775_v41, %v2830_v28  ;;  %v865_v45 = vadd.f32 %v864_v42, %v2834_v29  ;;  %v898_v46 = vmul.f32 0.01, %v772_v39  ;;  %v900_v47 = vmul.f32 0.01, %v861_v40  ;;  %v1107_v41 = vld [vmem:[#allocation4 + $0x590] sm:$0xff] }
 0x1e7   : > { %v777_v48 = vpop.f32.mrf.mxu1  ;;  %v866_v49 = vpop.f32.mrf.mxu0  ;;  %vm882_vm3 = vcmp.ge.f32.partialorder %v772_v39, 0.0  ;;  %vm884_vm4 = vcmp.ge.f32.partialorder %v861_v40, 0.0  ;;  %v2852_v53 = vsel %vm881_vm1, %v770_v34, %v897_v38  ;;  %v2859_v62 = vsel %vm883_vm2, %v859_v35, %v899_v43  ;;  %v1108_v38 = vld [vmem:[#allocation4 + $0x598] sm:$0xff] }
 0x1e8   : > { %v778_v50 = vadd.f32 %v777_v48, %v2837_v32  ;;  %v867_v51 = vadd.f32 %v866_v49, %v2841_v33  ;;  %v901_v54 = vmul.f32 0.01, %v776_v44  ;;  %v2854_v57 = vsel %vm882_vm3, %v772_v39, %v898_v46  ;;  %v1104_v43 = vld [vmem:[#allocation4 + $0x578] sm:$0xff]  ;;  %v1103_v48 = vld [vmem:[#allocation4 + $0x570] sm:$0xff] }
 0x1e9   : > { %v781_v55 = vpop.f32.mrf.mxu1  ;;  %v870_v56 = vpop.f32.mrf.mxu0  ;;  %v2856_v58 = vsel %vm884_vm4, %v861_v40, %v900_v47  ;;  %v903_v63 = vmul.f32 0.01, %v865_v45  ;;  %1271 = vmatprep.mubr.f32.mxu1 %v2854_v57  ;;  %vm885_vm7 = vcmp.ge.f32.partialorder %v776_v44, 0.0  ;;  %vm887_vm8 = vcmp.ge.f32.partialorder %v865_v45, 0.0  ;;  %v979_v40 = vld [vmem:[#allocation4 + $0x190] sm:$0xff] }
 0x1ea   : > { %v902_v0 = vmul.f32 0.01, %v778_v50  ;;  %v904_v1 = vmul.f32 0.01, %v867_v51  ;;  %1360 = vmatprep.mubr.f32.mxu0 %v2856_v58  ;;  %v2864_v2 = vadd.f32 %v781_v55, %v2830_v28  ;;  %1272 = vmatmul.mubr.f32.vlgmr.msra.gmra.mxu1 %v2852_v53  ;;  %vm886_vm5 = vcmp.ge.f32.partialorder %v778_v50, 0.0  ;;  %v975_v47 = vld [vmem:[#allocation4 + $0x170] sm:$0xff] }
 0x1eb   : > { %1361 = vmatmul.mubr.f32.vlgmr.msra.gmra.mxu0 %v2859_v62  ;;  %v783_v3 = vpop.f32.mrf.mxu1  ;;  %v872_v4 = vpop.f32.mrf.mxu0  ;;  %vm888_vm6 = vcmp.ge.f32.partialorder %v867_v51, 0.0  ;;  %v871_v7 = vadd.f32 %v870_v56, %v2834_v29  ;;  %1386 = vmatpush1.msra.mxu1 %v991_v52  ;;  %v2878_v18 = vsel %vm885_vm7, %v776_v44, %v901_v54  ;;  %v2881_v19 = vsel %vm887_vm8, %v865_v45, %v903_v63  ;;  %v1100_v52 = vld [vmem:[#allocation4 + $0x558] sm:$0xff]  ;;  %v971_v54 = vld [vmem:[#allocation4 + $0x150] sm:$0xff] }
 0x1ec   : > { %1475 = vmatpush1.msra.mxu0 %v1119_v59  ;;  %v784_v8 = vadd.f32 %v783_v3, %v2837_v32  ;;  %v873_v9 = vadd.f32 %v872_v4, %v2841_v33  ;;  %1387 = vmatprep.subr.mxu1 %v988_v60  ;;  %v2871_v12 = vsel %vm886_vm5, %v778_v50, %v902_v0  ;;  %v905_v31 = vmul.f32 0.01, %v2864_v2  ;;  %v1099_v55 = vld [vmem:[#allocation4 + $0x550] sm:$0xff]  ;;  %v968_v60 = vld [vmem:[#allocation4 + $0x138] sm:$0xff] }
 0x1ed   : > { %1476 = vmatprep.subr.mxu0 %v1116_v61  ;;  %v787_v10 = vpop.f32.mrf.mxu1  ;;  %v876_v11 = vpop.f32.mrf.mxu0  ;;  %v2873_v13 = vsel %vm888_vm6, %v867_v51, %v904_v1  ;;  %1388 = vmatpush1.msra.mxu1 %v987_v5  ;;  %v907_v34 = vmul.f32 0.01, %v871_v7  ;;  %vm889_vm11 = vcmp.ge.f32.partialorder %v2864_v2, 0.0  ;;  %vm891_vm12 = vcmp.ge.f32.partialorder %v871_v7, 0.0  ;;  %v972_v51 = vld [vmem:[#allocation4 + $0x158] sm:$0xff]  ;;  %v967_v1 = vld [vmem:[#allocation4 + $0x130] sm:$0xff] }
 0x1ee   : > { %v906_v16 = vmul.f32 0.01, %v784_v8  ;;  %v908_v17 = vmul.f32 0.01, %v873_v9  ;;  %1477 = vmatpush1.msra.mxu0 %v1115_v6  ;;  %1277 = vmatprep.mubr.f32.mxu1 %v2871_v12  ;;  %vm890_vm9 = vcmp.ge.f32.partialorder %v784_v8, 0.0  ;;  %vm892_vm10 = vcmp.ge.f32.partialorder %v873_v9, 0.0 }
 0x1ef   : > { %1366 = vmatprep.mubr.f32.mxu0 %v2873_v13  ;;  %v789_v25 = vpop.f32.mrf.mxu1  ;;  %v878_v30 = vpop.f32.mrf.mxu0  ;;  %1389 = vmatprep.subr.mxu1 %v984_v14  ;;  %v788_v39 = vadd.f32 %v787_v10, %v2830_v28  ;;  %v877_v42 = vadd.f32 %v876_v11, %v2834_v29  ;;  %v976_v28 = vld [vmem:[#allocation4 + $0x178] sm:$0xff]  ;;  %v2898_v46 = vsel %vm889_vm11, %v2864_v2, %v905_v31  ;;  %v1095_v2 = vld [vmem:[#allocation4 + $0x530] sm:$0xff] }
 0x1f0   : > { %1478 = vmatprep.subr.mxu0 %v1112_v15  ;;  %v790_v35 = vadd.f32 %v789_v25, %v2837_v32  ;;  %v879_v36 = vadd.f32 %v878_v30, %v2841_v33  ;;  %1278 = vmatmul.mubr.f32.gmra.mxu1 %v2878_v18  ;;  %v2892_v32 = vsel %vm890_vm9, %v784_v8, %v906_v16  ;;  %v1096_v61 = vld [vmem:[#allocation4 + $0x538] sm:$0xff]  ;;  %v963_v5 = vld [vmem:[#allocation4 + $0x110] sm:$0xff] }
 0x1f1   : > { %1367 = vmatmul.mubr.f32.gmra.mxu0 %v2881_v19  ;;  %1390 = vmatpush1.msra.mxu1 %v983_v20  ;;  %v2895_v33 = vsel %vm892_vm10, %v873_v9, %v908_v17  ;;  %v2900_v29 = vsel %vm891_vm12, %v871_v7, %v907_v34  ;;  %v909_v49 = vmul.f32 0.01, %v788_v39  ;;  %v911_v50 = vmul.f32 0.01, %v877_v42  ;;  %v964_v3 = vld [vmem:[#allocation4 + $0x118] sm:$0xff]  ;;  %v1091_v6 = vld [vmem:[#allocation4 + $0x510] sm:$0xff] }
 0x1f2   : > { %1479 = vmatpush1.msra.mxu0 %v1111_v21  ;;  %1391 = vmatprep.subr.mxu1 %v980_v37  ;;  %v910_v44 = vmul.f32 0.01, %v790_v35  ;;  %v912_v45 = vmul.f32 0.01, %v879_v36  ;;  %vm894_vm13 = vcmp.ge.f32.partialorder %v790_v35, 0.0  ;;  %vm896_vm14 = vcmp.ge.f32.partialorder %v879_v36, 0.0 }
 0x1f3   : > { %1480 = vmatprep.subr.mxu0 %v1108_v38  ;;  %1392 = vmatpush1.msra.mxu1 %v979_v40  ;;  %vm893_vm15 = vcmp.ge.f32.partialorder %v788_v39, 0.0  ;;  %vm895_vm1 = vcmp.ge.f32.partialorder %v877_v42, 0.0  ;;  %v1092_v4 = vld [vmem:[#allocation4 + $0x518] sm:$0xff]  ;;  %v959_v9 = vld [vmem:[#allocation4 + $0xf0] sm:$0xff] }
 0x1f4   : > { %1481 = vmatpush1.msra.mxu0 %v1107_v41  ;;  %1283 = vmatprep.mubr.f32.mxu1 %v2892_v32  ;;  %v2907_v56 = vsel %vm894_vm13, %v790_v35, %v910_v44  ;;  %v2910_v59 = vsel %vm896_vm14, %v879_v36, %v912_v45  ;;  %v2912_v63 = vsel %vm893_vm15, %v788_v39, %v909_v49  ;;  %v960_v7 = vld [vmem:[#allocation4 + $0xf8] sm:$0xff]  ;;  %v1087_v10 = vld [vmem:[#allocation4 + $0x4f0] sm:$0xff] }
 0x1f5   : > { %1372 = vmatprep.mubr.f32.mxu0 %v2895_v33  ;;  %1393 = vmatprep.subr.mxu1 %v976_v28  ;;  %v2914_v0 = vsel %vm895_vm1, %v877_v42, %v911_v50  ;;  %v1088_v8 = vld [vmem:[#allocation4 + $0x4f8] sm:$0xff]  ;;  %v955_v15 = vld [vmem:[#allocation4 + $0xd0] sm:$0xff] }
 0x1f6   : > { %1482 = vmatprep.subr.mxu0 %v1104_v43  ;;  %1284 = vmatmul.mubr.f32.gmra.mxu1 %v2898_v46  ;;  %v956_v11 = vld [vmem:[#allocation4 + $0xd8] sm:$0xff]  ;;  %v1083_v16 = vld [vmem:[#allocation4 + $0x4d0] sm:$0xff] }
 0x1f7   : > { %1373 = vmatmul.mubr.f32.gmra.mxu0 %v2900_v29  ;;  %1394 = vmatpush1.msra.mxu1 %v975_v47  ;;  %v1084_v14 = vld [vmem:[#allocation4 + $0x4d8] sm:$0xff]  ;;  %v1079_v21 = vld [vmem:[#allocation4 + $0x4b0] sm:$0xff] }
 0x1f8   : > { %1483 = vmatpush1.msra.mxu0 %v1103_v48  ;;  %1395 = vmatprep.subr.mxu1 %v972_v51  ;;  %v952_v17 = vld [vmem:[#allocation4 + $0xb8] sm:$0xff]  ;;  %v947_v30 = vld [vmem:[#allocation4 + $0x90] sm:$0xff] }
 0x1f9   : > { %1484 = vmatprep.subr.mxu0 %v1100_v52  ;;  %1396 = vmatpush1.msra.mxu1 %v971_v54  ;;  %v1080_v20 = vld [vmem:[#allocation4 + $0x4b8] sm:$0xff]  ;;  %v1075_v31 = vld [vmem:[#allocation4 + $0x490] sm:$0xff] }
 0x1fa   : > { %1485 = vmatpush1.msra.mxu0 %v1099_v55  ;;  %1289 = vmatprep.mubr.f32.mxu1 %v2907_v56  ;;  %v1076_v25 = vld [vmem:[#allocation4 + $0x498] sm:$0xff]  ;;  %v943_v36 = vld [vmem:[#allocation4 + $0x70] sm:$0xff] }
 0x1fb   : > { %1378 = vmatprep.mubr.f32.mxu0 %v2910_v59  ;;  %1397 = vmatprep.subr.mxu1 %v968_v60  ;;  %v944_v34 = vld [vmem:[#allocation4 + $0x78] sm:$0xff]  ;;  %v1071_v37 = vld [vmem:[#allocation4 + $0x470] sm:$0xff] }
 0x1fc   : > { %1486 = vmatprep.subr.mxu0 %v1096_v61  ;;  %1290 = vmatmul.mubr.f32.gmra.mxu1 %v2912_v63  ;;  %v1072_v35 = vld [vmem:[#allocation4 + $0x478] sm:$0xff]  ;;  %v939_v40 = vld [vmem:[#allocation4 + $0x50] sm:$0xff] }
 0x1fd   : > { %1379 = vmatmul.mubr.f32.gmra.mxu0 %v2914_v0  ;;  %1398 = vmatpush1.msra.mxu1 %v967_v1  ;;  %v940_v38 = vld [vmem:[#allocation4 + $0x58] sm:$0xff]  ;;  %v1067_v41 = vld [vmem:[#allocation4 + $0x450] sm:$0xff] }
 0x1fe   : > { %1487 = vmatpush1.msra.mxu0 %v1095_v2  ;;  %1399 = vmatprep.subr.mxu1 %v964_v3  ;;  %v1068_v39 = vld [vmem:[#allocation4 + $0x458] sm:$0xff]  ;;  %v935_v43 = vld [vmem:[#allocation4 + $0x30] sm:$0xff] }
 0x1ff   : > { %1449 = vmatprep.mubr.f32.mxu1 %v2854_v57  ;;  %1488 = vmatprep.subr.mxu0 %v1092_v4  ;;  %v951_v57 = vld [vmem:[#allocation4 + $0xb0] sm:$0xff]  ;;  %v936_v42 = vld [vmem:[#allocation4 + $0x38] sm:$0xff] }
 0x200   : > { %1538 = vmatprep.mubr.f32.mxu0 %v2856_v58  ;;  %1400 = vmatpush1.msra.mxu1 %v963_v5  ;;  %v948_v58 = vld [vmem:[#allocation4 + $0x98] sm:$0xff]  ;;  %v1063_v44 = vld [vmem:[#allocation4 + $0x430] sm:$0xff] }
 0x201   : > { %1489 = vmatpush1.msra.mxu0 %v1091_v6  ;;  %1401 = vmatprep.subr.mxu1 %v960_v7  ;;  %v1064_v28 = vld [vmem:[#allocation4 + $0x438] sm:$0xff]  ;;  %v931_v48 = vld [vmem:[#allocation4 + $0x10] sm:$0xff] }
 0x202   : > { %1490 = vmatprep.subr.mxu0 %v1088_v8  ;;  %1402 = vmatpush1.msra.mxu1 %v959_v9  ;;  %v932_v45 = vld [vmem:[#allocation4 + $0x18] sm:$0xff]  ;;  %v1059_v49 = vld [vmem:[#allocation4 + $0x410] sm:$0xff] }
 0x203   : > { %1491 = vmatpush1.msra.mxu0 %v1087_v10  ;;  %1403 = vmatprep.subr.mxu1 %v956_v11  ;;  %v1060_v47 = vld [vmem:[#allocation4 + $0x418] sm:$0xff]  ;;  %v1055_v52 = vld [vmem:[#allocation4 + $0x3f0] sm:$0xff] }
 0x204   : > { %1492 = vmatprep.subr.mxu0 %v1084_v14  ;;  %1404 = vmatpush1.msra.mxu1 %v955_v15  ;;  %v1056_v50 = vld [vmem:[#allocation4 + $0x3f8] sm:$0xff]  ;;  %v1183_v54 = vld [vmem:[#allocation4 + $0x7f0] sm:$0xff] }
 0x205   : > { %1493 = vmatpush1.msra.mxu0 %v1083_v16  ;;  %1405 = vmatprep.subr.mxu1 %v952_v17  ;;  %v1184_v51 = vld [vmem:[#allocation4 + $0x7f8] sm:$0xff]  ;;  %v1051_v61 = vld [vmem:[#allocation4 + $0x3d0] sm:$0xff] }
 0x206   : > { %1494 = vmatprep.subr.mxu0 %v1080_v20  ;;  %1406 = vmatpush1.msra.mxu1 %v951_v57  ;;  %v1052_v55 = vld [vmem:[#allocation4 + $0x3d8] sm:$0xff]  ;;  %v1179_v1 = vld [vmem:[#allocation4 + $0x7d0] sm:$0xff] }
 0x207   : > { %1495 = vmatpush1.msra.mxu0 %v1079_v21  ;;  %1407 = vmatprep.subr.mxu1 %v948_v58  ;;  %v1180_v60 = vld [vmem:[#allocation4 + $0x7d8] sm:$0xff]  ;;  %v1047_v4 = vld [vmem:[#allocation4 + $0x3b0] sm:$0xff] }
 0x208   : > { %1496 = vmatprep.subr.mxu0 %v1076_v25  ;;  %1408 = vmatpush1.msra.mxu1 %v947_v30  ;;  %v1048_v2 = vld [vmem:[#allocation4 + $0x3b8] sm:$0xff]  ;;  %v1175_v5 = vld [vmem:[#allocation4 + $0x7b0] sm:$0xff] }
 0x209   : > { %1497 = vmatpush1.msra.mxu0 %v1075_v31  ;;  %1409 = vmatprep.subr.mxu1 %v944_v34  ;;  %v1176_v3 = vld [vmem:[#allocation4 + $0x7b8] sm:$0xff]  ;;  %v1043_v8 = vld [vmem:[#allocation4 + $0x390] sm:$0xff] }
 0x20a   : > { %1498 = vmatprep.subr.mxu0 %v1072_v35  ;;  %1410 = vmatpush1.msra.mxu1 %v943_v36  ;;  %v1044_v6 = vld [vmem:[#allocation4 + $0x398] sm:$0xff]  ;;  %v1171_v9 = vld [vmem:[#allocation4 + $0x790] sm:$0xff] }
 0x20b   : > { %1499 = vmatpush1.msra.mxu0 %v1071_v37  ;;  %1411 = vmatprep.subr.mxu1 %v940_v38  ;;  %v1172_v7 = vld [vmem:[#allocation4 + $0x798] sm:$0xff]  ;;  %v1039_v14 = vld [vmem:[#allocation4 + $0x370] sm:$0xff] }
 0x20c   : > { %1500 = vmatprep.subr.mxu0 %v1068_v39  ;;  %1412 = vmatpush1.msra.mxu1 %v939_v40  ;;  %v1040_v10 = vld [vmem:[#allocation4 + $0x378] sm:$0xff]  ;;  %v1167_v15 = vld [vmem:[#allocation4 + $0x770] sm:$0xff] }
 0x20d   : > { %1501 = vmatpush1.msra.mxu0 %v1067_v41  ;;  %1413 = vmatprep.subr.mxu1 %v936_v42  ;;  %v1168_v11 = vld [vmem:[#allocation4 + $0x778] sm:$0xff]  ;;  %v1035_v20 = vld [vmem:[#allocation4 + $0x350] sm:$0xff] }
 0x20e   : > { %1502 = vmatprep.subr.mxu0 %v1064_v28  ;;  %1414 = vmatpush1.msra.mxu1 %v935_v43  ;;  %v1036_v16 = vld [vmem:[#allocation4 + $0x358] sm:$0xff]  ;;  %v1163_v57 = vld [vmem:[#allocation4 + $0x750] sm:$0xff] }
 0x20f   : > { %1503 = vmatpush1.msra.mxu0 %v1063_v44  ;;  %1415 = vmatprep.subr.mxu1 %v932_v45  ;;  %v1164_v17 = vld [vmem:[#allocation4 + $0x758] sm:$0xff]  ;;  %v1031_v25 = vld [vmem:[#allocation4 + $0x330] sm:$0xff] }
 0x210   : > { %1504 = vmatprep.subr.mxu0 %v1060_v47  ;;  %1416 = vmatpush1.msra.mxu1 %v931_v48  ;;  %v1032_v21 = vld [vmem:[#allocation4 + $0x338] sm:$0xff]  ;;  %v1159_v30 = vld [vmem:[#allocation4 + $0x730] sm:$0xff] }
 0x211   : > { %1505 = vmatpush1.msra.mxu0 %v1059_v49  ;;  %1417 = vmatprep.subr.mxu1 %v1056_v50  ;;  %v1160_v58 = vld [vmem:[#allocation4 + $0x738] sm:$0xff]  ;;  %v1027_v35 = vld [vmem:[#allocation4 + $0x310] sm:$0xff] }
 0x212   : > { %1506 = vmatprep.subr.mxu0 %v1184_v51  ;;  %1418 = vmatpush2.msra.mxu1 %v1055_v52  ;;  %v1028_v31 = vld [vmem:[#allocation4 + $0x318] sm:$0xff]  ;;  %v1155_v36 = vld [vmem:[#allocation4 + $0x710] sm:$0xff] }
 0x213   : > { %1507 = vmatpush2.msra.mxu0 %v1183_v54  ;;  %1419 = vmatprep.subr.mxu1 %v1052_v55  ;;  %v1156_v34 = vld [vmem:[#allocation4 + $0x718] sm:$0xff]  ;;  %v1023_v39 = vld [vmem:[#allocation4 + $0x2f0] sm:$0xff] }
 0x214   : > { %1508 = vmatprep.subr.mxu0 %v1180_v60  ;;  %1420 = vmatpush2.msra.mxu1 %v1051_v61  ;;  %v1024_v37 = vld [vmem:[#allocation4 + $0x2f8] sm:$0xff]  ;;  %v1151_v40 = vld [vmem:[#allocation4 + $0x6f0] sm:$0xff] }
 0x215   : > { %1509 = vmatpush2.msra.mxu0 %v1179_v1  ;;  %1421 = vmatprep.subr.mxu1 %v1048_v2  ;;  %v1152_v38 = vld [vmem:[#allocation4 + $0x6f8] sm:$0xff]  ;;  %v1019_v28 = vld [vmem:[#allocation4 + $0x2d0] sm:$0xff] }
 0x216   : > { %1510 = vmatprep.subr.mxu0 %v1176_v3  ;;  %1422 = vmatpush2.msra.mxu1 %v1047_v4  ;;  %v1020_v41 = vld [vmem:[#allocation4 + $0x2d8] sm:$0xff]  ;;  %v1147_v43 = vld [vmem:[#allocation4 + $0x6d0] sm:$0xff] }
 0x217   : > { %1511 = vmatpush2.msra.mxu0 %v1175_v5  ;;  %1423 = vmatprep.subr.mxu1 %v1044_v6  ;;  %v1148_v42 = vld [vmem:[#allocation4 + $0x6d8] sm:$0xff]  ;;  %v1015_v47 = vld [vmem:[#allocation4 + $0x2b0] sm:$0xff] }
 0x218   : > { %1512 = vmatprep.subr.mxu0 %v1172_v7  ;;  %1424 = vmatpush2.msra.mxu1 %v1043_v8  ;;  %v1016_v44 = vld [vmem:[#allocation4 + $0x2b8] sm:$0xff]  ;;  %v1143_v48 = vld [vmem:[#allocation4 + $0x6b0] sm:$0xff] }
 0x219   : > { %1513 = vmatpush2.msra.mxu0 %v1171_v9  ;;  %1425 = vmatprep.subr.mxu1 %v1040_v10  ;;  %v1144_v45 = vld [vmem:[#allocation4 + $0x6b8] sm:$0xff]  ;;  %v1011_v51 = vld [vmem:[#allocation4 + $0x290] sm:$0xff] }
 0x21a   : > { %1514 = vmatprep.subr.mxu0 %v1168_v11  ;;  %1426 = vmatpush2.msra.mxu1 %v1039_v14  ;;  %v1012_v49 = vld [vmem:[#allocation4 + $0x298] sm:$0xff]  ;;  %v1139_v52 = vld [vmem:[#allocation4 + $0x690] sm:$0xff] }
 0x21b   : > { %1515 = vmatpush2.msra.mxu0 %v1167_v15  ;;  %1427 = vmatprep.subr.mxu1 %v1036_v16  ;;  %v1140_v50 = vld [vmem:[#allocation4 + $0x698] sm:$0xff]  ;;  %v1007_v60 = vld [vmem:[#allocation4 + $0x270] sm:$0xff] }
 0x21c   : > { %1516 = vmatprep.subr.mxu0 %v1164_v17  ;;  %1428 = vmatpush2.msra.mxu1 %v1035_v20  ;;  %v1008_v54 = vld [vmem:[#allocation4 + $0x278] sm:$0xff]  ;;  %v1135_v61 = vld [vmem:[#allocation4 + $0x670] sm:$0xff]  ;;  %v1640_v17 = vld [vmem:[#allocation6 + $0xe8] sm:$0xff] }
 0x21d   : > { %1517 = vmatpush2.msra.mxu0 %v1163_v57  ;;  %1429 = vmatprep.subr.mxu1 %v1032_v21  ;;  %v1136_v55 = vld [vmem:[#allocation4 + $0x678] sm:$0xff]  ;;  %v1003_v3 = vld [vmem:[#allocation4 + $0x250] sm:$0xff]  ;;  %v1639_v20 = vld [vmem:[#allocation6 + $0xe0] sm:$0xff] }
 0x21e   : > { %1518 = vmatprep.subr.mxu0 %v1160_v58  ;;  %1430 = vmatpush2.msra.mxu1 %v1031_v25  ;;  %v1004_v1 = vld [vmem:[#allocation4 + $0x258] sm:$0xff]  ;;  %v1131_v4 = vld [vmem:[#allocation4 + $0x650] sm:$0xff]  ;;  %v1700_v21 = vld [vmem:[#allocation6 + $0x2c8] sm:$0xff] }
 0x21f   : > { %1519 = vmatpush2.msra.mxu0 %v1159_v30  ;;  %1431 = vmatprep.subr.mxu1 %v1028_v31  ;;  %v1132_v2 = vld [vmem:[#allocation4 + $0x658] sm:$0xff]  ;;  %v999_v7 = vld [vmem:[#allocation4 + $0x230] sm:$0xff]  ;;  %v1631_v58 = vld [vmem:[#allocation6 + $0xa0] sm:$0xff] }
 0x220   : > { %1520 = vmatprep.subr.mxu0 %v1156_v34  ;;  %1432 = vmatpush2.msra.mxu1 %v1027_v35  ;;  %v1000_v5 = vld [vmem:[#allocation4 + $0x238] sm:$0xff]  ;;  %v1127_v8 = vld [vmem:[#allocation4 + $0x630] sm:$0xff]  ;;  %v1699_v25 = vld [vmem:[#allocation6 + $0x2c0] sm:$0xff] }
 0x221   : > { %1521 = vmatpush2.msra.mxu0 %v1155_v36  ;;  %1433 = vmatprep.subr.mxu1 %v1024_v37  ;;  %v1128_v6 = vld [vmem:[#allocation4 + $0x638] sm:$0xff]  ;;  %v995_v11 = vld [vmem:[#allocation4 + $0x210] sm:$0xff]  ;;  %v1628_v34 = vld [vmem:[#allocation6 + $0x88] sm:$0xff] }
 0x222   : > { %1522 = vmatprep.subr.mxu0 %v1152_v38  ;;  %1434 = vmatpush2.msra.mxu1 %v1023_v39  ;;  %v996_v9 = vld [vmem:[#allocation4 + $0x218] sm:$0xff]  ;;  %v1123_v14 = vld [vmem:[#allocation4 + $0x610] sm:$0xff]  ;;  %v1696_v35 = vld [vmem:[#allocation6 + $0x2a8] sm:$0xff] }
 0x223   : > { %1523 = vmatpush2.msra.mxu0 %v1151_v40  ;;  %1435 = vmatprep.subr.mxu1 %v1020_v41  ;;  %v1124_v10 = vld [vmem:[#allocation4 + $0x618] sm:$0xff]  ;;  %v1641_v16 = vld [vmem:[#allocation6 + $0xf0] sm:$0xff]  ;;  %v1627_v36 = vld [vmem:[#allocation6 + $0x80] sm:$0xff] }
 0x224   : > { %1524 = vmatprep.subr.mxu0 %v1148_v42  ;;  %1436 = vmatpush2.msra.mxu1 %v1019_v28  ;;  %v1642_v15 = vld [vmem:[#allocation6 + $0xf8] sm:$0xff]  ;;  %v1633_v57 = vld [vmem:[#allocation6 + $0xb0] sm:$0xff]  ;;  %v1695_v37 = vld [vmem:[#allocation6 + $0x2a0] sm:$0xff] }
 0x225   : > { %1525 = vmatpush2.msra.mxu0 %v1147_v43  ;;  %1437 = vmatprep.subr.mxu1 %v1016_v44  ;;  %v1630_v30 = vld [vmem:[#allocation6 + $0x98] sm:$0xff]  ;;  %v1697_v31 = vld [vmem:[#allocation6 + $0x2b0] sm:$0xff]  ;;  %v1624_v42 = vld [vmem:[#allocation6 + $0x68] sm:$0xff] }
 0x226   : > { %1526 = vmatprep.subr.mxu0 %v1144_v45  ;;  %1438 = vmatpush2.msra.mxu1 %v1015_v47  ;;  %v1626_v38 = vld [vmem:[#allocation6 + $0x78] sm:$0xff]  ;;  %v1625_v40 = vld [vmem:[#allocation6 + $0x70] sm:$0xff]  ;;  %v1692_v28 = vld [vmem:[#allocation6 + $0x288] sm:$0xff] }
 0x227   : > { %1527 = vmatpush2.msra.mxu0 %v1143_v48  ;;  %1439 = vmatprep.subr.mxu1 %v1012_v49  ;;  %v1694_v39 = vld [vmem:[#allocation6 + $0x298] sm:$0xff]  ;;  %v1693_v41 = vld [vmem:[#allocation6 + $0x290] sm:$0xff]  ;;  %v1623_v43 = vld [vmem:[#allocation6 + $0x60] sm:$0xff] }
 0x228   : > { %1528 = vmatprep.subr.mxu0 %v1140_v50  ;;  %1440 = vmatpush2.msra.mxu1 %v1011_v51  ;;  %v1691_v44 = vld [vmem:[#allocation6 + $0x280] sm:$0xff]  ;;  %v1622_v45 = vld [vmem:[#allocation6 + $0x58] sm:$0xff]  ;;  %v1621_v48 = vld [vmem:[#allocation6 + $0x50] sm:$0xff] }
 0x229   : > { %1529 = vmatpush2.msra.mxu0 %v1139_v52  ;;  %1441 = vmatprep.subr.mxu1 %v1008_v54  ;;  %v1690_v47 = vld [vmem:[#allocation6 + $0x278] sm:$0xff]  ;;  %v1689_v49 = vld [vmem:[#allocation6 + $0x270] sm:$0xff]  ;;  %v1620_v50 = vld [vmem:[#allocation6 + $0x48] sm:$0xff] }
 0x22a   : > { %1530 = vmatprep.subr.mxu0 %v1136_v55  ;;  %1442 = vmatpush2.msra.mxu1 %v1007_v60  ;;  %v1688_v51 = vld [vmem:[#allocation6 + $0x268] sm:$0xff]  ;;  %v1619_v52 = vld [vmem:[#allocation6 + $0x40] sm:$0xff]  ;;  %v1618_v55 = vld [vmem:[#allocation6 + $0x38] sm:$0xff] }
 0x22b   : > { %1531 = vmatpush2.msra.mxu0 %v1135_v61  ;;  %1443 = vmatprep.subr.mxu1 %v1004_v1  ;;  %v1687_v54 = vld [vmem:[#allocation6 + $0x260] sm:$0xff]  ;;  %v1686_v60 = vld [vmem:[#allocation6 + $0x258] sm:$0xff]  ;;  %v1617_v61 = vld [vmem:[#allocation6 + $0x30] sm:$0xff] }
 0x22c   : > { %1532 = vmatprep.subr.mxu0 %v1132_v2  ;;  %1444 = vmatpush2.msra.mxu1 %v1003_v3  ;;  %v1685_v1 = vld [vmem:[#allocation6 + $0x250] sm:$0xff]  ;;  %v1616_v2 = vld [vmem:[#allocation6 + $0x28] sm:$0xff] }
 0x22d   : > { %1533 = vmatpush2.msra.mxu0 %v1131_v4  ;;  %1445 = vmatprep.subr.mxu1 %v1000_v5  ;;  %v1684_v3 = vld [vmem:[#allocation6 + $0x248] sm:$0xff]  ;;  %v1615_v4 = vld [vmem:[#allocation6 + $0x20] sm:$0xff] }
 0x22e   : > { %1534 = vmatprep.subr.mxu0 %v1128_v6  ;;  %1446 = vmatpush2.msra.mxu1 %v999_v7  ;;  %v1683_v5 = vld [vmem:[#allocation6 + $0x240] sm:$0xff]  ;;  %v1614_v6 = vld [vmem:[#allocation6 + $0x18] sm:$0xff] }
 0x22f   : > { %1535 = vmatpush2.msra.mxu0 %v1127_v8  ;;  %1447 = vmatprep.subr.mxu1 %v996_v9  ;;  %v1682_v7 = vld [vmem:[#allocation6 + $0x238] sm:$0xff]  ;;  %v1613_v8 = vld [vmem:[#allocation6 + $0x10] sm:$0xff] }
 0x230   : > { %1536 = vmatprep.subr.mxu0 %v1124_v10  ;;  %1448 = vmatpush2.msra.mxu1 %v995_v11  ;;  %v1681_v9 = vld [vmem:[#allocation6 + $0x230] sm:$0xff]  ;;  %v1612_v10 = vld [vmem:[#allocation6 + $0x8] sm:$0xff] }
 0x231   : > { %1537 = vmatpush2.msra.mxu0 %v1123_v14  ;;  %1450 = vmatmul.mubr.f32.vlgmr.msra.gmra.mxu1 %v2852_v53  ;;  %v1638_v53 = vld [vmem:[#allocation6 + $0xd8] sm:$0xff]  ;;  %v1680_v11 = vld [vmem:[#allocation6 + $0x228] sm:$0xff]  ;;  %v1611_v14 = vld [vmem:[#allocation6] sm:$0xff] }
 0x232   : > { %1539 = vmatmul.mubr.f32.vlgmr.msra.gmra.mxu0 %v2859_v62  ;;  %1455 = vmatprep.mubr.f32.mxu1 %v2871_v12  ;;  %v1706_v62 = vld [vmem:[#allocation6 + $0x2f8] sm:$0xff]  ;;  %v1637_v12 = vld [vmem:[#allocation6 + $0xd0] sm:$0xff] }
 0x233   : > { %1544 = vmatprep.mubr.f32.mxu0 %v2873_v13  ;;  %1751 = vmatprep.subr.mxu1 %v1642_v15  ;;  %v1705_v13 = vld [vmem:[#allocation6 + $0x2f0] sm:$0xff]  ;;  %v1679_v15 = vld [vmem:[#allocation6 + $0x220] sm:$0xff] }
 0x234   : > { %1752 = vmatpush1.msra.mxu1 %v1641_v16  ;;  %1840 = vmatprep.subr.mxu0 %v1706_v62  ;;  %v1674_v16 = vld [vmem:[#allocation6 + $0x1f8] sm:$0xff]  ;;  %v1672_v62 = vld [vmem:[#allocation6 + $0x1e8] sm:$0xff] }
 0x235   : > { %1456 = vmatmul.mubr.f32.gmra.mxu1 %v2878_v18  ;;  %1753 = vmatprep.subr.mxu1 %v1640_v17  ;;  %v1636_v18 = vld [vmem:[#allocation6 + $0xc8] sm:$0xff]  ;;  %v1678_v17 = vld [vmem:[#allocation6 + $0x218] sm:$0xff] }
 0x236   : > { %1545 = vmatmul.mubr.f32.gmra.mxu0 %v2881_v19  ;;  %1461 = vmatprep.mubr.f32.mxu1 %v2892_v32  ;;  %v1704_v19 = vld [vmem:[#allocation6 + $0x2e8] sm:$0xff]  ;;  %v1635_v32 = vld [vmem:[#allocation6 + $0xc0] sm:$0xff] }
 0x237   : > { %1550 = vmatprep.mubr.f32.mxu0 %v2895_v33  ;;  %1754 = vmatpush1.msra.mxu1 %v1639_v20  ;;  %v1703_v33 = vld [vmem:[#allocation6 + $0x2e0] sm:$0xff]  ;;  %v1673_v20 = vld [vmem:[#allocation6 + $0x1f0] sm:$0xff] }
 0x238   : > { %1755 = vmatprep.subr.mxu1 %v1638_v53  ;;  %1841 = vmatpush1.msra.mxu0 %v1705_v13  ;;  %v1677_v53 = vld [vmem:[#allocation6 + $0x210] sm:$0xff]  ;;  %v1671_v13 = vld [vmem:[#allocation6 + $0x1e0] sm:$0xff] }
 0x239   : > { %1462 = vmatmul.mubr.f32.gmra.mxu1 %v2898_v46  ;;  %v1634_v46 = vld [vmem:[#allocation6 + $0xb8] sm:$0xff]  ;;  %1842 = vmatprep.subr.mxu0 %v1704_v19 }
 0x23a   : > { %1551 = vmatmul.mubr.f32.gmra.mxu0 %v2900_v29  ;;  %1467 = vmatprep.mubr.f32.mxu1 %v2907_v56  ;;  %v1702_v29 = vld [vmem:[#allocation6 + $0x2d8] sm:$0xff]  ;;  %v1701_v56 = vld [vmem:[#allocation6 + $0x2d0] sm:$0xff] }
 0x23b   : > { %1556 = vmatprep.mubr.f32.mxu0 %v2910_v59  ;;  %1756 = vmatpush1.msra.mxu1 %v1637_v12  ;;  %v1632_v59 = vld [vmem:[#allocation6 + $0xa8] sm:$0xff]  ;;  %v1670_v19 = vld [vmem:[#allocation6 + $0x1d8] sm:$0xff] }
 0x23c   : > { %1757 = vmatprep.subr.mxu1 %v1636_v18  ;;  %1843 = vmatpush1.msra.mxu0 %v1703_v33  ;;  %v1676_v12 = vld [vmem:[#allocation6 + $0x208] sm:$0xff]  ;;  %v1675_v18 = vld [vmem:[#allocation6 + $0x200] sm:$0xff]  ;;  %v1669_v33 = vld [vmem:[#allocation6 + $0x1d0] sm:$0xff] }
 0x23d   : > { %1468 = vmatmul.mubr.f32.gmra.mxu1 %v2912_v63  ;;  %1844 = vmatprep.subr.mxu0 %v1702_v29  ;;  %v1698_v63 = vld [vmem:[#allocation6 + $0x2b8] sm:$0xff]  ;;  %v1668_v29 = vld [vmem:[#allocation6 + $0x1c8] sm:$0xff] }
 0x23e   : > { %1557 = vmatmul.mubr.f32.gmra.mxu0 %v2914_v0  ;;  %1758 = vmatpush1.msra.mxu1 %v1635_v32  ;;  %v1629_v0 = vld [vmem:[#allocation6 + $0x90] sm:$0xff]  ;;  %v1738_v32 = vld [vmem:[#allocation6 + $0x3f8] sm:$0xff] }
 0x23f   : > { %1759 = vmatprep.subr.mxu1 %v1634_v46  ;;  %1845 = vmatpush1.msra.mxu0 %v1701_v56  ;;  %v1737_v46 = vld [vmem:[#allocation6 + $0x3f0] sm:$0xff]  ;;  %v1667_v56 = vld [vmem:[#allocation6 + $0x1c0] sm:$0xff] }
 0x240   : > { %1760 = vmatpush1.msra.mxu1 %v1633_v57  ;;  %1846 = vmatprep.subr.mxu0 %v1700_v21  ;;  %v1736_v57 = vld [vmem:[#allocation6 + $0x3e8] sm:$0xff]  ;;  %v1666_v21 = vld [vmem:[#allocation6 + $0x1b8] sm:$0xff] }
 0x241   : > { %1761 = vmatprep.subr.mxu1 %v1632_v59  ;;  %1847 = vmatpush1.msra.mxu0 %v1699_v25  ;;  %v1735_v59 = vld [vmem:[#allocation6 + $0x3e0] sm:$0xff]  ;;  %v1665_v25 = vld [vmem:[#allocation6 + $0x1b0] sm:$0xff] }
 0x242   : > { %1762 = vmatpush1.msra.mxu1 %v1631_v58  ;;  %1848 = vmatprep.subr.mxu0 %v1698_v63  ;;  %v1734_v58 = vld [vmem:[#allocation6 + $0x3d8] sm:$0xff]  ;;  %v1664_v63 = vld [vmem:[#allocation6 + $0x1a8] sm:$0xff] }
 0x243   : > { %1763 = vmatprep.subr.mxu1 %v1630_v30  ;;  %1849 = vmatpush1.msra.mxu0 %v1697_v31  ;;  %v1733_v30 = vld [vmem:[#allocation6 + $0x3d0] sm:$0xff]  ;;  %v1663_v31 = vld [vmem:[#allocation6 + $0x1a0] sm:$0xff] }
 0x244   : > { %1764 = vmatpush1.msra.mxu1 %v1629_v0  ;;  %1850 = vmatprep.subr.mxu0 %v1696_v35  ;;  %v1732_v0 = vld [vmem:[#allocation6 + $0x3c8] sm:$0xff]  ;;  %v1662_v35 = vld [vmem:[#allocation6 + $0x198] sm:$0xff] }
 0x245   : > { %1765 = vmatprep.subr.mxu1 %v1628_v34  ;;  %1851 = vmatpush1.msra.mxu0 %v1695_v37  ;;  %v1731_v34 = vld [vmem:[#allocation6 + $0x3c0] sm:$0xff]  ;;  %v1661_v37 = vld [vmem:[#allocation6 + $0x190] sm:$0xff] }
 0x246   : > { %1766 = vmatpush1.msra.mxu1 %v1627_v36  ;;  %1852 = vmatprep.subr.mxu0 %v1694_v39  ;;  %v1730_v36 = vld [vmem:[#allocation6 + $0x3b8] sm:$0xff]  ;;  %v1660_v39 = vld [vmem:[#allocation6 + $0x188] sm:$0xff] }
 0x247   : > { %1767 = vmatprep.subr.mxu1 %v1626_v38  ;;  %1853 = vmatpush1.msra.mxu0 %v1693_v41  ;;  %v1729_v38 = vld [vmem:[#allocation6 + $0x3b0] sm:$0xff]  ;;  %v1659_v41 = vld [vmem:[#allocation6 + $0x180] sm:$0xff] }
 0x248   : > { %1768 = vmatpush1.msra.mxu1 %v1625_v40  ;;  %1854 = vmatprep.subr.mxu0 %v1692_v28  ;;  %v1728_v40 = vld [vmem:[#allocation6 + $0x3a8] sm:$0xff]  ;;  %v1658_v28 = vld [vmem:[#allocation6 + $0x178] sm:$0xff] }
 0x249   : > { %1769 = vmatprep.subr.mxu1 %v1624_v42  ;;  %1855 = vmatpush1.msra.mxu0 %v1691_v44  ;;  %v1727_v42 = vld [vmem:[#allocation6 + $0x3a0] sm:$0xff]  ;;  %v1657_v44 = vld [vmem:[#allocation6 + $0x170] sm:$0xff] }
 0x24a   : > { %1770 = vmatpush1.msra.mxu1 %v1623_v43  ;;  %1856 = vmatprep.subr.mxu0 %v1690_v47  ;;  %v1726_v43 = vld [vmem:[#allocation6 + $0x398] sm:$0xff]  ;;  %v1656_v47 = vld [vmem:[#allocation6 + $0x168] sm:$0xff] }
 0x24b   : > { %1771 = vmatprep.subr.mxu1 %v1622_v45  ;;  %1857 = vmatpush1.msra.mxu0 %v1689_v49  ;;  %v1725_v45 = vld [vmem:[#allocation6 + $0x390] sm:$0xff]  ;;  %v1655_v49 = vld [vmem:[#allocation6 + $0x160] sm:$0xff] }
 0x24c   : > { %1772 = vmatpush1.msra.mxu1 %v1621_v48  ;;  %1858 = vmatprep.subr.mxu0 %v1688_v51  ;;  %v1724_v48 = vld [vmem:[#allocation6 + $0x388] sm:$0xff]  ;;  %v1654_v51 = vld [vmem:[#allocation6 + $0x158] sm:$0xff] }
 0x24d   : > { %1773 = vmatprep.subr.mxu1 %v1620_v50  ;;  %1859 = vmatpush1.msra.mxu0 %v1687_v54  ;;  %v1723_v50 = vld [vmem:[#allocation6 + $0x380] sm:$0xff]  ;;  %v1653_v54 = vld [vmem:[#allocation6 + $0x150] sm:$0xff] }
 0x24e   : > { %1774 = vmatpush1.msra.mxu1 %v1619_v52  ;;  %1860 = vmatprep.subr.mxu0 %v1686_v60  ;;  %v1722_v52 = vld [vmem:[#allocation6 + $0x378] sm:$0xff]  ;;  %v1652_v60 = vld [vmem:[#allocation6 + $0x148] sm:$0xff] }
 0x24f   : > { %1775 = vmatprep.subr.mxu1 %v1618_v55  ;;  %1861 = vmatpush1.msra.mxu0 %v1685_v1  ;;  %v1721_v55 = vld [vmem:[#allocation6 + $0x370] sm:$0xff]  ;;  %v1651_v1 = vld [vmem:[#allocation6 + $0x140] sm:$0xff] }
 0x250   : > { %1776 = vmatpush1.msra.mxu1 %v1617_v61  ;;  %1862 = vmatprep.subr.mxu0 %v1684_v3  ;;  %v1720_v61 = vld [vmem:[#allocation6 + $0x368] sm:$0xff]  ;;  %v1650_v3 = vld [vmem:[#allocation6 + $0x138] sm:$0xff] }
 0x251   : > { %1777 = vmatprep.subr.mxu1 %v1616_v2  ;;  %1863 = vmatpush1.msra.mxu0 %v1683_v5  ;;  %v1719_v2 = vld [vmem:[#allocation6 + $0x360] sm:$0xff]  ;;  %v1649_v5 = vld [vmem:[#allocation6 + $0x130] sm:$0xff] }
 0x252   : > { %1778 = vmatpush1.msra.mxu1 %v1615_v4  ;;  %1864 = vmatprep.subr.mxu0 %v1682_v7  ;;  %v1718_v4 = vld [vmem:[#allocation6 + $0x358] sm:$0xff]  ;;  %v1647_v7 = vld [vmem:[#allocation6 + $0x120] sm:$0xff] }
 0x253   : > { %1779 = vmatprep.subr.mxu1 %v1614_v6  ;;  %1865 = vmatpush1.msra.mxu0 %v1681_v9  ;;  %v1648_v6 = vld [vmem:[#allocation6 + $0x128] sm:$0xff]  ;;  %v1646_v9 = vld [vmem:[#allocation6 + $0x118] sm:$0xff] }
 0x254   : > { %1780 = vmatpush1.msra.mxu1 %v1613_v8  ;;  %1866 = vmatprep.subr.mxu0 %v1680_v11  ;;  %v1717_v8 = vld [vmem:[#allocation6 + $0x350] sm:$0xff] }
 0x255   : > { %1781 = vmatprep.subr.mxu1 %v1612_v10  ;;  %1867 = vmatpush1.msra.mxu0 %v1679_v15  ;;  %v1716_v10 = vld [vmem:[#allocation6 + $0x348] sm:$0xff]  ;;  %v1645_v11 = vld [vmem:[#allocation6 + $0x110] sm:$0xff] }
 0x256   : > { %1782 = vmatpush1.msra.mxu1 %v1611_v14  ;;  %1868 = vmatprep.subr.mxu0 %v1678_v17  ;;  %v1715_v14 = vld [vmem:[#allocation6 + $0x340] sm:$0xff]  ;;  %v1644_v15 = vld [vmem:[#allocation6 + $0x108] sm:$0xff] }
 0x257   : > { %1783 = vmatprep.subr.mxu1 %v1674_v16  ;;  %1869 = vmatpush1.msra.mxu0 %v1677_v53  ;;  %v1714_v16 = vld [vmem:[#allocation6 + $0x338] sm:$0xff]  ;;  %v1643_v17 = vld [vmem:[#allocation6 + $0x100] sm:$0xff]  ;;  %v1712_v53 = vld [vmem:[#allocation6 + $0x328] sm:$0xff] }
 0x258   : > { %1784 = vmatpush2.msra.mxu1 %v1673_v20  ;;  %1870 = vmatprep.subr.mxu0 %v1676_v12  ;;  %v1713_v20 = vld [vmem:[#allocation6 + $0x330] sm:$0xff]  ;;  %v1710_v12 = vld [vmem:[#allocation6 + $0x318] sm:$0xff] }
 0x259   : > { %1785 = vmatprep.subr.mxu1 %v1672_v62  ;;  %1871 = vmatpush1.msra.mxu0 %v1675_v18  ;;  %v1711_v62 = vld [vmem:[#allocation6 + $0x320] sm:$0xff]  ;;  %v1708_v18 = vld [vmem:[#allocation6 + $0x308] sm:$0xff] }
 0x25a   : > { %1786 = vmatpush2.msra.mxu1 %v1671_v13  ;;  %1872 = vmatprep.subr.mxu0 %v1738_v32  ;;  %v1709_v13 = vld [vmem:[#allocation6 + $0x310] sm:$0xff]  ;;  %v2939_v32 = vld [vmem:[%s3028_s6] sm:$0xf] }
 0x25b   : > { %1787 = vmatprep.subr.mxu1 %v1670_v19  ;;  %1873 = vmatpush2.msra.mxu0 %v1737_v46  ;;  %v1707_v19 = vld [vmem:[#allocation6 + $0x300] sm:$0xff]  ;;  %v1194_v46 = vrot.slane %v2939_v32, %v2826_v26 }
 0x25c   : > { %1788 = vmatpush2.msra.mxu1 %v1669_v33  ;;  %1874 = vmatprep.subr.mxu0 %v1736_v57  ;;  %v1190_v33 = vrot.slane %v2939_v32, %v2819_v23 }
 0x25d   : > { %1789 = vmatprep.subr.mxu1 %v1668_v29  ;;  %1875 = vmatpush2.msra.mxu0 %v1735_v59 }
 0x25e   : > { %1790 = vmatpush2.msra.mxu1 %v1667_v56  ;;  %1876 = vmatprep.subr.mxu0 %v1734_v58 }
 0x25f   : > { %1791 = vmatprep.subr.mxu1 %v1666_v21  ;;  %1877 = vmatpush2.msra.mxu0 %v1733_v30 }
 0x260   : > { %1792 = vmatpush2.msra.mxu1 %v1665_v25  ;;  %1878 = vmatprep.subr.mxu0 %v1732_v0 }
 0x261   : > { %1793 = vmatprep.subr.mxu1 %v1664_v63  ;;  %1879 = vmatpush2.msra.mxu0 %v1731_v34 }
 0x262   : > { %1794 = vmatpush2.msra.mxu1 %v1663_v31  ;;  %1880 = vmatprep.subr.mxu0 %v1730_v36 }
 0x263   : > { %1795 = vmatprep.subr.mxu1 %v1662_v35  ;;  %1881 = vmatpush2.msra.mxu0 %v1729_v38 }
 0x264   : > { %1796 = vmatpush2.msra.mxu1 %v1661_v37  ;;  %1882 = vmatprep.subr.mxu0 %v1728_v40 }
 0x265   : > { %1797 = vmatprep.subr.mxu1 %v1660_v39  ;;  %1883 = vmatpush2.msra.mxu0 %v1727_v42 }
 0x266   : > { %1798 = vmatpush2.msra.mxu1 %v1659_v41  ;;  %1884 = vmatprep.subr.mxu0 %v1726_v43 }
 0x267   : > { %1799 = vmatprep.subr.mxu1 %v1658_v28  ;;  %1885 = vmatpush2.msra.mxu0 %v1725_v45 }
 0x268   : > { %1800 = vmatpush2.msra.mxu1 %v1657_v44  ;;  %1886 = vmatprep.subr.mxu0 %v1724_v48 }
 0x269   : > { %1801 = vmatprep.subr.mxu1 %v1656_v47  ;;  %1887 = vmatpush2.msra.mxu0 %v1723_v50 }
 0x26a   : > { %1802 = vmatpush2.msra.mxu1 %v1655_v49  ;;  %1888 = vmatprep.subr.mxu0 %v1722_v52 }
 0x26b   : > { %1803 = vmatprep.subr.mxu1 %v1654_v51  ;;  %1889 = vmatpush2.msra.mxu0 %v1721_v55 }
 0x26c   : > { %1804 = vmatpush2.msra.mxu1 %v1653_v54  ;;  %1890 = vmatprep.subr.mxu0 %v1720_v61 }
 0x26d   : > { %1805 = vmatprep.subr.mxu1 %v1652_v60  ;;  %1891 = vmatpush2.msra.mxu0 %v1719_v2 }
 0x26e   : > { %1806 = vmatpush2.msra.mxu1 %v1651_v1  ;;  %1892 = vmatprep.subr.mxu0 %v1718_v4 }
 0x26f   : > { %1807 = vmatprep.subr.mxu1 %v1650_v3  ;;  %1893 = vmatpush2.msra.mxu0 %v1717_v8 }
 0x270   : > { %1808 = vmatpush2.msra.mxu1 %v1649_v5  ;;  %1894 = vmatprep.subr.mxu0 %v1716_v10 }
 0x271   : > { %1809 = vmatprep.subr.mxu1 %v1648_v6  ;;  %1895 = vmatpush2.msra.mxu0 %v1715_v14 }
 0x272   : > { %1810 = vmatpush2.msra.mxu1 %v1647_v7  ;;  %1896 = vmatprep.subr.mxu0 %v1714_v16 }
 0x273   : > { %1811 = vmatprep.subr.mxu1 %v1646_v9  ;;  %1897 = vmatpush2.msra.mxu0 %v1713_v20  ;;  %v1202_v20 = vrot.slane %v2939_v32, %v697_v27 }
 0x274   : > { %1812 = vmatpush2.msra.mxu1 %v1645_v11  ;;  %1898 = vmatprep.subr.mxu0 %v1712_v53 }
 0x275   : > { %1813 = vmatprep.subr.mxu1 %v1644_v15  ;;  %1899 = vmatpush2.msra.mxu0 %v1711_v62 }
 0x276   : > { %1814 = vmatpush2.msra.mxu1 %v1643_v17  ;;  %1900 = vmatprep.subr.mxu0 %v1710_v12  ;;  %v1198_v17 = vrot.slane %v2939_v32, %v693_v24 }
 0x277   : > { %1901 = vmatpush2.msra.mxu0 %v1709_v13 }
 0x278   : > { %1902 = vmatprep.subr.mxu0 %v1708_v18 }
 0x279   : > { %1903 = vmatpush2.msra.mxu0 %v1707_v19 }
 0x2aa   : > { %v1273_v29 = vpop.f32.mrf.mxu1 }
 0x2ab   : > { %v1362_v57 = vpop.f32.mrf.mxu0  ;;  %v1274_v56 = vadd.f32 %v1273_v29, %v1190_v33 }
 0x2ac   : > { %v1275_v59 = vpop.f32.mrf.mxu1 }
 0x2ad   : > { %v1364_v21 = vpop.f32.mrf.mxu0  ;;  %v1363_v58 = vadd.f32 %v1362_v57, %v1274_v56  ;;  %v1276_v25 = vadd.f32 %v1275_v59, %v1194_v46 }
 0x2af   : > { %v1365_v30 = vadd.f32 %v1364_v21, %v1276_v25  ;;  %v1579_v63 = vmul.f32 0.01, %v1363_v58  ;;  %vm1563_vm2 = vcmp.ge.f32.partialorder %v1363_v58, 0.0 }
 0x2b0   : > { %v1279_v0 = vpop.f32.mrf.mxu1 }
 0x2b1   : > { %v1368_v31 = vpop.f32.mrf.mxu0  ;;  %v1580_v34 = vmul.f32 0.01, %v1365_v30  ;;  %v1280_v35 = vadd.f32 %v1279_v0, %v1190_v33  ;;  %vm1564_vm3 = vcmp.ge.f32.partialorder %v1365_v30, 0.0  ;;  %v1595_v40 = vsel %vm1563_vm2, %v1363_v58, %v1579_v63 }
 0x2b2   : > { %v1281_v36 = vpop.f32.mrf.mxu1 }
 0x2b3   : > { %v1369_v37 = vadd.f32 %v1368_v31, %v1280_v35  ;;  %v1282_v38 = vadd.f32 %v1281_v36, %v1194_v46  ;;  %v1596_v39 = vsel %vm1564_vm3, %v1365_v30, %v1580_v34  ;;  %v1370_v41 = vpop.f32.mrf.mxu0 }
 0x2b4   : > { %1815 = vmatprep.mubr.f32.mxu1 %v1596_v39 }
 0x2b5   : > { %v1371_v42 = vadd.f32 %v1370_v41, %v1282_v38  ;;  %1816 = vmatmul.mubr.f32.vlgmr.msra.gmra.mxu1 %v1595_v40  ;;  %v1583_v28 = vmul.f32 0.01, %v1369_v37  ;;  %vm1567_vm5 = vcmp.ge.f32.partialorder %v1369_v37, 0.0 }
 0x2b6   : > { %v1285_v43 = vpop.f32.mrf.mxu1 }
 0x2b7   : > { %v1374_v44 = vpop.f32.mrf.mxu0  ;;  %v1584_v45 = vmul.f32 0.01, %v1371_v42  ;;  %vm1568_vm4 = vcmp.ge.f32.partialorder %v1371_v42, 0.0  ;;  %v1286_v47 = vadd.f32 %v1285_v43, %v1190_v33  ;;  %v1599_v54 = vsel %vm1567_vm5, %v1369_v37, %v1583_v28 }
 0x2b8   : > { %v1287_v48 = vpop.f32.mrf.mxu1 }
 0x2b9   : > { %v1376_v49 = vpop.f32.mrf.mxu0  ;;  %v1600_v50 = vsel %vm1568_vm4, %v1371_v42, %v1584_v45  ;;  %v1288_v51 = vadd.f32 %v1287_v48, %v1194_v46  ;;  %v1375_v52 = vadd.f32 %v1374_v44, %v1286_v47 }
 0x2ba   : > { %1821 = vmatprep.mubr.f32.mxu1 %v1600_v50 }
 0x2bb   : > { %1822 = vmatmul.mubr.f32.gmra.mxu1 %v1599_v54  ;;  %v1587_v55 = vmul.f32 0.01, %v1375_v52  ;;  %v1377_v60 = vadd.f32 %v1376_v49, %v1288_v51  ;;  %vm1571_vm6 = vcmp.ge.f32.partialorder %v1375_v52, 0.0 }
 0x2bc   : > { %v1291_v61 = vpop.f32.mrf.mxu1 }
 0x2bd   : > { %v1380_v1 = vpop.f32.mrf.mxu0  ;;  %v1292_v2 = vadd.f32 %v1291_v61, %v1190_v33  ;;  %v1588_v3 = vmul.f32 0.01, %v1377_v60  ;;  %vm1572_vm7 = vcmp.ge.f32.partialorder %v1377_v60, 0.0  ;;  %v1603_v6 = vsel %vm1571_vm6, %v1375_v52, %v1587_v55 }
 0x2be   : > { %v1293_v4 = vpop.f32.mrf.mxu1 }
 0x2bf   : > { %v1382_v5 = vpop.f32.mrf.mxu0  ;;  %v1294_v7 = vadd.f32 %v1293_v4, %v1194_v46  ;;  %v1381_v8 = vadd.f32 %v1380_v1, %v1292_v2  ;;  %v1604_v9 = vsel %vm1572_vm7, %v1377_v60, %v1588_v3  ;;  %v1968_v3 = vld [vmem:[#allocation7 + $0xf8] sm:$0xff] }
 0x2c0   : > { %1827 = vmatprep.mubr.f32.mxu1 %v1604_v9  ;;  %v1952_v4 = vld [vmem:[#allocation7 + $0x78] sm:$0xff]  ;;  %2313 = vmatprep.subr.mxu1 %v1968_v3  ;;  %v1965_v9 = vld [vmem:[#allocation7 + $0xe0] sm:$0xff] }
 0x2c1   : > { %v1591_v10 = vmul.f32 0.01, %v1381_v8  ;;  %v1383_v11 = vadd.f32 %v1382_v5, %v1294_v7  ;;  %1828 = vmatmul.mubr.f32.gmra.mxu1 %v1603_v6  ;;  %vm1575_vm8 = vcmp.ge.f32.partialorder %v1381_v8, 0.0  ;;  %v1967_v5 = vld [vmem:[#allocation7 + $0xf0] sm:$0xff]  ;;  %v1966_v7 = vld [vmem:[#allocation7 + $0xe8] sm:$0xff] }
 0x2c2   : > { %v1951_v6 = vld [vmem:[#allocation7 + $0x70] sm:$0xff]  ;;  %2314 = vmatpush3.msra.mxu1 %v1952_v4 }
 0x2c3   : > { %v1592_v14 = vmul.f32 0.01, %v1383_v11  ;;  %vm1576_vm9 = vcmp.ge.f32.partialorder %v1383_v11, 0.0  ;;  %v1607_v15 = vsel %vm1575_vm8, %v1381_v8, %v1591_v10  ;;  %2315 = vmatprep.subr.mxu1 %v1967_v5  ;;  %v1950_v8 = vld [vmem:[#allocation7 + $0x68] sm:$0xff]  ;;  %v1949_v10 = vld [vmem:[#allocation7 + $0x60] sm:$0xff] }
 0x2c4   : > { %2316 = vmatpush3.msra.mxu1 %v1951_v6 }
 0x2c5   : > { %v1608_v16 = vsel %vm1576_vm9, %v1383_v11, %v1592_v14  ;;  %2317 = vmatprep.subr.mxu1 %v1966_v7  ;;  %v1964_v11 = vld [vmem:[#allocation7 + $0xd8] sm:$0xff] }
 0x2c6   : > { %1833 = vmatprep.mubr.f32.mxu1 %v1608_v16  ;;  %2318 = vmatpush3.msra.mxu1 %v1950_v8  ;;  %v1948_v14 = vld [vmem:[#allocation7 + $0x58] sm:$0xff]  ;;  %v1947_v16 = vld [vmem:[#allocation7 + $0x50] sm:$0xff] }
 0x2c7   : > { %1834 = vmatmul.mubr.f32.gmra.mxu1 %v1607_v15  ;;  %2319 = vmatprep.subr.mxu1 %v1965_v9  ;;  %v1963_v15 = vld [vmem:[#allocation7 + $0xd0] sm:$0xff] }
 0x2c8   : > { %2320 = vmatpush3.msra.mxu1 %v1949_v10 }
 0x2c9   : > { %2321 = vmatprep.subr.mxu1 %v1964_v11 }
 0x2ca   : > { %2322 = vmatpush3.msra.mxu1 %v1948_v14 }
 0x2cb   : > { %2323 = vmatprep.subr.mxu1 %v1963_v15 }
 0x2cc   : > { %2324 = vmatpush3.msra.mxu1 %v1947_v16 }
 0x2f1   : > { %v1451_v53 = vpop.f32.mrf.mxu1 }
 0x2f2   : > { %v1540_v62 = vpop.f32.mrf.mxu0  ;;  %v1452_v12 = vadd.f32 %v1451_v53, %v1198_v17  ;;  %v1961_v53 = vld [vmem:[#allocation7 + $0xc0] sm:$0xff] }
 0x2f3   : > { %v1453_v13 = vpop.f32.mrf.mxu1 }
 0x2f4   : > { %v1542_v18 = vpop.f32.mrf.mxu0  ;;  %v1541_v19 = vadd.f32 %v1540_v62, %v1452_v12  ;;  %v1454_v33 = vadd.f32 %v1453_v13, %v1202_v20  ;;  %v1945_v62 = vld [vmem:[#allocation7 + $0x40] sm:$0xff]  ;;  %v1960_v12 = vld [vmem:[#allocation7 + $0xb8] sm:$0xff] }
 0x2f5   : > { %v1457_v46 = vpop.f32.mrf.mxu1  ;;  %v1944_v13 = vld [vmem:[#allocation7 + $0x38] sm:$0xff] }
 0x2f6   : > { %v1546_v29 = vpop.f32.mrf.mxu0  ;;  %v1543_v57 = vadd.f32 %v1542_v18, %v1454_v33  ;;  %v1458_v56 = vadd.f32 %v1457_v46, %v1198_v17  ;;  %v1581_v59 = vmul.f32 0.01, %v1541_v19  ;;  %vm1565_vm10 = vcmp.ge.f32.partialorder %v1541_v19, 0.0  ;;  %v1959_v18 = vld [vmem:[#allocation7 + $0xb0] sm:$0xff]  ;;  %v1958_v33 = vld [vmem:[#allocation7 + $0xa8] sm:$0xff] }
 0x2f7   : > { %v1459_v21 = vpop.f32.mrf.mxu1  ;;  %v1942_v46 = vld [vmem:[#allocation7 + $0x28] sm:$0xff] }
 0x2f8   : > { %v1548_v58 = vpop.f32.mrf.mxu0  ;;  %v1582_v24 = vmul.f32 0.01, %v1543_v57  ;;  %v1547_v25 = vadd.f32 %v1546_v29, %v1458_v56  ;;  %v1460_v22 = vadd.f32 %v1459_v21, %v1202_v20  ;;  %vm1566_vm11 = vcmp.ge.f32.partialorder %v1543_v57, 0.0  ;;  %v1957_v29 = vld [vmem:[#allocation7 + $0xa0] sm:$0xff]  ;;  %v1956_v56 = vld [vmem:[#allocation7 + $0x98] sm:$0xff]  ;;  %v1955_v21 = vld [vmem:[#allocation7 + $0x90] sm:$0xff] }
 0x2f9   : > { %v1463_v30 = vpop.f32.mrf.mxu1  ;;  %v1597_v31 = vsel %vm1565_vm10, %v1541_v19, %v1581_v59  ;;  %v1943_v19 = vld [vmem:[#allocation7 + $0x30] sm:$0xff]  ;;  %v1940_v59 = vld [vmem:[#allocation7 + $0x18] sm:$0xff] }
 0x2fa   : > { %v1552_v27 = vpop.f32.mrf.mxu0  ;;  %v1549_v32 = vadd.f32 %v1548_v58, %v1460_v22  ;;  %v1464_v63 = vadd.f32 %v1463_v30, %v1198_v17  ;;  %v1598_v0 = vsel %vm1566_vm11, %v1543_v57, %v1582_v24  ;;  %v1585_v34 = vmul.f32 0.01, %v1547_v25  ;;  %v1941_v57 = vld [vmem:[#allocation7 + $0x20] sm:$0xff]  ;;  %v1939_v58 = vld [vmem:[#allocation7 + $0x10] sm:$0xff]  ;;  %v1954_v24 = vld [vmem:[#allocation7 + $0x88] sm:$0xff] }
 0x2fb   : > { %v1465_v35 = vpop.f32.mrf.mxu1  ;;  %1904 = vmatprep.mubr.f32.mxu0 %v1598_v0  ;;  %vm1569_vm12 = vcmp.ge.f32.partialorder %v1547_v25, 0.0  ;;  %v1953_v22 = vld [vmem:[#allocation7 + $0x80] sm:$0xff] }
 0x2fc   : > { %v1554_v36 = vpop.f32.mrf.mxu0  ;;  %v1586_v37 = vmul.f32 0.01, %v1549_v32  ;;  %v1553_v38 = vadd.f32 %v1552_v27, %v1464_v63  ;;  %v1466_v39 = vadd.f32 %v1465_v35, %v1202_v20  ;;  %1905 = vmatmul.mubr.f32.vlgmr.msra.gmra.mxu0 %v1597_v31  ;;  %vm1570_vm13 = vcmp.ge.f32.partialorder %v1549_v32, 0.0  ;;  %v1937_v30 = vld [vmem:[#allocation7] sm:$0xff]  ;;  %v2088_v27 = vld [vmem:[%s3033_s11 + $0x78] sm:$0xff]  ;;  %v2086_v63 = vld [vmem:[%s3033_s11 + $0x68] sm:$0xff] }
 0x2fd   : > { %v1469_v40 = vpop.f32.mrf.mxu1  ;;  %v1601_v47 = vsel %vm1569_vm12, %v1547_v25, %v1585_v34  ;;  %v1938_v25 = vld [vmem:[#allocation7 + $0x8] sm:$0xff]  ;;  %2385 = vmatprep.subr.mxu0 %v2088_v27  ;;  %v2085_v0 = vld [vmem:[%s3033_s11 + $0x60] sm:$0xff]  ;;  %v2084_v31 = vld [vmem:[%s3033_s11 + $0x58] sm:$0xff] }
 0x2fe   : > { %v1558_v41 = vpop.f32.mrf.mxu0  ;;  %v1555_v42 = vadd.f32 %v1554_v36, %v1466_v39  ;;  %v1470_v28 = vadd.f32 %v1469_v40, %v1198_v17  ;;  %v1602_v43 = vsel %vm1570_vm13, %v1549_v32, %v1586_v37  ;;  %v1589_v44 = vmul.f32 0.01, %v1553_v38  ;;  %v1962_v17 = vld [vmem:[#allocation7 + $0xc8] sm:$0xff]  ;;  %v2087_v32 = vld [vmem:[%s3033_s11 + $0x70] sm:$0xff]  ;;  %2386 = vmatpush3.msra.mxu0 %v2088_v27  ;;  %v2081_v36 = vld [vmem:[%s3033_s11 + $0x40] sm:$0xff] }
 0x2ff   : > { %v1471_v45 = vpop.f32.mrf.mxu1  ;;  %1910 = vmatprep.mubr.f32.mxu0 %v1602_v43  ;;  %vm1573_vm14 = vcmp.ge.f32.partialorder %v1553_v38, 0.0  ;;  %2325 = vmatprep.subr.mxu1 %v1962_v17  ;;  %v2083_v34 = vld [vmem:[%s3033_s11 + $0x50] sm:$0xff]  ;;  %v2082_v35 = vld [vmem:[%s3033_s11 + $0x48] sm:$0xff]  ;;  %v2080_v37 = vld [vmem:[%s3033_s11 + $0x38] sm:$0xff] }
 0x300   : > { %v1590_v48 = vmul.f32 0.01, %v1555_v42  ;;  %v1559_v49 = vadd.f32 %v1558_v41, %v1470_v28  ;;  %v1472_v50 = vadd.f32 %v1471_v45, %v1202_v20  ;;  %1911 = vmatmul.mubr.f32.gmra.mxu0 %v1601_v47  ;;  %vm1574_vm15 = vcmp.ge.f32.partialorder %v1555_v42, 0.0  ;;  %v1560_v51 = vpop.f32.mrf.mxu0  ;;  %v1946_v20 = vld [vmem:[#allocation7 + $0x48] sm:$0xff]  ;;  %2387 = vmatprep.subr.mxu0 %v2087_v32  ;;  %v1739_v41 = vld [vmem:[%s3030_s8] sm:$0x3] }
 0x301   : > { %v1605_v60 = vsel %vm1573_vm14, %v1553_v38, %v1589_v44  ;;  %2326 = vmatpush3.msra.mxu1 %v1946_v20  ;;  %2388 = vmatpush3.msra.mxu0 %v2087_v32  ;;  %v1748_v43 = vrot.slane %v1739_v41, %v2826_v26 }
 0x302   : > { %v1561_v52 = vadd.f32 %v1560_v51, %v1472_v50  ;;  %v1606_v54 = vsel %vm1574_vm15, %v1555_v42, %v1590_v48  ;;  %v1593_v55 = vmul.f32 0.01, %v1559_v49  ;;  %vm1577_vm2 = vcmp.ge.f32.partialorder %v1559_v49, 0.0  ;;  %2327 = vmatprep.subr.mxu1 %v1961_v53  ;;  %2389 = vmatprep.subr.mxu0 %v2086_v63 }
 0x303   : > { %1916 = vmatprep.mubr.f32.mxu0 %v1606_v54  ;;  %2328 = vmatpush3.msra.mxu1 %v1945_v62  ;;  %v1744_v42 = vrot.slane %v1739_v41, %v2819_v23 }
 0x304   : > { %v1594_v61 = vmul.f32 0.01, %v1561_v52  ;;  %1917 = vmatmul.mubr.f32.gmra.mxu0 %v1605_v60  ;;  %vm1578_vm1 = vcmp.ge.f32.partialorder %v1561_v52, 0.0  ;;  %v1609_v2 = vsel %vm1577_vm2, %v1559_v49, %v1593_v55  ;;  %2329 = vmatprep.subr.mxu1 %v1960_v12 }
 0x305   : > { %2330 = vmatpush3.msra.mxu1 %v1944_v13  ;;  %2390 = vmatpush3.msra.mxu0 %v2086_v63 }
 0x306   : > { %v1610_v1 = vsel %vm1578_vm1, %v1561_v52, %v1594_v61  ;;  %2331 = vmatprep.subr.mxu1 %v1959_v18  ;;  %2391 = vmatprep.subr.mxu0 %v2085_v0 }
 0x307   : > { %1922 = vmatprep.mubr.f32.mxu0 %v1610_v1  ;;  %2332 = vmatpush3.msra.mxu1 %v1943_v19 }
 0x308   : > { %1923 = vmatmul.mubr.f32.gmra.mxu0 %v1609_v2  ;;  %2333 = vmatprep.subr.mxu1 %v1958_v33  ;;  %v2079_v33 = vld [vmem:[%s3033_s11 + $0x30] sm:$0xff] }
 0x309   : > { %2334 = vmatpush3.msra.mxu1 %v1942_v46  ;;  %2392 = vmatpush3.msra.mxu0 %v2085_v0  ;;  %v2078_v46 = vld [vmem:[%s3033_s11 + $0x28] sm:$0xff] }
 0x30a   : > { %2335 = vmatprep.subr.mxu1 %v1957_v29  ;;  %2393 = vmatprep.subr.mxu0 %v2084_v31  ;;  %v2077_v29 = vld [vmem:[%s3033_s11 + $0x20] sm:$0xff] }
 0x30b   : > { %2336 = vmatpush3.msra.mxu1 %v1941_v57  ;;  %2394 = vmatpush3.msra.mxu0 %v2084_v31  ;;  %v2076_v57 = vld [vmem:[%s3033_s11 + $0x18] sm:$0xff] }
 0x30c   : > { %2337 = vmatprep.subr.mxu1 %v1956_v56  ;;  %2395 = vmatprep.subr.mxu0 %v2083_v34  ;;  %v2075_v56 = vld [vmem:[%s3033_s11 + $0x10] sm:$0xff] }
 0x30d   : > { %2338 = vmatpush3.msra.mxu1 %v1940_v59  ;;  %2396 = vmatpush3.msra.mxu0 %v2083_v34  ;;  %v2074_v59 = vld [vmem:[%s3033_s11 + $0x8] sm:$0xff] }
 0x30e   : > { %2339 = vmatprep.subr.mxu1 %v1955_v21  ;;  %2397 = vmatprep.subr.mxu0 %v2082_v35  ;;  %v2073_v21 = vld [vmem:[%s3033_s11] sm:$0xff] }
 0x30f   : > { %2340 = vmatpush3.msra.mxu1 %v1939_v58  ;;  %2398 = vmatpush3.msra.mxu0 %v2082_v35 }
 0x310   : > { %2341 = vmatprep.subr.mxu1 %v1954_v24  ;;  %2399 = vmatprep.subr.mxu0 %v2081_v36  ;;  %v2304_v24 = vld [vmem:[%s3032_s10] ss:$0 sm:$0xff] }
 0x311   : > { %2342 = vmatpush3.msra.mxu1 %v1938_v25  ;;  %2400 = vmatpush3.msra.mxu0 %v2081_v36 }
 0x312   : > { %2343 = vmatprep.subr.mxu1 %v1953_v22  ;;  %2401 = vmatprep.subr.mxu0 %v2080_v37 }
 0x313   : > { %2344 = vmatpush3.msra.mxu1 %v1937_v30  ;;  %2402 = vmatpush3.msra.mxu0 %v2080_v37 }
 0x314   : > { %2403 = vmatprep.subr.mxu0 %v2079_v33 }
 0x315   : > { %2404 = vmatpush3.msra.mxu0 %v2079_v33 }
 0x316   : > { %2405 = vmatprep.subr.mxu0 %v2078_v46 }
 0x317   : > { %2406 = vmatpush3.msra.mxu0 %v2078_v46 }
 0x318   : > { %2407 = vmatprep.subr.mxu0 %v2077_v29 }
 0x319   : > { %2408 = vmatpush3.msra.mxu0 %v2077_v29 }
 0x31a   : > { %2409 = vmatprep.subr.mxu0 %v2076_v57 }
 0x31b   : > { %2410 = vmatpush3.msra.mxu0 %v2076_v57 }
 0x31c   : > { %2411 = vmatprep.subr.mxu0 %v2075_v56 }
 0x31d   : > { %2412 = vmatpush3.msra.mxu0 %v2075_v56 }
 0x31e   : > { %2413 = vmatprep.subr.mxu0 %v2074_v59 }
 0x31f   : > { %2414 = vmatpush3.msra.mxu0 %v2074_v59 }
 0x320   : > { %2415 = vmatprep.subr.mxu0 %v2073_v21 }
 0x321   : > { %2416 = vmatpush3.msra.mxu0 %v2073_v21 }
 0x375   : > { %v1817_v38 = vpop.f32.mrf.mxu1 }
 0x376   : > { %v1818_v45 = vadd.f32 %v1817_v38, %v1744_v42 }
 0x377   : > { %v1819_v39 = vpop.f32.mrf.mxu1 }
 0x378   : > { %v1820_v48 = vadd.f32 %v1819_v39, %v1748_v43 }
 0x37b   : > { %v1823_v40 = vpop.f32.mrf.mxu1 }
 0x37c   : > { %v1824_v54 = vadd.f32 %v1823_v40, %v1744_v42 }
 0x37d   : > { %v1825_v28 = vpop.f32.mrf.mxu1 }
 0x37e   : > { %v1826_v60 = vadd.f32 %v1825_v28, %v1748_v43 }
 0x381   : > { %v1829_v44 = vpop.f32.mrf.mxu1 }
 0x382   : > { %v1830_v3 = vadd.f32 %v1829_v44, %v1744_v42 }
 0x383   : > { %v1831_v49 = vpop.f32.mrf.mxu1 }
 0x384   : > { %v1832_v26 = vadd.f32 %v1831_v49, %v1748_v43 }
 0x387   : > { %v1835_v61 = vpop.f32.mrf.mxu1 }
 0x388   : > { %v1836_v9 = vadd.f32 %v1835_v61, %v1744_v42 }
 0x389   : > { %v1837_v5 = vpop.f32.mrf.mxu1 }
 0x38a   : > { %v1838_v11 = vadd.f32 %v1837_v5, %v1748_v43 }
 0x3bc   : > { %v1906_v47 = vpop.f32.mrf.mxu0 }
 0x3bd   : > { %v1907_v50 = vadd.f32 %v1906_v47, %v1818_v45 }
 0x3be   : > { %v1908_v51 = vpop.f32.mrf.mxu0 }
 0x3bf   : > { %v1909_v52 = vadd.f32 %v1908_v51, %v1820_v48 }
 0x3c0   : > { %v1912_v55 = vpop.f32.mrf.mxu0 }
 0x3c1   : > { %2487 = vtanh.f32 %v1909_v52  ;;  %v1913_v1 = vadd.f32 %v1912_v55, %v1824_v54 }
 0x3c2   : > { %2489 = vtanh.f32 %v1907_v50  ;;  %v1914_v2 = vpop.f32.mrf.mxu0  ;;  %v2305_v50 = vld [vmem:[%s3034_s12] ss:$0 sm:$0xff] }
 0x3c3   : > { %v1915_v23 = vadd.f32 %v1914_v2, %v1826_v60 }
 0x3c4   : > { %v1918_v4 = vpop.f32.mrf.mxu0 }
 0x3c5   : > { %2491 = vtanh.f32 %v1915_v23  ;;  %v1919_v6 = vadd.f32 %v1918_v4, %v1830_v3 }
 0x3c6   : > { %2493 = vtanh.f32 %v1913_v1  ;;  %v1920_v7 = vpop.f32.mrf.mxu0 }
 0x3c7   : > { %v1921_v8 = vadd.f32 %v1920_v7, %v1832_v26 }
 0x3c8   : > { %v1924_v10 = vpop.f32.mrf.mxu0 }
 0x3c9   : > { %2495 = vtanh.f32 %v1921_v8  ;;  %v1925_v14 = vadd.f32 %v1924_v10, %v1836_v9 }
 0x3ca   : > { %2497 = vtanh.f32 %v1919_v6  ;;  %v1926_v15 = vpop.f32.mrf.mxu0 }
 0x3cb   : > { %v1927_v16 = vadd.f32 %v1926_v15, %v1838_v11 }
 0x3cd   : > { %2499 = vtanh.f32 %v1927_v16 }
 0x3ce   : > { %v2488_v17 = vpop.eup %2487  ;;  %2501 = vtanh.f32 %v1925_v14 }
 0x3cf   : > { %v2490_v20 = vpop.eup %2489  ;;  %2040 = vmatprep.mubr.f32.mxu1 %v2488_v17 }
 0x3d0   : > { %2041 = vmatmul.mubr.f32.vlgmr.msra.gmra.mxu1 %v2490_v20 }
 0x3d2   : > { %v2492_v53 = vpop.eup %2491 }
 0x3d3   : > { %v2494_v62 = vpop.eup %2493  ;;  %2045 = vmatprep.mubr.f32.mxu1 %v2492_v53 }
 0x3d4   : > { %2046 = vmatmul.mubr.f32.gmra.mxu1 %v2494_v62 }
 0x3d6   : > { %v2496_v12 = vpop.eup %2495 }
 0x3d7   : > { %v2498_v13 = vpop.eup %2497  ;;  %2050 = vmatprep.mubr.f32.mxu1 %v2496_v12 }
 0x3d8   : > { %2051 = vmatmul.mubr.f32.gmra.mxu1 %v2498_v13 }
 0x3da   : > { %v2500_v18 = vpop.eup %2499 }
 0x3db   : > { %v2502_v19 = vpop.eup %2501  ;;  %2055 = vmatprep.mubr.f32.mxu1 %v2500_v18 }
 0x3dc   : > { %2056 = vmatmul.mubr.f32.gmra.mxu1 %v2502_v19 }
 0x490   : > { %v2345_v58 = vpop.f32.mrf.mxu1 }
 0x492   : > { %v2346_v25 = vpop.f32.mrf.mxu1 }
 0x493   : > { %v2347_v22 = vadd.f32 %v2346_v25, %v2345_v58 }
 0x494   : > { %v2348_v30 = vpop.f32.mrf.mxu1 }
 0x495   : > { %v2043_v27 = vadd.f32 %v2347_v22, %v2304_v24 }
 0x496   : > { %v2349_v32 = vpop.f32.mrf.mxu1 }
 0x497   : > { %v2350_v63 = vadd.f32 %v2349_v32, %v2348_v30  ;;  %vm2061_vm3 = vcmp.ge.f32.partialorder %v2043_v27, 0.0  ;;  %v2065_v0 = vmul.f32 0.01, %v2043_v27 }
 0x498   : > { %v2351_v31 = vpop.f32.mrf.mxu1 }
 0x499   : > { %v2048_v34 = vadd.f32 %v2350_v63, %v2304_v24  ;;  %v2069_v35 = vsel %vm2061_vm3, %v2043_v27, %v2065_v0 }
 0x49a   : > { %v2352_v36 = vpop.f32.mrf.mxu1  ;;  %2417 = vmatprep.mubr.f32.mxu0 %v2069_v35 }
 0x49b   : > { %vm2062_vm4 = vcmp.ge.f32.partialorder %v2048_v34, 0.0  ;;  %v2066_v37 = vmul.f32 0.01, %v2048_v34  ;;  %v2353_v38 = vadd.f32 %v2352_v36, %v2351_v31 }
 0x49c   : > { %v2354_v39 = vpop.f32.mrf.mxu1 }
 0x49d   : > { %v2053_v40 = vadd.f32 %v2353_v38, %v2304_v24  ;;  %v2070_v41 = vsel %vm2062_vm4, %v2048_v34, %v2066_v37 }
 0x49e   : > { %v2355_v42 = vpop.f32.mrf.mxu1  ;;  %2418 = vmatmul.mubr.f32.vlgmr.msra.gmra.mxu0 %v2070_v41 }
 0x49f   : > { %v2356_v28 = vadd.f32 %v2355_v42, %v2354_v39  ;;  %vm2063_vm5 = vcmp.ge.f32.partialorder %v2053_v40, 0.0  ;;  %v2067_v43 = vmul.f32 0.01, %v2053_v40 }
 0x4a1   : > { %v2058_v44 = vadd.f32 %v2356_v28, %v2304_v24  ;;  %v2071_v45 = vsel %vm2063_vm5, %v2053_v40, %v2067_v43 }
 0x4a2   : > { %2420 = vmatprep.mubr.f32.mxu0 %v2071_v45 }
 0x4a3   : > { %vm2064_vm6 = vcmp.ge.f32.partialorder %v2058_v44, 0.0  ;;  %v2068_v47 = vmul.f32 0.01, %v2058_v44 }
 0x4a5   : > { %v2072_v48 = vsel %vm2064_vm6, %v2058_v44, %v2068_v47 }
 0x4a6   : > { %2421 = vmatmul.mubr.f32.gmra.mxu0 %v2072_v48 }
 0x55e   : > { %v2419_v49 = vpop.f32.mrf.mxu0 }
 0x55f   : > { %v2168_v54 = vadd.f32 %v2419_v49, %v2305_v50 }
 0x560   : > { %v2162_v51 = vpop.f32.mrf.mxu0 }
 0x561   : > { %v2163_v52 = vadd.f32 %v2305_v50, %v2162_v51  ;;  %2182 = vst.msk [vmem:[%s501_s23 + $0x8] sm:$0xff] %vm515_vm0, %v2168_v54 }
 0x563   : > { %2181 = vst.msk [vmem:[%s501_s23] sm:$0xff] %vm515_vm0, %v2163_v52 }
 0x566   : > { %v2422_v55 = vpop.f32.mrf.mxu0 }
 0x567   : > { %v2178_v1 = vadd.f32 %v2422_v55, %v2305_v50 }
 0x568   : > { %v2172_v60 = vpop.f32.mrf.mxu0 }
 0x569   : > { %v2173_v61 = vadd.f32 %v2305_v50, %v2172_v60  ;;  %2184 = vst.msk [vmem:[%s501_s23 + $0x18] sm:$0xff] %vm515_vm0, %v2178_v1 }
 0x56b   : > { %2183 = vst.msk [vmem:[%s501_s23 + $0x10] sm:$0xff] %vm515_vm0, %v2173_v61 }
 0x56c PF: > { %s26_s25 = sadd.s32 1, %s2625_s25  }
 0x56d   : > { %p23_p2 = scmp.ge.s32.totalorder %s26_s25, 4  }
 0x56f   :  { %25 = sbr.rel (!%p23_p2) target bundleno = 3 (0x3), region = 119 }
 0x574   :  { %2207 = vsyncpa [#allocation3], 1 }
 0x575   :  { %2209 = vsyncpa [#allocation3 + $0x1], 1 }
 0x576   :  { %2210 = vsyncpa [#allocation5], 1 }
 0x577   :  { %2211 = vsyncpa [#allocation8], 1 }

</bundles_post_ra>
